<compile_context>
chip_gen: v6e
topology: v6e:2x2x1
jax: 0.10.0
libtpu: 0.0.40
codegen_flags: <defaults>
</compile_context>

<pallas_src>
import functools

import jax
import jax.numpy as jnp
from jax import lax
from jax.experimental import pallas as pl
from jax.experimental.pallas import tpu as pltpu

_VMEM_LIMIT = 48 * 1024 * 1024          # below v7x's 64 MiB physical, above defaults
_CHUNK_BUDGET = 24 * 1024 * 1024        # VMEM budget for the time-chunked buffers


def _round_up(x, m):
    return ((x + m - 1) // m) * m


# ----------------------------------------------------------------------------
# Tiled linear kernels (MXU): out = x @ w + b   /   out = xa @ wa + xb @ wb + b
#   inputs bf16, bias f32, accumulation f32, output dtype selectable.
# ----------------------------------------------------------------------------
def _linear_kernel(x_ref, w_ref, b_ref, o_ref):
    acc = jnp.dot(x_ref[...], w_ref[...], preferred_element_type=jnp.float32)
    o_ref[...] = (acc + b_ref[...]).astype(o_ref.dtype)


def _linear2_kernel(xa_ref, xb_ref, wa_ref, wb_ref, b_ref, o_ref):
    acc = jnp.dot(xa_ref[...], wa_ref[...], preferred_element_type=jnp.float32)
    acc = acc + jnp.dot(xb_ref[...], wb_ref[...],
                        preferred_element_type=jnp.float32)
    o_ref[...] = (acc + b_ref[...]).astype(o_ref.dtype)


def linear_pallas(x2d, w, b2d, *, out_dtype=jnp.bfloat16, tile_m=256):
    M, K = x2d.shape
    Kw, N = w.shape
    assert Kw == K and N % 128 == 0
    M_pad = _round_up(M, 16)
    tm = min(tile_m, M_pad)
    M_pad = _round_up(M_pad, tm)
    if M_pad != M:
        x2d = jnp.pad(x2d, ((0, M_pad - M), (0, 0)))
    out = pl.pallas_call(
        _linear_kernel,
        out_shape=jax.ShapeDtypeStruct((M_pad, N), out_dtype),
        grid=(M_pad // tm,),
        in_specs=[pl.BlockSpec((tm, K), lambda i: (i, 0)),
                  pl.BlockSpec((K, N), lambda i: (0, 0)),
                  pl.BlockSpec((1, N), lambda i: (0, 0))],
        out_specs=pl.BlockSpec((tm, N), lambda i: (i, 0)),
        compiler_params=pltpu.CompilerParams(
            dimension_semantics=("parallel",),
            vmem_limit_bytes=_VMEM_LIMIT),
    )(x2d, w, b2d)
    return out[:M]


def linear2_pallas(xa, xb, wa, wb, b2d, *, out_dtype, tile_m=256):
    M, Ka = xa.shape
    Mb, Kb = xb.shape
    assert M == Mb
    N = wa.shape[1]
    assert wb.shape[1] == N and N % 128 == 0
    M_pad = _round_up(M, 16)
    tm = min(tile_m, M_pad)
    M_pad = _round_up(M_pad, tm)
    if M_pad != M:
        xa = jnp.pad(xa, ((0, M_pad - M), (0, 0)))
        xb = jnp.pad(xb, ((0, M_pad - M), (0, 0)))
    out = pl.pallas_call(
        _linear2_kernel,
        out_shape=jax.ShapeDtypeStruct((M_pad, N), out_dtype),
        grid=(M_pad // tm,),
        in_specs=[pl.BlockSpec((tm, Ka), lambda i: (i, 0)),
                  pl.BlockSpec((tm, Kb), lambda i: (i, 0)),
                  pl.BlockSpec((Ka, N), lambda i: (0, 0)),
                  pl.BlockSpec((Kb, N), lambda i: (0, 0)),
                  pl.BlockSpec((1, N), lambda i: (0, 0))],
        out_specs=pl.BlockSpec((tm, N), lambda i: (i, 0)),
        compiler_params=pltpu.CompilerParams(
            dimension_semantics=("parallel",),
            vmem_limit_bytes=_VMEM_LIMIT),
    )(xa, xb, wa, wb, b2d)
    return out[:M]


# ----------------------------------------------------------------------------
# Fused, time-chunked bidirectional LSTM layer kernel.
#   grid = (n_chunks,)  "arbitrary" (sequential recurrence), h/c persist in scratch.
#   lens_ref   : (Bp, 1)  int32      sequence lengths (0 for padded batch rows)
#   gatesf_ref : (Tc, Bp, 4Hp) bf16  fwd chunk of x@W_ih + b (gate cols [0:4Hp])
#   gatesb_ref : (Tc, Bp, 4Hp) bf16  bwd chunk (reversed chunk order, cols [4Hp:8Hp])
#   whhf/whhb  : (Hp, 4Hp) bf16      per-direction recurrent weights
#   outf/outb  : (Tc, Bp, Hp) bf16   per-direction hidden outputs (natural time order)
#   hf,cf,hb,cb: (Bp, Hp) f32        persistent state scratch
# ----------------------------------------------------------------------------
def _bilstm_chunk_kernel(lens_ref, gatesf_ref, gatesb_ref, whhf_ref, whhb_ref,
                         outf_ref, outb_ref, hf_sc, cf_sc, hb_sc, cb_sc,
                         *, chunk_t, n_chunks, hidden_p):
    Hp = hidden_p
    ci = pl.program_id(0)

    @pl.when(ci == 0)
    def _():
        hf_sc[...] = jnp.zeros_like(hf_sc)
        cf_sc[...] = jnp.zeros_like(cf_sc)
        hb_sc[...] = jnp.zeros_like(hb_sc)
        cb_sc[...] = jnp.zeros_like(cb_sc)

    lens = lens_ref[...]                              # (Bp, 1) int32
    t0_f = ci * chunk_t                               # global start of fwd chunk
    t0_b = (n_chunks - 1 - ci) * chunk_t              # global start of bwd chunk

    def step(tl, carry):
        bl = chunk_t - 1 - tl                         # local idx in bwd chunk
        t = t0_f + tl                                 # fwd global time
        rt = t0_b + bl                                # bwd global time

        # ---------------- forward direction ----------------
        h_f = hf_sc[...]
        c_f = cf_sc[...]
        rec_f = jnp.dot(h_f.astype(jnp.bfloat16), whhf_ref[...],
                        preferred_element_type=jnp.float32)        # (Bp, 4Hp)
        pre_f = gatesf_ref[tl].astype(jnp.float32) + rec_f
        i_f = jax.nn.sigmoid(pre_f[:, :Hp])
        f_f = jax.nn.sigmoid(pre_f[:, Hp:2 * Hp])
        g_f = jnp.tanh(pre_f[:, 2 * Hp:3 * Hp])
        o_f = jax.nn.sigmoid(pre_f[:, 3 * Hp:])
        c_fn = f_f * c_f + i_f * g_f
        h_fn = o_f * jnp.tanh(c_fn)
        v_f = t < lens                                             # (Bp, 1) bool
        cf_sc[...] = jnp.where(v_f, c_fn, c_f)
        hf_sc[...] = jnp.where(v_f, h_fn, h_f)
        outf_ref[tl] = jnp.where(v_f, h_fn, 0.0).astype(outf_ref.dtype)

        # ---------------- backward direction ----------------
        h_b = hb_sc[...]
        c_b = cb_sc[...]
        rec_b = jnp.dot(h_b.astype(jnp.bfloat16), whhb_ref[...],
                        preferred_element_type=jnp.float32)        # (Bp, 4Hp)
        pre_b = gatesb_ref[bl].astype(jnp.float32) + rec_b
        i_b = jax.nn.sigmoid(pre_b[:, :Hp])
        f_b = jax.nn.sigmoid(pre_b[:, Hp:2 * Hp])
        g_b = jnp.tanh(pre_b[:, 2 * Hp:3 * Hp])
        o_b = jax.nn.sigmoid(pre_b[:, 3 * Hp:])
        c_bn = f_b * c_b + i_b * g_b
        h_bn = o_b * jnp.tanh(c_bn)
        v_b = rt < lens
        cb_sc[...] = jnp.where(v_b, c_bn, c_b)
        hb_sc[...] = jnp.where(v_b, h_bn, h_b)
        outb_ref[bl] = jnp.where(v_b, h_bn, 0.0).astype(outb_ref.dtype)
        return carry

    lax.fori_loop(0, chunk_t, step, 0)


def bilstm_layer(gates, lens2d, whh_f, whh_b, *, chunk_t):
    """gates: (S_pad, Bp, 8Hp) bf16, cols [fwd i,f,g,o | bwd i,f,g,o]."""
    S_pad, Bp, G8 = gates.shape
    Hp = G8 // 8
    G4 = 4 * Hp
    assert S_pad % chunk_t == 0
    n_chunks = S_pad // chunk_t

    kernel = functools.partial(_bilstm_chunk_kernel, chunk_t=chunk_t,
                               n_chunks=n_chunks, hidden_p=Hp)
    outf, outb = pl.pallas_call(
        kernel,
        out_shape=(jax.ShapeDtypeStruct((S_pad, Bp, Hp), jnp.bfloat16),
                   jax.ShapeDtypeStruct((S_pad, Bp, Hp), jnp.bfloat16)),
        grid=(n_chunks,),
        in_specs=[
            pl.BlockSpec((Bp, 1), lambda i: (0, 0)),                     # lens
            pl.BlockSpec((chunk_t, Bp, G4), lambda i: (i, 0, 0)),        # fwd gates
            pl.BlockSpec((chunk_t, Bp, G4),
                         lambda i: (n_chunks - 1 - i, 0, 1)),            # bwd gates
            pl.BlockSpec((Hp, G4), lambda i: (0, 0)),                    # whh fwd
            pl.BlockSpec((Hp, G4), lambda i: (0, 0)),                    # whh bwd
        ],
        out_specs=(pl.BlockSpec((chunk_t, Bp, Hp), lambda i: (i, 0, 0)),
                   pl.BlockSpec((chunk_t, Bp, Hp),
                                lambda i: (n_chunks - 1 - i, 0, 0))),
        scratch_shapes=[pltpu.VMEM((Bp, Hp), jnp.float32) for _ in range(4)],
        compiler_params=pltpu.CompilerParams(
            dimension_semantics=("arbitrary",),
            vmem_limit_bytes=_VMEM_LIMIT),
        # TODO(synk): on v7x a leading size-2 "parallel" batch-split axis could use
        # the second TensorCore; omitted to keep one code path for v5e/v6e/v7x.
    )(lens2d, gates, gates, whh_f, whh_b)
    return outf, outb


def _pick_chunk_t(seq_len, batch_p, hidden_p, budget_bytes=_CHUNK_BUDGET):
    # Per-timestep bf16 bytes of chunked buffers (gates + outputs, both dirs),
    # times 2 for double-buffering.
    per_t = (2 * batch_p * 4 * hidden_p + 2 * batch_p * hidden_p) * 2 * 2
    chunk = max(1, budget_bytes // max(per_t, 1))
    return int(min(chunk, seq_len))


# ----------------------------------------------------------------------------
# Model wrapper (parameter setup + glue in plain JAX)
# ----------------------------------------------------------------------------
class PallasTagger:
    def __init__(self, key, *, n_words, n_embed, n_lstm_hidden, n_lstm_layers,
                 n_labels, pad_index):
        self.n_embed = n_embed
        self.n_hidden = n_lstm_hidden
        self.n_layers = n_lstm_layers
        self.n_labels = n_labels
        self.pad_index = pad_index

        H = n_lstm_hidden
        Hp = _round_up(H, 128)          # lane-aligned hidden (extra units exactly 0)
        Np = _round_up(n_labels, 128)   # lane-dense MLP output, sliced back outside
        self.Hp, self.Np = Hp, Np

        def init(k, shape, scale=0.1):
            return (scale * jax.random.normal(k, shape)).astype(jnp.float32)

        keys = iter(jax.random.split(key, 4 + 6 * n_lstm_layers))

        # nn.Embedding(n_words, n_embed)
        self.word_embed = init(next(keys), (n_words, n_embed))

        def pad_gate_cols(w):           # (R, 4H) -> (R, 4Hp): each gate padded to Hp
            R = w.shape[0]
            out = jnp.zeros((R, 4, Hp), w.dtype)
            out = out.at[:, :, :H].set(w.reshape(R, 4, H))
            return out.reshape(R, 4 * Hp)

        # BiLSTM: per layer, input projection weights (directions concatenated along
        # columns -> [fwd i,f,g,o | bwd i,f,g,o]), combined bias (b_ih + b_hh folded)
        # and per-direction recurrent weights (Hp, 4Hp).  PyTorch gate order i,f,g,o.
        self.layer_in = []   # layer 0: ('single', w, b); layer>0: ('double', wf, wb, b)
        self.whh = []        # list of (whh_fwd, whh_bwd)
        for layer in range(n_lstm_layers):
            d_in = n_embed if layer == 0 else 2 * H
            wih, whh, bias = [], [], []
            for _ in range(2):          # fwd, bwd
                w_ih_t = init(next(keys), (d_in, 4 * H))
                w_hh_t = init(next(keys), (H, 4 * H))
                b = init(next(keys), (1, 4 * H))
                wih.append(pad_gate_cols(w_ih_t))                       # (d_in, 4Hp)
                whh_p = jnp.pad(pad_gate_cols(w_hh_t), ((0, Hp - H), (0, 0)))
                whh.append(whh_p.astype(jnp.bfloat16))                  # (Hp, 4Hp)
                bias.append(jnp.pad(b.reshape(1, 4, H),
                                    ((0, 0), (0, 0), (0, Hp - H))
                                    ).reshape(1, 4 * Hp))
            b_comb = jnp.concatenate(bias, axis=1)                      # (1, 8Hp) f32
            if layer == 0:
                w_comb = jnp.concatenate(wih, axis=1).astype(jnp.bfloat16)  # (E, 8Hp)
                self.layer_in.append(('single', w_comb, b_comb))
            else:
                # rows [0:H] of each direction's w_ih multiply the fwd hidden input,
                # rows [H:2H] multiply the bwd hidden input.
                wf = jnp.concatenate([jnp.pad(wih[d][:H], ((0, Hp - H), (0, 0)))
                                      for d in range(2)], axis=1)       # (Hp, 8Hp)
                wb = jnp.concatenate([jnp.pad(wih[d][H:], ((0, Hp - H), (0, 0)))
                                      for d in range(2)], axis=1)       # (Hp, 8Hp)
                self.layer_in.append(('double', wf.astype(jnp.bfloat16),
                                      wb.astype(jnp.bfloat16), b_comb))
            self.whh.append((whh[0], whh[1]))

        # MLP(n_in=2H, n_out=n_labels), split into fwd/bwd input halves.
        # TODO(synk): MLP class definition not provided; implemented as Linear.
        mlp_w = init(next(keys), (2 * H, n_labels))
        mlp_b = init(next(keys), (1, n_labels))
        self.mlp_w_f = jnp.pad(mlp_w[:H], ((0, Hp - H), (0, Np - n_labels))
                               ).astype(jnp.bfloat16)
        self.mlp_w_b = jnp.pad(mlp_w[H:], ((0, Hp - H), (0, Np - n_labels))
                               ).astype(jnp.bfloat16)
        self.mlp_b = jnp.pad(mlp_b, ((0, 0), (0, Np - n_labels)))

        self._forward = jax.jit(self._forward_impl)

    def _forward_impl(self, words):
        B, S = words.shape
        Bp = _round_up(B, 16)
        Hp = self.Hp
        chunk_t = _pick_chunk_t(S, Bp, Hp)
        S_pad = _round_up(S, chunk_t)

        mask = (words != self.pad_index)
        lens = mask.sum(axis=1).astype(jnp.int32)                       # (B,)
        lens_p = jnp.zeros((Bp, 1), jnp.int32).at[:B, 0].set(lens)

        # glue: embedding gather (ext_words == words since pretrained=False).
        # IndependentDropout / SharedDropout / inter-layer LSTM dropout are
        # identity at inference and omitted.
        embed = jnp.take(self.word_embed, words, axis=0)                # (B, S, E)
        x = jnp.zeros((Bp, S_pad, self.n_embed), jnp.bfloat16)
        x = x.at[:B, :S].set(embed.astype(jnp.bfloat16))
        x = jnp.transpose(x, (1, 0, 2))                                 # (S_pad, Bp, E)

        # ---- layer 0: one combined input projection for both directions ----
        _, w0, b0 = self.layer_in[0]
        gates = linear_pallas(x.reshape(S_pad * Bp, self.n_embed), w0, b0,
                              out_dtype=jnp.bfloat16)
        gates = gates.reshape(S_pad, Bp, 8 * Hp)
        outf, outb = bilstm_layer(gates, lens_p, self.whh[0][0], self.whh[0][1],
                                  chunk_t=chunk_t)

        # ---- layers > 0: two-input projection (no fwd/bwd concat anywhere) ----
        for layer in range(1, self.n_layers):
            _, wf, wb, b = self.layer_in[layer]
            gates = linear2_pallas(outf.reshape(S_pad * Bp, Hp),
                                   outb.reshape(S_pad * Bp, Hp),
                                   wf, wb, b, out_dtype=jnp.bfloat16)
            gates = gates.reshape(S_pad, Bp, 8 * Hp)
            outf, outb = bilstm_layer(gates, lens_p,
                                      self.whh[layer][0], self.whh[layer][1],
                                      chunk_t=chunk_t)

        # ---- MLP on the time-major layout the LSTM produced ----
        emits = linear2_pallas(outf.reshape(S_pad * Bp, Hp),
                               outb.reshape(S_pad * Bp, Hp),
                               self.mlp_w_f, self.mlp_w_b, self.mlp_b,
                               out_dtype=jnp.float32)                   # (S_pad*Bp, Np)
        emits = emits.reshape(S_pad, Bp, self.Np)
        emits = jnp.transpose(emits[:S, :B, :self.n_labels], (1, 0, 2))  # (B, S, L)
        return emits

    def forward(self, words):
        return self._forward(words)


if __name__ == "__main__":
    key = jax.random.PRNGKey(0)

    # small args consistent with the module
    n_words, n_embed = 100, 32
    n_lstm_hidden, n_lstm_layers = 32, 2
    n_labels, pad_index = 8, 0
    B, S = 2, 8

    model = PallasTagger(key,
                         n_words=n_words, n_embed=n_embed,
                         n_lstm_hidden=n_lstm_hidden,
                         n_lstm_layers=n_lstm_layers,
                         n_labels=n_labels, pad_index=pad_index)

    wkey = jax.random.fold_in(key, 999)
    words = jax.random.randint(wkey, (B, S), 2, n_words, dtype=jnp.int32)
    lens = jnp.array([S, 5], dtype=jnp.int32)          # second sequence padded
    pos = jnp.arange(S, dtype=jnp.int32)[None, :]
    words = jnp.where(pos < lens[:, None], words, pad_index)

    emits = model.forward(words)
    jax.block_until_ready(emits)
    assert emits.shape == (B, S, n_labels), emits.shape
    assert emits.dtype == jnp.float32
    print("KERNEL_OK")
</pallas_src>

<mosaic_0001>
module attributes {stable_mosaic.version = 11 : i64} {
  func.func @_linear2_kernel(%arg0: i32, %arg1: memref<128x128xbf16, #tpu.memory_space<vmem>>, %arg2: memref<128x128xbf16, #tpu.memory_space<vmem>>, %arg3: memref<128x128xbf16, #tpu.memory_space<vmem>>, %arg4: memref<128x128xbf16, #tpu.memory_space<vmem>>, %arg5: memref<1x128xf32, #tpu.memory_space<vmem>>, %arg6: memref<128x128xf32, #tpu.memory_space<vmem>>) attributes {dimension_semantics = [#tpu.dimension_semantics<parallel>], iteration_bounds = array<i64: 1>, scalar_prefetch = 0 : i64, scratch_operands = 0 : i64, tpu.core_type = #tpu.core_type<tc>, window_params = [{transform_indices = @transform_0, window_bounds = array<i64: 128, 128>}, {transform_indices = @transform_1, window_bounds = array<i64: 128, 128>}, {pipeline_mode = #tpu.pipeline_mode<synchronous>, transform_indices = @transform_2, window_bounds = array<i64: 128, 128>}, {pipeline_mode = #tpu.pipeline_mode<synchronous>, transform_indices = @transform_3, window_bounds = array<i64: 128, 128>}, {pipeline_mode = #tpu.pipeline_mode<synchronous>, transform_indices = @transform_4, window_bounds = array<i64: 1, 128>}, {transform_indices = @transform_5, window_bounds = array<i64: 128, 128>}]} {
    %c0 = arith.constant 0 : index
    %c0_0 = arith.constant 0 : index
    %0 = vector.load %arg1[%c0, %c0_0] : memref<128x128xbf16, #tpu.memory_space<vmem>>, vector<128x128xbf16>
    %c0_1 = arith.constant 0 : index
    %c0_2 = arith.constant 0 : index
    %1 = vector.load %arg3[%c0_1, %c0_2] : memref<128x128xbf16, #tpu.memory_space<vmem>>, vector<128x128xbf16>
    %cst = arith.constant dense<0.000000e+00> : vector<128x128xf32>
    %2 = tpu.matmul %0, %1, %cst {dimension_numbers = #tpu.dot_dimension_numbers<[1], [0], [0], [1], [0, 0, 1, 1], [], []>} : vector<128x128xbf16>, vector<128x128xbf16>, vector<128x128xf32> -> vector<128x128xf32>
    %c0_3 = arith.constant 0 : index
    %c0_4 = arith.constant 0 : index
    %3 = vector.load %arg2[%c0_3, %c0_4] : memref<128x128xbf16, #tpu.memory_space<vmem>>, vector<128x128xbf16>
    %c0_5 = arith.constant 0 : index
    %c0_6 = arith.constant 0 : index
    %4 = vector.load %arg4[%c0_5, %c0_6] : memref<128x128xbf16, #tpu.memory_space<vmem>>, vector<128x128xbf16>
    %cst_7 = arith.constant dense<0.000000e+00> : vector<128x128xf32>
    %5 = tpu.matmul %3, %4, %cst_7 {dimension_numbers = #tpu.dot_dimension_numbers<[1], [0], [0], [1], [0, 0, 1, 1], [], []>} : vector<128x128xbf16>, vector<128x128xbf16>, vector<128x128xf32> -> vector<128x128xf32>
    %6 = arith.addf %2, %5 : vector<128x128xf32>
    %c0_8 = arith.constant 0 : index
    %c0_9 = arith.constant 0 : index
    %7 = vector.load %arg5[%c0_8, %c0_9] : memref<1x128xf32, #tpu.memory_space<vmem>>, vector<1x128xf32>
    %8 = vector.broadcast %7 : vector<1x128xf32> to vector<128x128xf32>
    %9 = arith.addf %6, %8 : vector<128x128xf32>
    %c0_10 = arith.constant 0 : index
    %c0_11 = arith.constant 0 : index
    %10 = vector.load %arg6[%c0_10, %c0_11] : memref<128x128xf32, #tpu.memory_space<vmem>>, vector<128x128xf32>
    tpu.vector_store %arg6[%c0_10, %c0_11], %9 {strides = array<i32>} : memref<128x128xf32, #tpu.memory_space<vmem>>, vector<128x128xf32>,
    return
  }
  func.func @transform_0(%arg0: i32) -> (i32, i32) {
    %c0_i32 = arith.constant 0 : i32
    %c0_i32_0 = arith.constant 0 : i32
    return %arg0, %c0_i32 : i32, i32
  }
  func.func @transform_1(%arg0: i32) -> (i32, i32) {
    %c0_i32 = arith.constant 0 : i32
    %c0_i32_0 = arith.constant 0 : i32
    return %arg0, %c0_i32 : i32, i32
  }
  func.func @transform_2(%arg0: i32) -> (i32, i32) {
    %c0_i32 = arith.constant 0 : i32
    %c0_i32_0 = arith.constant 0 : i32
    %c0_i32_1 = arith.constant 0 : i32
    return %c0_i32, %c0_i32_0 : i32, i32
  }
  func.func @transform_3(%arg0: i32) -> (i32, i32) {
    %c0_i32 = arith.constant 0 : i32
    %c0_i32_0 = arith.constant 0 : i32
    %c0_i32_1 = arith.constant 0 : i32
    return %c0_i32, %c0_i32_0 : i32, i32
  }
  func.func @transform_4(%arg0: i32) -> (i32, i32) {
    %c0_i32 = arith.constant 0 : i32
    %c0_i32_0 = arith.constant 0 : i32
    %c0_i32_1 = arith.constant 0 : i32
    return %c0_i32, %c0_i32_0 : i32, i32
  }
  func.func @transform_5(%arg0: i32) -> (i32, i32) {
    %c0_i32 = arith.constant 0 : i32
    %c0_i32_0 = arith.constant 0 : i32
    return %arg0, %c0_i32 : i32, i32
  }
}

module attributes {stable_mosaic.version = 11 : i64} {
  func.func @_linear_kernel(%arg0: i32, %arg1: memref<128x32xbf16, #tpu.memory_space<vmem>>, %arg2: memref<32x1024xbf16, #tpu.memory_space<vmem>>, %arg3: memref<1x1024xf32, #tpu.memory_space<vmem>>, %arg4: memref<128x1024xbf16, #tpu.memory_space<vmem>>) attributes {dimension_semantics = [#tpu.dimension_semantics<parallel>], iteration_bounds = array<i64: 1>, scalar_prefetch = 0 : i64, scratch_operands = 0 : i64, tpu.core_type = #tpu.core_type<tc>, window_params = [{transform_indices = @transform_0, window_bounds = array<i64: 128, 32>}, {pipeline_mode = #tpu.pipeline_mode<synchronous>, transform_indices = @transform_1, window_bounds = array<i64: 32, 1024>}, {pipeline_mode = #tpu.pipeline_mode<synchronous>, transform_indices = @transform_2, window_bounds = array<i64: 1, 1024>}, {transform_indices = @transform_3, window_bounds = array<i64: 128, 1024>}]} {
    %c0 = arith.constant 0 : index
    %c0_0 = arith.constant 0 : index
    %0 = vector.load %arg1[%c0, %c0_0] : memref<128x32xbf16, #tpu.memory_space<vmem>>, vector<128x32xbf16>
    %c0_1 = arith.constant 0 : index
    %c0_2 = arith.constant 0 : index
    %1 = vector.load %arg2[%c0_1, %c0_2] : memref<32x1024xbf16, #tpu.memory_space<vmem>>, vector<32x1024xbf16>
    %cst = arith.constant dense<0.000000e+00> : vector<128x1024xf32>
    %2 = tpu.matmul %0, %1, %cst {dimension_numbers = #tpu.dot_dimension_numbers<[1], [0], [0], [1], [0, 0, 1, 1], [], []>} : vector<128x32xbf16>, vector<32x1024xbf16>, vector<128x1024xf32> -> vector<128x1024xf32>
    %c0_3 = arith.constant 0 : index
    %c0_4 = arith.constant 0 : index
    %3 = vector.load %arg3[%c0_3, %c0_4] : memref<1x1024xf32, #tpu.memory_space<vmem>>, vector<1x1024xf32>
    %4 = vector.broadcast %3 : vector<1x1024xf32> to vector<128x1024xf32>
    %5 = arith.addf %2, %4 : vector<128x1024xf32>
    %6 = arith.truncf %5 : vector<128x1024xf32> to vector<128x1024xbf16>
    %c0_5 = arith.constant 0 : index
    %c0_6 = arith.constant 0 : index
    %7 = vector.load %arg4[%c0_5, %c0_6] : memref<128x1024xbf16, #tpu.memory_space<vmem>>, vector<128x1024xbf16>
    tpu.vector_store %arg4[%c0_5, %c0_6], %6 {strides = array<i32>} : memref<128x1024xbf16, #tpu.memory_space<vmem>>, vector<128x1024xbf16>,
    return
  }
  func.func @transform_0(%arg0: i32) -> (i32, i32) {
    %c0_i32 = arith.constant 0 : i32
    %c0_i32_0 = arith.constant 0 : i32
    return %arg0, %c0_i32 : i32, i32
  }
  func.func @transform_1(%arg0: i32) -> (i32, i32) {
    %c0_i32 = arith.constant 0 : i32
    %c0_i32_0 = arith.constant 0 : i32
    %c0_i32_1 = arith.constant 0 : i32
    return %c0_i32, %c0_i32_0 : i32, i32
  }
  func.func @transform_2(%arg0: i32) -> (i32, i32) {
    %c0_i32 = arith.constant 0 : i32
    %c0_i32_0 = arith.constant 0 : i32
    %c0_i32_1 = arith.constant 0 : i32
    return %c0_i32, %c0_i32_0 : i32, i32
  }
  func.func @transform_3(%arg0: i32) -> (i32, i32) {
    %c0_i32 = arith.constant 0 : i32
    %c0_i32_0 = arith.constant 0 : i32
    return %arg0, %c0_i32 : i32, i32
  }
}

module attributes {stable_mosaic.version = 11 : i64} {
  func.func @_linear2_kernel(%arg0: i32, %arg1: memref<128x128xbf16, #tpu.memory_space<vmem>>, %arg2: memref<128x128xbf16, #tpu.memory_space<vmem>>, %arg3: memref<128x1024xbf16, #tpu.memory_space<vmem>>, %arg4: memref<128x1024xbf16, #tpu.memory_space<vmem>>, %arg5: memref<1x1024xf32, #tpu.memory_space<vmem>>, %arg6: memref<128x1024xbf16, #tpu.memory_space<vmem>>) attributes {dimension_semantics = [#tpu.dimension_semantics<parallel>], iteration_bounds = array<i64: 1>, scalar_prefetch = 0 : i64, scratch_operands = 0 : i64, tpu.core_type = #tpu.core_type<tc>, window_params = [{transform_indices = @transform_0, window_bounds = array<i64: 128, 128>}, {transform_indices = @transform_1, window_bounds = array<i64: 128, 128>}, {pipeline_mode = #tpu.pipeline_mode<synchronous>, transform_indices = @transform_2, window_bounds = array<i64: 128, 1024>}, {pipeline_mode = #tpu.pipeline_mode<synchronous>, transform_indices = @transform_3, window_bounds = array<i64: 128, 1024>}, {pipeline_mode = #tpu.pipeline_mode<synchronous>, transform_indices = @transform_4, window_bounds = array<i64: 1, 1024>}, {transform_indices = @transform_5, window_bounds = array<i64: 128, 1024>}]} {
    %c0 = arith.constant 0 : index
    %c0_0 = arith.constant 0 : index
    %0 = vector.load %arg1[%c0, %c0_0] : memref<128x128xbf16, #tpu.memory_space<vmem>>, vector<128x128xbf16>
    %c0_1 = arith.constant 0 : index
    %c0_2 = arith.constant 0 : index
    %1 = vector.load %arg3[%c0_1, %c0_2] : memref<128x1024xbf16, #tpu.memory_space<vmem>>, vector<128x1024xbf16>
    %cst = arith.constant dense<0.000000e+00> : vector<128x1024xf32>
    %2 = tpu.matmul %0, %1, %cst {dimension_numbers = #tpu.dot_dimension_numbers<[1], [0], [0], [1], [0, 0, 1, 1], [], []>} : vector<128x128xbf16>, vector<128x1024xbf16>, vector<128x1024xf32> -> vector<128x1024xf32>
    %c0_3 = arith.constant 0 : index
    %c0_4 = arith.constant 0 : index
    %3 = vector.load %arg2[%c0_3, %c0_4] : memref<128x128xbf16, #tpu.memory_space<vmem>>, vector<128x128xbf16>
    %c0_5 = arith.constant 0 : index
    %c0_6 = arith.constant 0 : index
    %4 = vector.load %arg4[%c0_5, %c0_6] : memref<128x1024xbf16, #tpu.memory_space<vmem>>, vector<128x1024xbf16>
    %cst_7 = arith.constant dense<0.000000e+00> : vector<128x1024xf32>
    %5 = tpu.matmul %3, %4, %cst_7 {dimension_numbers = #tpu.dot_dimension_numbers<[1], [0], [0], [1], [0, 0, 1, 1], [], []>} : vector<128x128xbf16>, vector<128x1024xbf16>, vector<128x1024xf32> -> vector<128x1024xf32>
    %6 = arith.addf %2, %5 : vector<128x1024xf32>
    %c0_8 = arith.constant 0 : index
    %c0_9 = arith.constant 0 : index
    %7 = vector.load %arg5[%c0_8, %c0_9] : memref<1x1024xf32, #tpu.memory_space<vmem>>, vector<1x1024xf32>
    %8 = vector.broadcast %7 : vector<1x1024xf32> to vector<128x1024xf32>
    %9 = arith.addf %6, %8 : vector<128x1024xf32>
    %10 = arith.truncf %9 : vector<128x1024xf32> to vector<128x1024xbf16>
    %c0_10 = arith.constant 0 : index
    %c0_11 = arith.constant 0 : index
    %11 = vector.load %arg6[%c0_10, %c0_11] : memref<128x1024xbf16, #tpu.memory_space<vmem>>, vector<128x1024xbf16>
    tpu.vector_store %arg6[%c0_10, %c0_11], %10 {strides = array<i32>} : memref<128x1024xbf16, #tpu.memory_space<vmem>>, vector<128x1024xbf16>,
    return
  }
  func.func @transform_0(%arg0: i32) -> (i32, i32) {
    %c0_i32 = arith.constant 0 : i32
    %c0_i32_0 = arith.constant 0 : i32
    return %arg0, %c0_i32 : i32, i32
  }
  func.func @transform_1(%arg0: i32) -> (i32, i32) {
    %c0_i32 = arith.constant 0 : i32
    %c0_i32_0 = arith.constant 0 : i32
    return %arg0, %c0_i32 : i32, i32
  }
  func.func @transform_2(%arg0: i32) -> (i32, i32) {
    %c0_i32 = arith.constant 0 : i32
    %c0_i32_0 = arith.constant 0 : i32
    %c0_i32_1 = arith.constant 0 : i32
    return %c0_i32, %c0_i32_0 : i32, i32
  }
  func.func @transform_3(%arg0: i32) -> (i32, i32) {
    %c0_i32 = arith.constant 0 : i32
    %c0_i32_0 = arith.constant 0 : i32
    %c0_i32_1 = arith.constant 0 : i32
    return %c0_i32, %c0_i32_0 : i32, i32
  }
  func.func @transform_4(%arg0: i32) -> (i32, i32) {
    %c0_i32 = arith.constant 0 : i32
    %c0_i32_0 = arith.constant 0 : i32
    %c0_i32_1 = arith.constant 0 : i32
    return %c0_i32, %c0_i32_0 : i32, i32
  }
  func.func @transform_5(%arg0: i32) -> (i32, i32) {
    %c0_i32 = arith.constant 0 : i32
    %c0_i32_0 = arith.constant 0 : i32
    return %arg0, %c0_i32 : i32, i32
  }
}

module attributes {stable_mosaic.version = 11 : i64} {
  func.func @_bilstm_chunk_kernel(%arg0: i32, %arg1: memref<16x1xi32, #tpu.memory_space<vmem>>, %arg2: memref<8x16x512xbf16, #tpu.memory_space<vmem>>, %arg3: memref<8x16x512xbf16, #tpu.memory_space<vmem>>, %arg4: memref<128x512xbf16, #tpu.memory_space<vmem>>, %arg5: memref<128x512xbf16, #tpu.memory_space<vmem>>, %arg6: memref<8x16x128xbf16, #tpu.memory_space<vmem>>, %arg7: memref<8x16x128xbf16, #tpu.memory_space<vmem>>, %arg8: memref<16x128xf32, #tpu.memory_space<vmem>>, %arg9: memref<16x128xf32, #tpu.memory_space<vmem>>, %arg10: memref<16x128xf32, #tpu.memory_space<vmem>>, %arg11: memref<16x128xf32, #tpu.memory_space<vmem>>) attributes {dimension_semantics = [#tpu.dimension_semantics<arbitrary>], iteration_bounds = array<i64: 1>, scalar_prefetch = 0 : i64, scratch_operands = 4 : i64, tpu.core_type = #tpu.core_type<tc>, window_params = [{pipeline_mode = #tpu.pipeline_mode<synchronous>, transform_indices = @transform_0, window_bounds = array<i64: 16, 1>}, {transform_indices = @transform_1, window_bounds = array<i64: 8, 16, 512>}, {transform_indices = @transform_2, window_bounds = array<i64: 8, 16, 512>}, {pipeline_mode = #tpu.pipeline_mode<synchronous>, transform_indices = @transform_3, window_bounds = array<i64: 128, 512>}, {pipeline_mode = #tpu.pipeline_mode<synchronous>, transform_indices = @transform_4, window_bounds = array<i64: 128, 512>}, {transform_indices = @transform_5, window_bounds = array<i64: 8, 16, 128>}, {transform_indices = @transform_6, window_bounds = array<i64: 8, 16, 128>}]} {
    %c0_i32 = arith.constant 0 : i32
    %0 = arith.cmpi eq, %arg0, %c0_i32 : i32
    %1 = arith.extui %0 : i1 to i32
    %c0_i32_0 = arith.constant 0 : i32
    %2 = arith.cmpi ne, %1, %c0_i32_0 : i32
    scf.if %2 {
      %cst = arith.constant 0.000000e+00 : f32
      %8 = vector.broadcast %cst : f32 to vector<16x128xf32>
      %c0_7 = arith.constant 0 : index
      %c0_8 = arith.constant 0 : index
      %9 = vector.load %arg8[%c0_7, %c0_8] : memref<16x128xf32, #tpu.memory_space<vmem>>, vector<16x128xf32>
      tpu.vector_store %arg8[%c0_7, %c0_8], %8 {strides = array<i32>} : memref<16x128xf32, #tpu.memory_space<vmem>>, vector<16x128xf32>,
      %cst_9 = arith.constant 0.000000e+00 : f32
      %10 = vector.broadcast %cst_9 : f32 to vector<16x128xf32>
      %c0_10 = arith.constant 0 : index
      %c0_11 = arith.constant 0 : index
      %11 = vector.load %arg9[%c0_10, %c0_11] : memref<16x128xf32, #tpu.memory_space<vmem>>, vector<16x128xf32>
      tpu.vector_store %arg9[%c0_10, %c0_11], %10 {strides = array<i32>} : memref<16x128xf32, #tpu.memory_space<vmem>>, vector<16x128xf32>,
      %cst_12 = arith.constant 0.000000e+00 : f32
      %12 = vector.broadcast %cst_12 : f32 to vector<16x128xf32>
      %c0_13 = arith.constant 0 : index
      %c0_14 = arith.constant 0 : index
      %13 = vector.load %arg10[%c0_13, %c0_14] : memref<16x128xf32, #tpu.memory_space<vmem>>, vector<16x128xf32>
      tpu.vector_store %arg10[%c0_13, %c0_14], %12 {strides = array<i32>} : memref<16x128xf32, #tpu.memory_space<vmem>>, vector<16x128xf32>,
      %cst_15 = arith.constant 0.000000e+00 : f32
      %14 = vector.broadcast %cst_15 : f32 to vector<16x128xf32>
      %c0_16 = arith.constant 0 : index
      %c0_17 = arith.constant 0 : index
      %15 = vector.load %arg11[%c0_16, %c0_17] : memref<16x128xf32, #tpu.memory_space<vmem>>, vector<16x128xf32>
      tpu.vector_store %arg11[%c0_16, %c0_17], %14 {strides = array<i32>} : memref<16x128xf32, #tpu.memory_space<vmem>>, vector<16x128xf32>,
    } else {
    }
    %c0 = arith.constant 0 : index
    %c0_1 = arith.constant 0 : index
    %3 = vector.load %arg1[%c0, %c0_1] : memref<16x1xi32, #tpu.memory_space<vmem>>, vector<16x1xi32>
    %c8_i32 = arith.constant 8 : i32
    %4 = arith.muli %arg0, %c8_i32 : i32
    %c0_i32_2 = arith.constant 0 : i32
    %5 = arith.subi %c0_i32_2, %arg0 : i32
    %c8_i32_3 = arith.constant 8 : i32
    %6 = arith.muli %5, %c8_i32_3 : i32
    %c0_i32_4 = arith.constant 0 : i32
    %c8_i32_5 = arith.constant 8 : i32
    %7 = arith.addi %c0_i32_4, %c8_i32_5 : i32
    %c1_i32 = arith.constant 1 : i32
    scf.for %arg12 = %c0_i32_4 to %7 step %c1_i32  : i32 {
      %c7_i32 = arith.constant 7 : i32
      %8 = arith.subi %c7_i32, %arg12 : i32
      %9 = arith.addi %4, %arg12 : i32
      %10 = arith.addi %6, %8 : i32
      %c0_7 = arith.constant 0 : index
      %c0_8 = arith.constant 0 : index
      %11 = vector.load %arg8[%c0_7, %c0_8] : memref<16x128xf32, #tpu.memory_space<vmem>>, vector<16x128xf32>
      %c0_9 = arith.constant 0 : index
      %c0_10 = arith.constant 0 : index
      %12 = vector.load %arg9[%c0_9, %c0_10] : memref<16x128xf32, #tpu.memory_space<vmem>>, vector<16x128xf32>
      %13 = arith.truncf %11 : vector<16x128xf32> to vector<16x128xbf16>
      %c0_11 = arith.constant 0 : index
      %c0_12 = arith.constant 0 : index
      %14 = vector.load %arg4[%c0_11, %c0_12] : memref<128x512xbf16, #tpu.memory_space<vmem>>, vector<128x512xbf16>
      %cst = arith.constant dense<0.000000e+00> : vector<16x512xf32>
      %15 = tpu.matmul %13, %14, %cst {dimension_numbers = #tpu.dot_dimension_numbers<[1], [0], [0], [1], [0, 0, 1, 1], [], []>} : vector<16x128xbf16>, vector<128x512xbf16>, vector<16x512xf32> -> vector<16x512xf32>
      %16 = arith.index_cast %arg12 : i32 to index
      %c0_13 = arith.constant 0 : index
      %c0_14 = arith.constant 0 : index
      %17 = vector.load %arg2[%16, %c0_13, %c0_14] : memref<8x16x512xbf16, #tpu.memory_space<vmem>>, vector<1x16x512xbf16>
      %18 = vector.shape_cast %17 : vector<1x16x512xbf16> to vector<16x512xbf16>
      %19 = arith.extf %18 : vector<16x512xbf16> to vector<16x512xf32>
      %20 = arith.addf %19, %15 : vector<16x512xf32>
      %21 = vector.extract_strided_slice %20 {offsets = [0, 0], sizes = [16, 128], strides = [1, 1]} : vector<16x512xf32> to vector<16x128xf32>
      %22 = arith.negf %21 : vector<16x128xf32>
      %23 = math.exp %22 : vector<16x128xf32>
      %cst_15 = arith.constant 1.000000e+00 : f32
      %24 = vector.broadcast %cst_15 : f32 to vector<16x128xf32>
      %25 = arith.addf %24, %23 : vector<16x128xf32>
      %26 = arith.divf %24, %25 : vector<16x128xf32>
      %27 = vector.extract_strided_slice %20 {offsets = [0, 128], sizes = [16, 128], strides = [1, 1]} : vector<16x512xf32> to vector<16x128xf32>
      %28 = arith.negf %27 : vector<16x128xf32>
      %29 = math.exp %28 : vector<16x128xf32>
      %cst_16 = arith.constant 1.000000e+00 : f32
      %30 = vector.broadcast %cst_16 : f32 to vector<16x128xf32>
      %31 = arith.addf %30, %29 : vector<16x128xf32>
      %32 = arith.divf %30, %31 : vector<16x128xf32>
      %33 = vector.extract_strided_slice %20 {offsets = [0, 256], sizes = [16, 128], strides = [1, 1]} : vector<16x512xf32> to vector<16x128xf32>
      %34 = math.tanh %33 : vector<16x128xf32>
      %35 = vector.extract_strided_slice %20 {offsets = [0, 384], sizes = [16, 128], strides = [1, 1]} : vector<16x512xf32> to vector<16x128xf32>
      %36 = arith.negf %35 : vector<16x128xf32>
      %37 = math.exp %36 : vector<16x128xf32>
      %cst_17 = arith.constant 1.000000e+00 : f32
      %38 = vector.broadcast %cst_17 : f32 to vector<16x128xf32>
      %39 = arith.addf %38, %37 : vector<16x128xf32>
      %40 = arith.divf %38, %39 : vector<16x128xf32>
      %41 = arith.mulf %32, %12 : vector<16x128xf32>
      %42 = arith.mulf %26, %34 : vector<16x128xf32>
      %43 = arith.addf %41, %42 : vector<16x128xf32>
      %44 = math.tanh %43 : vector<16x128xf32>
      %45 = arith.mulf %40, %44 : vector<16x128xf32>
      %46 = vector.broadcast %9 : i32 to vector<16x1xi32>
      %47 = arith.cmpi slt, %46, %3 : vector<16x1xi32>
      %48 = vector.shape_cast %47 : vector<16x1xi1> to vector<16x1xi1>
      %49 = vector.broadcast %48 : vector<16x1xi1> to vector<16x128xi1>
      %50 = arith.select %49, %43, %12 : vector<16x128xi1>, vector<16x128xf32>
      %c0_18 = arith.constant 0 : index
      %c0_19 = arith.constant 0 : index
      %51 = vector.load %arg9[%c0_18, %c0_19] : memref<16x128xf32, #tpu.memory_space<vmem>>, vector<16x128xf32>
      tpu.vector_store %arg9[%c0_18, %c0_19], %50 {strides = array<i32>} : memref<16x128xf32, #tpu.memory_space<vmem>>, vector<16x128xf32>,
      %52 = vector.shape_cast %47 : vector<16x1xi1> to vector<16x1xi1>
      %53 = vector.broadcast %52 : vector<16x1xi1> to vector<16x128xi1>
      %54 = arith.select %53, %45, %11 : vector<16x128xi1>, vector<16x128xf32>
      %c0_20 = arith.constant 0 : index
      %c0_21 = arith.constant 0 : index
      %55 = vector.load %arg8[%c0_20, %c0_21] : memref<16x128xf32, #tpu.memory_space<vmem>>, vector<16x128xf32>
      tpu.vector_store %arg8[%c0_20, %c0_21], %54 {strides = array<i32>} : memref<16x128xf32, #tpu.memory_space<vmem>>, vector<16x128xf32>,
      %cst_22 = arith.constant 0.000000e+00 : f32
      %56 = vector.shape_cast %47 : vector<16x1xi1> to vector<16x1xi1>
      %57 = vector.broadcast %56 : vector<16x1xi1> to vector<16x128xi1>
      %58 = vector.broadcast %cst_22 : f32 to vector<16x128xf32>
      %59 = arith.select %57, %45, %58 : vector<16x128xi1>, vector<16x128xf32>
      %60 = arith.truncf %59 : vector<16x128xf32> to vector<16x128xbf16>
      %61 = arith.index_cast %arg12 : i32 to index
      %c0_23 = arith.constant 0 : index
      %c0_24 = arith.constant 0 : index
      %62 = vector.load %arg6[%61, %c0_23, %c0_24] : memref<8x16x128xbf16, #tpu.memory_space<vmem>>, vector<1x16x128xbf16>
      %63 = vector.shape_cast %62 : vector<1x16x128xbf16> to vector<16x128xbf16>
      %64 = vector.shape_cast %60 : vector<16x128xbf16> to vector<1x16x128xbf16>
      tpu.vector_store %arg6[%61, %c0_23, %c0_24], %64 {strides = array<i32>} : memref<8x16x128xbf16, #tpu.memory_space<vmem>>, vector<1x16x128xbf16>,
      %c0_25 = arith.constant 0 : index
      %c0_26 = arith.constant 0 : index
      %65 = vector.load %arg10[%c0_25, %c0_26] : memref<16x128xf32, #tpu.memory_space<vmem>>, vector<16x128xf32>
      %c0_27 = arith.constant 0 : index
      %c0_28 = arith.constant 0 : index
      %66 = vector.load %arg11[%c0_27, %c0_28] : memref<16x128xf32, #tpu.memory_space<vmem>>, vector<16x128xf32>
      %67 = arith.truncf %65 : vector<16x128xf32> to vector<16x128xbf16>
      %c0_29 = arith.constant 0 : index
      %c0_30 = arith.constant 0 : index
      %68 = vector.load %arg5[%c0_29, %c0_30] : memref<128x512xbf16, #tpu.memory_space<vmem>>, vector<128x512xbf16>
      %cst_31 = arith.constant dense<0.000000e+00> : vector<16x512xf32>
      %69 = tpu.matmul %67, %68, %cst_31 {dimension_numbers = #tpu.dot_dimension_numbers<[1], [0], [0], [1], [0, 0, 1, 1], [], []>} : vector<16x128xbf16>, vector<128x512xbf16>, vector<16x512xf32> -> vector<16x512xf32>
      %70 = arith.index_cast %8 : i32 to index
      %c0_32 = arith.constant 0 : index
      %c0_33 = arith.constant 0 : index
      %71 = vector.load %arg3[%70, %c0_32, %c0_33] : memref<8x16x512xbf16, #tpu.memory_space<vmem>>, vector<1x16x512xbf16>
      %72 = vector.shape_cast %71 : vector<1x16x512xbf16> to vector<16x512xbf16>
      %73 = arith.extf %72 : vector<16x512xbf16> to vector<16x512xf32>
      %74 = arith.addf %73, %69 : vector<16x512xf32>
      %75 = vector.extract_strided_slice %74 {offsets = [0, 0], sizes = [16, 128], strides = [1, 1]} : vector<16x512xf32> to vector<16x128xf32>
      %76 = arith.negf %75 : vector<16x128xf32>
      %77 = math.exp %76 : vector<16x128xf32>
      %cst_34 = arith.constant 1.000000e+00 : f32
      %78 = vector.broadcast %cst_34 : f32 to vector<16x128xf32>
      %79 = arith.addf %78, %77 : vector<16x128xf32>
      %80 = arith.divf %78, %79 : vector<16x128xf32>
      %81 = vector.extract_strided_slice %74 {offsets = [0, 128], sizes = [16, 128], strides = [1, 1]} : vector<16x512xf32> to vector<16x128xf32>
      %82 = arith.negf %81 : vector<16x128xf32>
      %83 = math.exp %82 : vector<16x128xf32>
      %cst_35 = arith.constant 1.000000e+00 : f32
      %84 = vector.broadcast %cst_35 : f32 to vector<16x128xf32>
      %85 = arith.addf %84, %83 : vector<16x128xf32>
      %86 = arith.divf %84, %85 : vector<16x128xf32>
      %87 = vector.extract_strided_slice %74 {offsets = [0, 256], sizes = [16, 128], strides = [1, 1]} : vector<16x512xf32> to vector<16x128xf32>
      %88 = math.tanh %87 : vector<16x128xf32>
      %89 = vector.extract_strided_slice %74 {offsets = [0, 384], sizes = [16, 128], strides = [1, 1]} : vector<16x512xf32> to vector<16x128xf32>
      %90 = arith.negf %89 : vector<16x128xf32>
      %91 = math.exp %90 : vector<16x128xf32>
      %cst_36 = arith.constant 1.000000e+00 : f32
      %92 = vector.broadcast %cst_36 : f32 to vector<16x128xf32>
      %93 = arith.addf %92, %91 : vector<16x128xf32>
      %94 = arith.divf %92, %93 : vector<16x128xf32>
      %95 = arith.mulf %86, %66 : vector<16x128xf32>
      %96 = arith.mulf %80, %88 : vector<16x128xf32>
      %97 = arith.addf %95, %96 : vector<16x128xf32>
      %98 = math.tanh %97 : vector<16x128xf32>
      %99 = arith.mulf %94, %98 : vector<16x128xf32>
      %100 = vector.broadcast %10 : i32 to vector<16x1xi32>
      %101 = arith.cmpi slt, %100, %3 : vector<16x1xi32>
      %102 = vector.shape_cast %101 : vector<16x1xi1> to vector<16x1xi1>
      %103 = vector.broadcast %102 : vector<16x1xi1> to vector<16x128xi1>
      %104 = arith.select %103, %97, %66 : vector<16x128xi1>, vector<16x128xf32>
      %c0_37 = arith.constant 0 : index
      %c0_38 = arith.constant 0 : index
      %105 = vector.load %arg11[%c0_37, %c0_38] : memref<16x128xf32, #tpu.memory_space<vmem>>, vector<16x128xf32>
      tpu.vector_store %arg11[%c0_37, %c0_38], %104 {strides = array<i32>} : memref<16x128xf32, #tpu.memory_space<vmem>>, vector<16x128xf32>,
      %106 = vector.shape_cast %101 : vector<16x1xi1> to vector<16x1xi1>
      %107 = vector.broadcast %106 : vector<16x1xi1> to vector<16x128xi1>
      %108 = arith.select %107, %99, %65 : vector<16x128xi1>, vector<16x128xf32>
      %c0_39 = arith.constant 0 : index
      %c0_40 = arith.constant 0 : index
      %109 = vector.load %arg10[%c0_39, %c0_40] : memref<16x128xf32, #tpu.memory_space<vmem>>, vector<16x128xf32>
      tpu.vector_store %arg10[%c0_39, %c0_40], %108 {strides = array<i32>} : memref<16x128xf32, #tpu.memory_space<vmem>>, vector<16x128xf32>,
      %cst_41 = arith.constant 0.000000e+00 : f32
      %110 = vector.shape_cast %101 : vector<16x1xi1> to vector<16x1xi1>
      %111 = vector.broadcast %110 : vector<16x1xi1> to vector<16x128xi1>
      %112 = vector.broadcast %cst_41 : f32 to vector<16x128xf32>
      %113 = arith.select %111, %99, %112 : vector<16x128xi1>, vector<16x128xf32>
      %114 = arith.truncf %113 : vector<16x128xf32> to vector<16x128xbf16>
      %115 = arith.index_cast %8 : i32 to index
      %c0_42 = arith.constant 0 : index
      %c0_43 = arith.constant 0 : index
      %116 = vector.load %arg7[%115, %c0_42, %c0_43] : memref<8x16x128xbf16, #tpu.memory_space<vmem>>, vector<1x16x128xbf16>
      %117 = vector.shape_cast %116 : vector<1x16x128xbf16> to vector<16x128xbf16>
      %118 = vector.shape_cast %114 : vector<16x128xbf16> to vector<1x16x128xbf16>
      tpu.vector_store %arg7[%115, %c0_42, %c0_43], %118 {strides = array<i32>} : memref<8x16x128xbf16, #tpu.memory_space<vmem>>, vector<1x16x128xbf16>,
    }
    %c8_i32_6 = arith.constant 8 : i32
    return
  }
  func.func @transform_0(%arg0: i32) -> (i32, i32) {
    %c0_i32 = arith.constant 0 : i32
    %c0_i32_0 = arith.constant 0 : i32
    %c0_i32_1 = arith.constant 0 : i32
    return %c0_i32, %c0_i32_0 : i32, i32
  }
  func.func @transform_1(%arg0: i32) -> (i32, i32, i32) {
    %c0_i32 = arith.constant 0 : i32
    %c0_i32_0 = arith.constant 0 : i32
    %c0_i32_1 = arith.constant 0 : i32
    return %arg0, %c0_i32, %c0_i32_0 : i32, i32, i32
  }
  func.func @transform_2(%arg0: i32) -> (i32, i32, i32) {
    %c0_i32 = arith.constant 0 : i32
    %0 = arith.subi %c0_i32, %arg0 : i32
    %c0_i32_0 = arith.constant 0 : i32
    %c1_i32 = arith.constant 1 : i32
    %c0_i32_1 = arith.constant 0 : i32
    return %0, %c0_i32_0, %c1_i32 : i32, i32, i32
  }
  func.func @transform_3(%arg0: i32) -> (i32, i32) {
    %c0_i32 = arith.constant 0 : i32
    %c0_i32_0 = arith.constant 0 : i32
    %c0_i32_1 = arith.constant 0 : i32
    return %c0_i32, %c0_i32_0 : i32, i32
  }
  func.func @transform_4(%arg0: i32) -> (i32, i32) {
    %c0_i32 = arith.constant 0 : i32
    %c0_i32_0 = arith.constant 0 : i32
    %c0_i32_1 = arith.constant 0 : i32
    return %c0_i32, %c0_i32_0 : i32, i32
  }
  func.func @transform_5(%arg0: i32) -> (i32, i32, i32) {
    %c0_i32 = arith.constant 0 : i32
    %c0_i32_0 = arith.constant 0 : i32
    %c0_i32_1 = arith.constant 0 : i32
    return %arg0, %c0_i32, %c0_i32_0 : i32, i32, i32
  }
  func.func @transform_6(%arg0: i32) -> (i32, i32, i32) {
    %c0_i32 = arith.constant 0 : i32
    %0 = arith.subi %c0_i32, %arg0 : i32
    %c0_i32_0 = arith.constant 0 : i32
    %c0_i32_1 = arith.constant 0 : i32
    %c0_i32_2 = arith.constant 0 : i32
    return %0, %c0_i32_0, %c0_i32_1 : i32, i32, i32
  }
}

</mosaic_0001>

<bundles_post_ra>
// kernel: _forward_impl.9
= control target key start
LH: loop header
LB: loop body
LE: loop exit
PB: predicated region body
PF: predicated region fallthrough
CT: control target
= control target key end

     0   :  { %s870_s3 = inlined_call_operand.vmem [shape: bf16[128,128], index: 3, kind: input, shape index: {}]   ;;  %s871_s2 = inlined_call_operand.vmem [shape: bf16[128,128], index: 2, kind: input, shape index: {}]   ;;  %s872_s1 = inlined_call_operand.vmem [shape: bf16[128,128], index: 1, kind: input, shape index: {}]   ;;  %s873_s0 = inlined_call_operand.vmem [shape: bf16[128,128], index: 0, kind: input, shape index: {}]   ;;  %s874_s4 = inlined_call_operand.vmem [shape: f32[1,128], index: 4, kind: input, shape index: {}]   ;;  %s875_s5 = inlined_call_operand.vmem [shape: f32[128,128], index: 5, kind: output, shape index: {}]  }
   0x1   :  { %v643_v0 = vld [vmem:[%s870_s3 + $0x38] sm:$0xff]   ;;  %v645_v2 = vld [vmem:[%s870_s3 + $0x30] sm:$0xff]   ;;  %v647_v4 = vld [vmem:[%s870_s3 + $0x28] sm:$0xff]  }
   0x2   :  { %v644_v1 = vld [vmem:[%s871_s2 + $0x38] sm:$0xff]   ;;  %579 = vmatprep.subr.bf16.mxu0 %v643_v0  ;;  %v646_v3 = vld [vmem:[%s871_s2 + $0x30] sm:$0xff]   ;;  %v648_v5 = vld [vmem:[%s871_s2 + $0x28] sm:$0xff]  }
   0x3   :  { %611 = vmatprep.subr.bf16.mxu1 %v644_v1  ;;  %580 = vmatpush3.bf16.msra.mxu0 %v643_v0  ;;  %v649_v6 = vld [vmem:[%s870_s3 + $0x20] sm:$0xff]   ;;  %v651_v8 = vld [vmem:[%s870_s3 + $0x18] sm:$0xff]   ;;  %v653_v10 = vld [vmem:[%s870_s3 + $0x10] sm:$0xff]  }
   0x4   :  { %612 = vmatpush3.bf16.msra.mxu1 %v644_v1  ;;  %581 = vmatprep.subr.bf16.mxu0 %v645_v2  ;;  %v650_v7 = vld [vmem:[%s871_s2 + $0x20] sm:$0xff]   ;;  %v652_v9 = vld [vmem:[%s871_s2 + $0x18] sm:$0xff]   ;;  %v654_v11 = vld [vmem:[%s871_s2 + $0x10] sm:$0xff]  }
   0x5   :  { %613 = vmatprep.subr.bf16.mxu1 %v646_v3  ;;  %v659_v12 = vld [vmem:[%s872_s1] sm:$0xff]   ;;  %v655_v14 = vld [vmem:[%s870_s3 + $0x8] sm:$0xff]   ;;  %v663_v20 = vld [vmem:[%s872_s1 + $0x10] sm:$0xff]  }
   0x6   :  { %v660_v13 = vld [vmem:[%s873_s0] sm:$0xff]   ;;  %595 = vmatprep.mubr.bf16.mxu0 %v659_v12  ;;  %v656_v15 = vld [vmem:[%s871_s2 + $0x8] sm:$0xff]   ;;  %v664_v21 = vld [vmem:[%s873_s0 + $0x10] sm:$0xff]  }
   0x7   :  { %582 = vmatpush3.bf16.msra.mxu0 %v645_v2  ;;  %627 = vmatprep.mubr.bf16.mxu1 %v660_v13  ;;  %v657_v16 = vld [vmem:[%s870_s3] sm:$0xff]   ;;  %v661_v18 = vld [vmem:[%s872_s1 + $0x8] sm:$0xff]   ;;  %v665_v22 = vld [vmem:[%s872_s1 + $0x18] sm:$0xff]  }
   0x8   :  { %614 = vmatpush3.bf16.msra.mxu1 %v646_v3  ;;  %583 = vmatprep.subr.bf16.mxu0 %v647_v4  ;;  %v658_v17 = vld [vmem:[%s871_s2] sm:$0xff]   ;;  %v662_v19 = vld [vmem:[%s873_s0 + $0x8] sm:$0xff]   ;;  %v666_v23 = vld [vmem:[%s873_s0 + $0x18] sm:$0xff]  }
   0x9   :  { %615 = vmatprep.subr.bf16.mxu1 %v648_v5  ;;  %v667_v24 = vld [vmem:[%s872_s1 + $0x20] sm:$0xff]   ;;  %v669_v26 = vld [vmem:[%s872_s1 + $0x28] sm:$0xff]   ;;  %v671_v28 = vld [vmem:[%s872_s1 + $0x30] sm:$0xff]  }
   0xa   :  { %v668_v25 = vld [vmem:[%s873_s0 + $0x20] sm:$0xff]   ;;  %v670_v27 = vld [vmem:[%s873_s0 + $0x28] sm:$0xff]   ;;  %v672_v29 = vld [vmem:[%s873_s0 + $0x30] sm:$0xff]  }
   0xb   :  { %584 = vmatpush3.bf16.msra.mxu0 %v647_v4  ;;  %v673_v30 = vld [vmem:[%s872_s1 + $0x38] sm:$0xff]   ;;  %v804_v34 = vld [vmem:[%s874_s4] ss:$0 sm:$0xff] }
   0xc   :  { %616 = vmatpush3.bf16.msra.mxu1 %v648_v5  ;;  %585 = vmatprep.subr.bf16.mxu0 %v649_v6  ;;  %v674_v31 = vld [vmem:[%s873_s0 + $0x38] sm:$0xff]  }
   0xd   :  { %617 = vmatprep.subr.bf16.mxu1 %v650_v7 }
   0xf   :  { %586 = vmatpush3.bf16.msra.mxu0 %v649_v6 }
  0x10   :  { %618 = vmatpush3.bf16.msra.mxu1 %v650_v7  ;;  %587 = vmatprep.subr.bf16.mxu0 %v651_v8 }
  0x11   :  { %619 = vmatprep.subr.bf16.mxu1 %v652_v9 }
  0x13   :  { %588 = vmatpush3.bf16.msra.mxu0 %v651_v8 }
  0x14   :  { %620 = vmatpush3.bf16.msra.mxu1 %v652_v9  ;;  %589 = vmatprep.subr.bf16.mxu0 %v653_v10 }
  0x15   :  { %621 = vmatprep.subr.bf16.mxu1 %v654_v11 }
  0x17   :  { %590 = vmatpush3.bf16.msra.mxu0 %v653_v10 }
  0x18   :  { %622 = vmatpush3.bf16.msra.mxu1 %v654_v11  ;;  %591 = vmatprep.subr.bf16.mxu0 %v655_v14 }
  0x19   :  { %623 = vmatprep.subr.bf16.mxu1 %v656_v15 }
  0x1b   :  { %592 = vmatpush3.bf16.msra.mxu0 %v655_v14 }
  0x1c   :  { %624 = vmatpush3.bf16.msra.mxu1 %v656_v15  ;;  %593 = vmatprep.subr.bf16.mxu0 %v657_v16 }
  0x1d   :  { %625 = vmatprep.subr.bf16.mxu1 %v658_v17 }
  0x1f   :  { %594 = vmatpush3.bf16.msra.mxu0 %v657_v16 }
  0x20   :  { %626 = vmatpush3.bf16.msra.mxu1 %v658_v17 }
  0x22   :  { %596 = vmatmul.mubr.bf16.vlgmr.msra.gmra.mxu0 %v661_v18 }
  0x23   :  { %628 = vmatmul.mubr.bf16.vlgmr.msra.gmra.mxu1 %v662_v19  ;;  %599 = vmatprep.mubr.bf16.mxu0 %v663_v20 }
  0x24   :  { %631 = vmatprep.mubr.bf16.mxu1 %v664_v21 }
  0x2a   :  { %600 = vmatmul.mubr.bf16.gmra.mxu0 %v665_v22 }
  0x2b   :  { %632 = vmatmul.mubr.bf16.gmra.mxu1 %v666_v23  ;;  %603 = vmatprep.mubr.bf16.mxu0 %v667_v24 }
  0x2c   :  { %635 = vmatprep.mubr.bf16.mxu1 %v668_v25 }
  0x32   :  { %604 = vmatmul.mubr.bf16.gmra.mxu0 %v669_v26 }
  0x33   :  { %636 = vmatmul.mubr.bf16.gmra.mxu1 %v670_v27  ;;  %607 = vmatprep.mubr.bf16.mxu0 %v671_v28 }
  0x34   :  { %639 = vmatprep.mubr.bf16.mxu1 %v672_v29 }
  0x3a   :  { %608 = vmatmul.mubr.bf16.gmra.mxu0 %v673_v30 }
  0x3b   :  { %640 = vmatmul.mubr.bf16.gmra.mxu1 %v674_v31 }
  0xe2   :  { %v597_v32 = vpop.f32.mrf.mxu0 }
  0xe3   :  { %v629_v33 = vpop.f32.mrf.mxu1 }
  0xe4   :  { %v417_v35 = vadd.f32 %v629_v33, %v597_v32  ;;  %v215_v36 = vpop.f32.mrf.mxu0 }
  0xe5   :  { %v408_v37 = vpop.f32.mrf.mxu1 }
  0xe6   :  { %v480_v38 = vadd.f32 %v804_v34, %v417_v35  ;;  %v409_v39 = vadd.f32 %v408_v37, %v215_v36  ;;  %v598_v40 = vpop.f32.mrf.mxu0 }
  0xe7   :  { %v630_v41 = vpop.f32.mrf.mxu1 }
  0xe8   :  { %496 = vst [vmem:[%s875_s5 + $0x10] sm:$0xff] %v480_v38  ;;  %v478_v42 = vadd.f32 %v804_v34, %v409_v39  ;;  %v420_v43 = vadd.f32 %v630_v41, %v598_v40  ;;  %v218_v44 = vpop.f32.mrf.mxu0 }
  0xe9   :  { %v411_v45 = vpop.f32.mrf.mxu1 }
  0xea   :  { %494 = vst [vmem:[%s875_s5] sm:$0xff] %v478_v42  ;;  %v481_v46 = vadd.f32 %v804_v34, %v420_v43  ;;  %v412_v47 = vadd.f32 %v411_v45, %v218_v44  ;;  %v601_v48 = vpop.f32.mrf.mxu0 }
  0xeb   :  { %v633_v49 = vpop.f32.mrf.mxu1 }
  0xec   :  { %497 = vst [vmem:[%s875_s5 + $0x18] sm:$0xff] %v481_v46  ;;  %v479_v50 = vadd.f32 %v804_v34, %v412_v47  ;;  %v433_v51 = vadd.f32 %v633_v49, %v601_v48  ;;  %v231_v52 = vpop.f32.mrf.mxu0 }
  0xed   :  { %v424_v53 = vpop.f32.mrf.mxu1 }
  0xee   :  { %495 = vst [vmem:[%s875_s5 + $0x8] sm:$0xff] %v479_v50  ;;  %v484_v54 = vadd.f32 %v804_v34, %v433_v51  ;;  %v425_v55 = vadd.f32 %v424_v53, %v231_v52  ;;  %v602_v56 = vpop.f32.mrf.mxu0 }
  0xef   :  { %v634_v57 = vpop.f32.mrf.mxu1 }
  0xf0   :  { %500 = vst [vmem:[%s875_s5 + $0x30] sm:$0xff] %v484_v54  ;;  %v482_v58 = vadd.f32 %v804_v34, %v425_v55  ;;  %v436_v59 = vadd.f32 %v634_v57, %v602_v56  ;;  %v234_v60 = vpop.f32.mrf.mxu0 }
  0xf1   :  { %v427_v61 = vpop.f32.mrf.mxu1 }
  0xf2   :  { %498 = vst [vmem:[%s875_s5 + $0x20] sm:$0xff] %v482_v58  ;;  %v485_v62 = vadd.f32 %v804_v34, %v436_v59  ;;  %v428_v63 = vadd.f32 %v427_v61, %v234_v60  ;;  %v605_v0 = vpop.f32.mrf.mxu0 }
  0xf3   :  { %v637_v1 = vpop.f32.mrf.mxu1 }
  0xf4   :  { %501 = vst [vmem:[%s875_s5 + $0x38] sm:$0xff] %v485_v62  ;;  %v483_v2 = vadd.f32 %v804_v34, %v428_v63  ;;  %v449_v3 = vadd.f32 %v637_v1, %v605_v0  ;;  %v247_v4 = vpop.f32.mrf.mxu0 }
  0xf5   :  { %v440_v5 = vpop.f32.mrf.mxu1 }
  0xf6   :  { %499 = vst [vmem:[%s875_s5 + $0x28] sm:$0xff] %v483_v2  ;;  %v488_v6 = vadd.f32 %v804_v34, %v449_v3  ;;  %v441_v7 = vadd.f32 %v440_v5, %v247_v4  ;;  %v606_v8 = vpop.f32.mrf.mxu0 }
  0xf7   :  { %v638_v9 = vpop.f32.mrf.mxu1 }
  0xf8   :  { %504 = vst [vmem:[%s875_s5 + $0x50] sm:$0xff] %v488_v6  ;;  %v486_v10 = vadd.f32 %v804_v34, %v441_v7  ;;  %v452_v11 = vadd.f32 %v638_v9, %v606_v8  ;;  %v250_v12 = vpop.f32.mrf.mxu0 }
  0xf9   :  { %v443_v13 = vpop.f32.mrf.mxu1 }
  0xfa   :  { %502 = vst [vmem:[%s875_s5 + $0x40] sm:$0xff] %v486_v10  ;;  %v489_v14 = vadd.f32 %v804_v34, %v452_v11  ;;  %v444_v15 = vadd.f32 %v443_v13, %v250_v12  ;;  %v609_v16 = vpop.f32.mrf.mxu0 }
  0xfb   :  { %v641_v17 = vpop.f32.mrf.mxu1 }
  0xfc   :  { %505 = vst [vmem:[%s875_s5 + $0x58] sm:$0xff] %v489_v14  ;;  %v487_v18 = vadd.f32 %v804_v34, %v444_v15  ;;  %v465_v19 = vadd.f32 %v641_v17, %v609_v16  ;;  %v263_v20 = vpop.f32.mrf.mxu0 }
  0xfd   :  { %v456_v21 = vpop.f32.mrf.mxu1 }
  0xfe   :  { %503 = vst [vmem:[%s875_s5 + $0x48] sm:$0xff] %v487_v18  ;;  %v492_v22 = vadd.f32 %v804_v34, %v465_v19  ;;  %v457_v23 = vadd.f32 %v456_v21, %v263_v20  ;;  %v610_v24 = vpop.f32.mrf.mxu0 }
  0xff   :  { %v642_v25 = vpop.f32.mrf.mxu1 }
 0x100   :  { %508 = vst [vmem:[%s875_s5 + $0x70] sm:$0xff] %v492_v22  ;;  %v490_v26 = vadd.f32 %v804_v34, %v457_v23  ;;  %v468_v27 = vadd.f32 %v642_v25, %v610_v24  ;;  %v266_v28 = vpop.f32.mrf.mxu0 }
 0x101   :  { %v459_v29 = vpop.f32.mrf.mxu1 }
 0x102   :  { %506 = vst [vmem:[%s875_s5 + $0x60] sm:$0xff] %v490_v26  ;;  %v493_v30 = vadd.f32 %v804_v34, %v468_v27  ;;  %v460_v31 = vadd.f32 %v459_v29, %v266_v28 }
 0x104   :  { %509 = vst [vmem:[%s875_s5 + $0x78] sm:$0xff] %v493_v30  ;;  %v491_v32 = vadd.f32 %v804_v34, %v460_v31 }
 0x106   :  { %507 = vst [vmem:[%s875_s5 + $0x68] sm:$0xff] %v491_v32 }

// kernel: _forward_impl.5
= control target key start
LH: loop header
LB: loop body
LE: loop exit
PB: predicated region body
PF: predicated region fallthrough
CT: control target
= control target key end

     0   :  { %v1331_v3 = vmov 0   ;;  %vm209_vm0 = vcmask 261120   ;;  %v49_v41 = vlaneseq  ;;  %s1847_s1 = inlined_call_operand.vmem [shape: bf16[32,1024], index: 1, kind: input, shape index: {}]   ;;  %s1848_s0 = inlined_call_operand.vmem [shape: bf16[128,32], index: 0, kind: input, shape index: {}]   ;;  %s1849_s2 = inlined_call_operand.vmem [shape: f32[1,1024], index: 2, kind: input, shape index: {}]   ;;  %s1850_s3 = inlined_call_operand.vmem [shape: bf16[128,1024], index: 3, kind: output, shape index: {}]  }
   0x1   :  { %v39_v0 = vld [vmem:[%s1847_s1 + $0x40] sm:$0xff]  ;;  %v40_v2 = vld [vmem:[%s1847_s1 + $0x48] sm:$0xff]  ;;  %266 = vmatprep.mubr.bf16.mxu0 %v1331_v3  ;;  %379 = vmatprep.mubr.bf16.mxu1 %v1331_v3  ;;  %v41_v15 = vld [vmem:[%s1847_s1 + $0x50] sm:$0xff] }
   0x2   :  { %v43_v1 = vld [vmem:[%s1847_s1 + $0x60] sm:$0xff]  ;;  %v44_v5 = vld [vmem:[%s1847_s1 + $0x68] sm:$0xff]  ;;  %v45_v17 = vld [vmem:[%s1847_s1 + $0x70] sm:$0xff]  ;;  %v1488_v42 = vshrl.u32 %v49_v41, 7 }
   0x3   :  { %v1155_v4 = vcombine.high %v39_v0, %v43_v1  ;;  %v1154_v6 = vcombine.low %v39_v0, %v43_v1  ;;  %v31_v7 = vld [vmem:[%s1847_s1] sm:$0xff]  ;;  %v1157_v9 = vcombine.high %v40_v2, %v44_v5  ;;  %v1156_v10 = vcombine.low %v40_v2, %v44_v5  ;;  %v32_v12 = vld [vmem:[%s1847_s1 + $0x8] sm:$0xff]  ;;  %v42_v18 = vld [vmem:[%s1847_s1 + $0x58] sm:$0xff] }
   0x4   :  { %v35_v8 = vld [vmem:[%s1847_s1 + $0x20] sm:$0xff]  ;;  %v36_v13 = vld [vmem:[%s1847_s1 + $0x28] sm:$0xff]  ;;  %v46_v19 = vld [vmem:[%s1847_s1 + $0x78] sm:$0xff]  ;;  %v1159_v21 = vcombine.high %v41_v15, %v45_v17  ;;  %v1158_v24 = vcombine.low %v41_v15, %v45_v17  ;;  %v51_v43 = vsub.s32 0, %v1488_v42  ;;  %v55_v44 = vsub.s32 1, %v1488_v42 }
   0x5   :  { %v1147_v11 = vcombine.high %v31_v7, %v35_v8  ;;  %246 = vmatprep.subr.bf16.mxu0 %v1155_v4  ;;  %v1149_v14 = vcombine.high %v32_v12, %v36_v13  ;;  %359 = vmatprep.subr.bf16.mxu1 %v1157_v9  ;;  %v1146_v16 = vcombine.low %v31_v7, %v35_v8  ;;  %v1323_v23 = vld [vmem:[%s1848_s0] sm:$0xff]   ;;  %v33_v26 = vld [vmem:[%s1847_s1 + $0x10] sm:$0xff]  ;;  %v34_v28 = vld [vmem:[%s1847_s1 + $0x18] sm:$0xff]  ;;  %v59_v46 = vsub.s32 2, %v1488_v42 }
   0x6   :  { %247 = vmatpush1.bf16.msra.mxu0 %v1154_v6  ;;  %360 = vmatpush1.bf16.msra.mxu1 %v1156_v10  ;;  %v1148_v20 = vcombine.low %v32_v12, %v36_v13  ;;  %v1161_v22 = vcombine.high %v42_v18, %v46_v19  ;;  %v1160_v25 = vcombine.low %v42_v18, %v46_v19  ;;  %v37_v27 = vld [vmem:[%s1847_s1 + $0x30] sm:$0xff]  ;;  %v38_v30 = vld [vmem:[%s1847_s1 + $0x38] sm:$0xff]  ;;  %v1324_v34 = vld [vmem:[%s1848_s0 + $0x8] sm:$0xff]   ;;  %v63_v47 = vsub.s32 3, %v1488_v42 }
   0x7   :  { %248 = vmatprep.subr.bf16.mxu0 %v1147_v11  ;;  %361 = vmatprep.subr.bf16.mxu1 %v1149_v14  ;;  %v1151_v29 = vcombine.high %v33_v26, %v37_v27  ;;  %v1153_v31 = vcombine.high %v34_v28, %v38_v30  ;;  %v1150_v32 = vcombine.low %v33_v26, %v37_v27  ;;  %v1325_v35 = vld [vmem:[%s1848_s0 + $0x10] sm:$0xff]   ;;  %v1326_v36 = vld [vmem:[%s1848_s0 + $0x18] sm:$0xff]   ;;  %v1327_v37 = vld [vmem:[%s1848_s0 + $0x20] sm:$0xff]  }
   0x8   :  { %v1152_v33 = vcombine.low %v34_v28, %v38_v30  ;;  %v1328_v38 = vld [vmem:[%s1848_s0 + $0x28] sm:$0xff]   ;;  %v1329_v39 = vld [vmem:[%s1848_s0 + $0x30] sm:$0xff]   ;;  %v1330_v40 = vld [vmem:[%s1848_s0 + $0x38] sm:$0xff]  }
   0x9   :  { %v1495_v45 = vld [vmem:[%s1849_s2] sm:$0xff] }
   0xa   :  { %249 = vmatpush1.bf16.msra.mxu0 %v1146_v16  ;;  %362 = vmatpush1.bf16.msra.mxu1 %v1148_v20  ;;  %v1500_v48 = vrot.slane %v1495_v45, %v51_v43  ;;  %v1503_v49 = vrot.slane %v1495_v45, %v55_v44  ;;  %v1506_v51 = vrot.slane %v1495_v45, %v59_v46 }
   0xb   :  { %472 = vmatprep.subr.bf16.mxu0 %v1159_v21  ;;  %585 = vmatprep.subr.bf16.mxu1 %v1161_v22  ;;  %v1509_v52 = vrot.slane %v1495_v45, %v63_v47 }
   0xd   :  { %1162 = vmatmul.mubr.msk.bf16.vlgmr.msra.gmra.mxu0 %vm209_vm0, %v1323_v23  ;;  %1170 = vmatmul.mubr.msk.bf16.vlgmr.msra.gmra.mxu1 %vm209_vm0, %v1323_v23 }
   0xe   :  { %473 = vmatpush1.bf16.msra.mxu0 %v1158_v24  ;;  %586 = vmatpush1.bf16.msra.mxu1 %v1160_v25 }
   0xf   :  { %276 = vmatprep.mubr.bf16.mxu0 %v1331_v3  ;;  %389 = vmatprep.mubr.bf16.mxu1 %v1331_v3 }
  0x10   :  { %474 = vmatprep.subr.bf16.mxu0 %v1151_v29  ;;  %587 = vmatprep.subr.bf16.mxu1 %v1153_v31 }
  0x12   :  { %475 = vmatpush1.bf16.msra.mxu0 %v1150_v32  ;;  %588 = vmatpush1.bf16.msra.mxu1 %v1152_v33 }
  0x15   :  { %1163 = vmatmul.mubr.msk.bf16.gmra.mxu0 %vm209_vm0, %v1324_v34  ;;  %1171 = vmatmul.mubr.msk.bf16.gmra.mxu1 %vm209_vm0, %v1324_v34 }
  0x16   :  { %286 = vmatprep.mubr.bf16.mxu0 %v1331_v3  ;;  %399 = vmatprep.mubr.bf16.mxu1 %v1331_v3 }
  0x1d   :  { %1164 = vmatmul.mubr.msk.bf16.gmra.mxu0 %vm209_vm0, %v1325_v35  ;;  %1172 = vmatmul.mubr.msk.bf16.gmra.mxu1 %vm209_vm0, %v1325_v35 }
  0x1e   :  { %296 = vmatprep.mubr.bf16.mxu0 %v1331_v3  ;;  %409 = vmatprep.mubr.bf16.mxu1 %v1331_v3 }
  0x25   :  { %1165 = vmatmul.mubr.msk.bf16.gmra.mxu0 %vm209_vm0, %v1326_v36  ;;  %1173 = vmatmul.mubr.msk.bf16.gmra.mxu1 %vm209_vm0, %v1326_v36 }
  0x26   :  { %306 = vmatprep.mubr.bf16.mxu0 %v1331_v3  ;;  %419 = vmatprep.mubr.bf16.mxu1 %v1331_v3 }
  0x2d   :  { %1166 = vmatmul.mubr.msk.bf16.gmra.mxu0 %vm209_vm0, %v1327_v37  ;;  %1174 = vmatmul.mubr.msk.bf16.gmra.mxu1 %vm209_vm0, %v1327_v37 }
  0x2e   :  { %316 = vmatprep.mubr.bf16.mxu0 %v1331_v3  ;;  %429 = vmatprep.mubr.bf16.mxu1 %v1331_v3 }
  0x35   :  { %1167 = vmatmul.mubr.msk.bf16.gmra.mxu0 %vm209_vm0, %v1328_v38  ;;  %1175 = vmatmul.mubr.msk.bf16.gmra.mxu1 %vm209_vm0, %v1328_v38 }
  0x36   :  { %326 = vmatprep.mubr.bf16.mxu0 %v1331_v3  ;;  %439 = vmatprep.mubr.bf16.mxu1 %v1331_v3 }
  0x3d   :  { %1168 = vmatmul.mubr.msk.bf16.gmra.mxu0 %vm209_vm0, %v1329_v39  ;;  %1176 = vmatmul.mubr.msk.bf16.gmra.mxu1 %vm209_vm0, %v1329_v39 }
  0x3e   :  { %336 = vmatprep.mubr.bf16.mxu0 %v1331_v3  ;;  %449 = vmatprep.mubr.bf16.mxu1 %v1331_v3 }
  0x45   :  { %1169 = vmatmul.mubr.msk.bf16.gmra.mxu0 %vm209_vm0, %v1330_v40  ;;  %1177 = vmatmul.mubr.msk.bf16.gmra.mxu1 %vm209_vm0, %v1330_v40 }
  0x46   :  { %492 = vmatprep.mubr.bf16.mxu0 %v1331_v3  ;;  %605 = vmatprep.mubr.bf16.mxu1 %v1331_v3 }
  0x4d   :  { %1178 = vmatmul.mubr.msk.bf16.vlgmr.msra.gmra.mxu0 %vm209_vm0, %v1323_v23  ;;  %1186 = vmatmul.mubr.msk.bf16.vlgmr.msra.gmra.mxu1 %vm209_vm0, %v1323_v23 }
  0x4e   :  { %502 = vmatprep.mubr.bf16.mxu0 %v1331_v3  ;;  %615 = vmatprep.mubr.bf16.mxu1 %v1331_v3 }
  0x55   :  { %1179 = vmatmul.mubr.msk.bf16.gmra.mxu0 %vm209_vm0, %v1324_v34  ;;  %1187 = vmatmul.mubr.msk.bf16.gmra.mxu1 %vm209_vm0, %v1324_v34 }
  0x56   :  { %512 = vmatprep.mubr.bf16.mxu0 %v1331_v3  ;;  %625 = vmatprep.mubr.bf16.mxu1 %v1331_v3 }
  0x5d   :  { %1180 = vmatmul.mubr.msk.bf16.gmra.mxu0 %vm209_vm0, %v1325_v35  ;;  %1188 = vmatmul.mubr.msk.bf16.gmra.mxu1 %vm209_vm0, %v1325_v35 }
  0x5e   :  { %522 = vmatprep.mubr.bf16.mxu0 %v1331_v3  ;;  %635 = vmatprep.mubr.bf16.mxu1 %v1331_v3 }
  0x65   :  { %1181 = vmatmul.mubr.msk.bf16.gmra.mxu0 %vm209_vm0, %v1326_v36  ;;  %1189 = vmatmul.mubr.msk.bf16.gmra.mxu1 %vm209_vm0, %v1326_v36 }
  0x66   :  { %532 = vmatprep.mubr.bf16.mxu0 %v1331_v3  ;;  %645 = vmatprep.mubr.bf16.mxu1 %v1331_v3 }
  0x6d   :  { %1182 = vmatmul.mubr.msk.bf16.gmra.mxu0 %vm209_vm0, %v1327_v37  ;;  %1190 = vmatmul.mubr.msk.bf16.gmra.mxu1 %vm209_vm0, %v1327_v37 }
  0x6e   :  { %542 = vmatprep.mubr.bf16.mxu0 %v1331_v3  ;;  %655 = vmatprep.mubr.bf16.mxu1 %v1331_v3 }
  0x75   :  { %1183 = vmatmul.mubr.msk.bf16.gmra.mxu0 %vm209_vm0, %v1328_v38  ;;  %1191 = vmatmul.mubr.msk.bf16.gmra.mxu1 %vm209_vm0, %v1328_v38 }
  0x76   :  { %552 = vmatprep.mubr.bf16.mxu0 %v1331_v3  ;;  %665 = vmatprep.mubr.bf16.mxu1 %v1331_v3 }
  0x7d   :  { %1184 = vmatmul.mubr.msk.bf16.gmra.mxu0 %vm209_vm0, %v1329_v39  ;;  %1192 = vmatmul.mubr.msk.bf16.gmra.mxu1 %vm209_vm0, %v1329_v39 }
  0x7e   :  { %562 = vmatprep.mubr.bf16.mxu0 %v1331_v3  ;;  %675 = vmatprep.mubr.bf16.mxu1 %v1331_v3 }
  0x85   :  { %1185 = vmatmul.mubr.msk.bf16.gmra.mxu0 %vm209_vm0, %v1330_v40  ;;  %1193 = vmatmul.mubr.msk.bf16.gmra.mxu1 %vm209_vm0, %v1330_v40 }
  0xcd   :  { %v268_v50 = vpop.f32.mrf.mxu0  ;;  %v381_v53 = vpop.f32.mrf.mxu1 }
  0xce   :  { %v269_v55 = vadd.f32 %v268_v50, %v1500_v48  ;;  %v382_v58 = vadd.f32 %v381_v53, %v1506_v51 }
  0xcf   :  { %v270_v54 = vpop.f32.mrf.mxu0  ;;  %v383_v57 = vpop.f32.mrf.mxu1 }
  0xd0   :  { %v271_v56 = vadd.f32 %v270_v54, %v1503_v49  ;;  %v384_v59 = vadd.f32 %v383_v57, %v1509_v52 }
  0xd1   :  { %v272_v60 = vpop.f32.mrf.mxu0  ;;  %v385_v62 = vpop.f32.mrf.mxu1 }
  0xd2   :  { %v1258_v61 = vpack.c.bf16 %v271_v56, %v269_v55  ;;  %v1259_v63 = vpack.c.bf16 %v384_v59, %v382_v58  ;;  %v273_v1 = vadd.f32 %v272_v60, %v1500_v48  ;;  %v386_v4 = vadd.f32 %v385_v62, %v1506_v51 }
  0xd3   :  { %v274_v0 = vpop.f32.mrf.mxu0  ;;  %v387_v3 = vpop.f32.mrf.mxu1 }
  0xd4   :  { %1070 = vst [vmem:[%s1850_s3] sm:$0xff] %v1258_v61  ;;  %v275_v2 = vadd.f32 %v274_v0, %v1503_v49  ;;  %1071 = vst [vmem:[%s1850_s3 + $0x8] sm:$0xff] %v1259_v63  ;;  %v388_v5 = vadd.f32 %v387_v3, %v1509_v52 }
  0xd5   :  { %v278_v6 = vpop.f32.mrf.mxu0  ;;  %v391_v8 = vpop.f32.mrf.mxu1 }
  0xd6   :  { %v1262_v7 = vpack.c.bf16 %v275_v2, %v273_v1  ;;  %v1263_v9 = vpack.c.bf16 %v388_v5, %v386_v4  ;;  %v279_v11 = vadd.f32 %v278_v6, %v1500_v48  ;;  %v392_v14 = vadd.f32 %v391_v8, %v1506_v51 }
  0xd7   :  { %v280_v10 = vpop.f32.mrf.mxu0  ;;  %v393_v13 = vpop.f32.mrf.mxu1 }
  0xd8   :  { %1074 = vst [vmem:[%s1850_s3 + $0x20] sm:$0xff] %v1262_v7  ;;  %v281_v12 = vadd.f32 %v280_v10, %v1503_v49  ;;  %1075 = vst [vmem:[%s1850_s3 + $0x28] sm:$0xff] %v1263_v9  ;;  %v394_v15 = vadd.f32 %v393_v13, %v1509_v52 }
  0xd9   :  { %v282_v16 = vpop.f32.mrf.mxu0  ;;  %v395_v18 = vpop.f32.mrf.mxu1 }
  0xda   :  { %v1266_v17 = vpack.c.bf16 %v281_v12, %v279_v11  ;;  %v1267_v19 = vpack.c.bf16 %v394_v15, %v392_v14  ;;  %v283_v21 = vadd.f32 %v282_v16, %v1500_v48  ;;  %v396_v24 = vadd.f32 %v395_v18, %v1506_v51 }
  0xdb   :  { %v284_v20 = vpop.f32.mrf.mxu0  ;;  %v397_v23 = vpop.f32.mrf.mxu1 }
  0xdc   :  { %1078 = vst [vmem:[%s1850_s3 + $0x40] sm:$0xff] %v1266_v17  ;;  %v285_v22 = vadd.f32 %v284_v20, %v1503_v49  ;;  %1079 = vst [vmem:[%s1850_s3 + $0x48] sm:$0xff] %v1267_v19  ;;  %v398_v25 = vadd.f32 %v397_v23, %v1509_v52 }
  0xdd   :  { %v288_v26 = vpop.f32.mrf.mxu0  ;;  %v401_v28 = vpop.f32.mrf.mxu1 }
  0xde   :  { %v1270_v27 = vpack.c.bf16 %v285_v22, %v283_v21  ;;  %v1271_v29 = vpack.c.bf16 %v398_v25, %v396_v24  ;;  %v289_v31 = vadd.f32 %v288_v26, %v1500_v48  ;;  %v402_v34 = vadd.f32 %v401_v28, %v1506_v51 }
  0xdf   :  { %v290_v30 = vpop.f32.mrf.mxu0  ;;  %v403_v33 = vpop.f32.mrf.mxu1 }
  0xe0   :  { %1082 = vst [vmem:[%s1850_s3 + $0x60] sm:$0xff] %v1270_v27  ;;  %v291_v32 = vadd.f32 %v290_v30, %v1503_v49  ;;  %1083 = vst [vmem:[%s1850_s3 + $0x68] sm:$0xff] %v1271_v29  ;;  %v404_v35 = vadd.f32 %v403_v33, %v1509_v52 }
  0xe1   :  { %v292_v36 = vpop.f32.mrf.mxu0  ;;  %v405_v38 = vpop.f32.mrf.mxu1 }
  0xe2   :  { %v1274_v37 = vpack.c.bf16 %v291_v32, %v289_v31  ;;  %v1275_v39 = vpack.c.bf16 %v404_v35, %v402_v34  ;;  %v293_v41 = vadd.f32 %v292_v36, %v1500_v48  ;;  %v406_v46 = vadd.f32 %v405_v38, %v1506_v51 }
  0xe3   :  { %v294_v40 = vpop.f32.mrf.mxu0  ;;  %v407_v44 = vpop.f32.mrf.mxu1 }
  0xe4   :  { %1086 = vst [vmem:[%s1850_s3 + $0x80] sm:$0xff] %v1274_v37  ;;  %v295_v43 = vadd.f32 %v294_v40, %v1503_v49  ;;  %1087 = vst [vmem:[%s1850_s3 + $0x88] sm:$0xff] %v1275_v39  ;;  %v408_v47 = vadd.f32 %v407_v44, %v1509_v52 }
  0xe5   :  { %v298_v50 = vpop.f32.mrf.mxu0  ;;  %v411_v54 = vpop.f32.mrf.mxu1 }
  0xe6   :  { %v1278_v53 = vpack.c.bf16 %v295_v43, %v293_v41  ;;  %v1279_v55 = vpack.c.bf16 %v408_v47, %v406_v46  ;;  %v299_v57 = vadd.f32 %v298_v50, %v1500_v48  ;;  %v412_v60 = vadd.f32 %v411_v54, %v1506_v51 }
  0xe7   :  { %v300_v56 = vpop.f32.mrf.mxu0  ;;  %v413_v59 = vpop.f32.mrf.mxu1 }
  0xe8   :  { %1090 = vst [vmem:[%s1850_s3 + $0xa0] sm:$0xff] %v1278_v53  ;;  %v301_v58 = vadd.f32 %v300_v56, %v1503_v49  ;;  %1091 = vst [vmem:[%s1850_s3 + $0xa8] sm:$0xff] %v1279_v55  ;;  %v414_v61 = vadd.f32 %v413_v59, %v1509_v52 }
  0xe9   :  { %v302_v62 = vpop.f32.mrf.mxu0  ;;  %v415_v0 = vpop.f32.mrf.mxu1 }
  0xea   :  { %v1282_v63 = vpack.c.bf16 %v301_v58, %v299_v57  ;;  %v1283_v1 = vpack.c.bf16 %v414_v61, %v412_v60  ;;  %v303_v3 = vadd.f32 %v302_v62, %v1500_v48  ;;  %v416_v6 = vadd.f32 %v415_v0, %v1506_v51 }
  0xeb   :  { %v304_v2 = vpop.f32.mrf.mxu0  ;;  %v417_v5 = vpop.f32.mrf.mxu1 }
  0xec   :  { %1094 = vst [vmem:[%s1850_s3 + $0xc0] sm:$0xff] %v1282_v63  ;;  %v305_v4 = vadd.f32 %v304_v2, %v1503_v49  ;;  %1095 = vst [vmem:[%s1850_s3 + $0xc8] sm:$0xff] %v1283_v1  ;;  %v418_v7 = vadd.f32 %v417_v5, %v1509_v52 }
  0xed   :  { %v308_v8 = vpop.f32.mrf.mxu0  ;;  %v421_v10 = vpop.f32.mrf.mxu1 }
  0xee   :  { %v1286_v9 = vpack.c.bf16 %v305_v4, %v303_v3  ;;  %v1287_v11 = vpack.c.bf16 %v418_v7, %v416_v6  ;;  %v309_v13 = vadd.f32 %v308_v8, %v1500_v48  ;;  %v422_v16 = vadd.f32 %v421_v10, %v1506_v51 }
  0xef   :  { %v310_v12 = vpop.f32.mrf.mxu0  ;;  %v423_v15 = vpop.f32.mrf.mxu1 }
  0xf0   :  { %1098 = vst [vmem:[%s1850_s3 + $0xe0] sm:$0xff] %v1286_v9  ;;  %v311_v14 = vadd.f32 %v310_v12, %v1503_v49  ;;  %1099 = vst [vmem:[%s1850_s3 + $0xe8] sm:$0xff] %v1287_v11  ;;  %v424_v17 = vadd.f32 %v423_v15, %v1509_v52 }
  0xf1   :  { %v312_v18 = vpop.f32.mrf.mxu0  ;;  %v425_v20 = vpop.f32.mrf.mxu1 }
  0xf2   :  { %v1290_v19 = vpack.c.bf16 %v311_v14, %v309_v13  ;;  %v1291_v21 = vpack.c.bf16 %v424_v17, %v422_v16  ;;  %v313_v23 = vadd.f32 %v312_v18, %v1500_v48  ;;  %v426_v26 = vadd.f32 %v425_v20, %v1506_v51 }
  0xf3   :  { %v314_v22 = vpop.f32.mrf.mxu0  ;;  %v427_v25 = vpop.f32.mrf.mxu1  ;;  %v67_v18 = vsub.s32 4, %v1488_v42 }
  0xf4   :  { %1102 = vst [vmem:[%s1850_s3 + $0x100] sm:$0xff] %v1290_v19  ;;  %v315_v24 = vadd.f32 %v314_v22, %v1503_v49  ;;  %1103 = vst [vmem:[%s1850_s3 + $0x108] sm:$0xff] %v1291_v21  ;;  %v428_v27 = vadd.f32 %v427_v25, %v1509_v52  ;;  %v71_v19 = vsub.s32 5, %v1488_v42 }
  0xf5   :  { %v318_v28 = vpop.f32.mrf.mxu0  ;;  %v431_v30 = vpop.f32.mrf.mxu1 }
  0xf6   :  { %v1294_v29 = vpack.c.bf16 %v315_v24, %v313_v23  ;;  %v1295_v31 = vpack.c.bf16 %v428_v27, %v426_v26  ;;  %v319_v33 = vadd.f32 %v318_v28, %v1500_v48  ;;  %v432_v36 = vadd.f32 %v431_v30, %v1506_v51 }
  0xf7   :  { %v320_v32 = vpop.f32.mrf.mxu0  ;;  %v433_v35 = vpop.f32.mrf.mxu1  ;;  %v75_v23 = vsub.s32 6, %v1488_v42  ;;  %v79_v24 = vsub.s32 7, %v1488_v42 }
  0xf8   :  { %1106 = vst [vmem:[%s1850_s3 + $0x120] sm:$0xff] %v1294_v29  ;;  %v321_v34 = vadd.f32 %v320_v32, %v1503_v49  ;;  %1107 = vst [vmem:[%s1850_s3 + $0x128] sm:$0xff] %v1295_v31  ;;  %v434_v37 = vadd.f32 %v433_v35, %v1509_v52  ;;  %v1665_v32 = vrot.slane %v1495_v45, %v67_v18 }
  0xf9   :  { %v322_v38 = vpop.f32.mrf.mxu0  ;;  %v435_v40 = vpop.f32.mrf.mxu1 }
  0xfa   :  { %v1298_v39 = vpack.c.bf16 %v321_v34, %v319_v33  ;;  %v1299_v41 = vpack.c.bf16 %v434_v37, %v432_v36  ;;  %v323_v44 = vadd.f32 %v322_v38, %v1500_v48  ;;  %v436_v50 = vadd.f32 %v435_v40, %v1506_v51 }
  0xfb   :  { %v324_v43 = vpop.f32.mrf.mxu0  ;;  %v437_v47 = vpop.f32.mrf.mxu1  ;;  %v1668_v33 = vrot.slane %v1495_v45, %v71_v19 }
  0xfc   :  { %1110 = vst [vmem:[%s1850_s3 + $0x140] sm:$0xff] %v1298_v39  ;;  %v325_v46 = vadd.f32 %v324_v43, %v1503_v49  ;;  %1111 = vst [vmem:[%s1850_s3 + $0x148] sm:$0xff] %v1299_v41  ;;  %v438_v53 = vadd.f32 %v437_v47, %v1509_v52 }
  0xfd   :  { %v328_v54 = vpop.f32.mrf.mxu0  ;;  %v441_v56 = vpop.f32.mrf.mxu1 }
  0xfe   :  { %v1302_v55 = vpack.c.bf16 %v325_v46, %v323_v44  ;;  %v1303_v57 = vpack.c.bf16 %v438_v53, %v436_v50  ;;  %v329_v59 = vadd.f32 %v328_v54, %v1500_v48  ;;  %v442_v62 = vadd.f32 %v441_v56, %v1506_v51 }
  0xff   :  { %v330_v58 = vpop.f32.mrf.mxu0  ;;  %v443_v61 = vpop.f32.mrf.mxu1 }
 0x100   :  { %1114 = vst [vmem:[%s1850_s3 + $0x160] sm:$0xff] %v1302_v55  ;;  %v331_v60 = vadd.f32 %v330_v58, %v1503_v49  ;;  %1115 = vst [vmem:[%s1850_s3 + $0x168] sm:$0xff] %v1303_v57  ;;  %v444_v63 = vadd.f32 %v443_v61, %v1509_v52 }
 0x101   :  { %v332_v0 = vpop.f32.mrf.mxu0  ;;  %v445_v2 = vpop.f32.mrf.mxu1 }
 0x102   :  { %v1306_v1 = vpack.c.bf16 %v331_v60, %v329_v59  ;;  %v1307_v3 = vpack.c.bf16 %v444_v63, %v442_v62  ;;  %v333_v5 = vadd.f32 %v332_v0, %v1500_v48  ;;  %v446_v8 = vadd.f32 %v445_v2, %v1506_v51 }
 0x103   :  { %v334_v4 = vpop.f32.mrf.mxu0  ;;  %v447_v7 = vpop.f32.mrf.mxu1 }
 0x104   :  { %1118 = vst [vmem:[%s1850_s3 + $0x180] sm:$0xff] %v1306_v1  ;;  %v335_v6 = vadd.f32 %v334_v4, %v1503_v49  ;;  %1119 = vst [vmem:[%s1850_s3 + $0x188] sm:$0xff] %v1307_v3  ;;  %v448_v9 = vadd.f32 %v447_v7, %v1509_v52 }
 0x105   :  { %v338_v10 = vpop.f32.mrf.mxu0  ;;  %v451_v12 = vpop.f32.mrf.mxu1 }
 0x106   :  { %v1310_v11 = vpack.c.bf16 %v335_v6, %v333_v5  ;;  %v1311_v13 = vpack.c.bf16 %v448_v9, %v446_v8  ;;  %v339_v15 = vadd.f32 %v338_v10, %v1500_v48  ;;  %v452_v20 = vadd.f32 %v451_v12, %v1506_v51 }
 0x107   :  { %v340_v14 = vpop.f32.mrf.mxu0  ;;  %v453_v17 = vpop.f32.mrf.mxu1 }
 0x108   :  { %1122 = vst [vmem:[%s1850_s3 + $0x1a0] sm:$0xff] %v1310_v11  ;;  %v341_v16 = vadd.f32 %v340_v14, %v1503_v49  ;;  %1123 = vst [vmem:[%s1850_s3 + $0x1a8] sm:$0xff] %v1311_v13  ;;  %v454_v21 = vadd.f32 %v453_v17, %v1509_v52 }
 0x109   :  { %v342_v22 = vpop.f32.mrf.mxu0  ;;  %v455_v26 = vpop.f32.mrf.mxu1 }
 0x10a   :  { %v1314_v25 = vpack.c.bf16 %v341_v16, %v339_v15  ;;  %v1315_v27 = vpack.c.bf16 %v454_v21, %v452_v20  ;;  %v343_v29 = vadd.f32 %v342_v22, %v1500_v48  ;;  %v456_v42 = vadd.f32 %v455_v26, %v1506_v51 }
 0x10b   :  { %v344_v28 = vpop.f32.mrf.mxu0  ;;  %v457_v31 = vpop.f32.mrf.mxu1  ;;  %v1676_v48 = vrot.slane %v1495_v45, %v75_v23 }
 0x10c   :  { %1126 = vst [vmem:[%s1850_s3 + $0x1c0] sm:$0xff] %v1314_v25  ;;  %v345_v30 = vadd.f32 %v344_v28, %v1503_v49  ;;  %1127 = vst [vmem:[%s1850_s3 + $0x1c8] sm:$0xff] %v1315_v27  ;;  %v458_v34 = vadd.f32 %v457_v31, %v1509_v52  ;;  %v1679_v49 = vrot.slane %v1495_v45, %v79_v24 }
 0x10d   :  { %v494_v35 = vpop.f32.mrf.mxu0  ;;  %v607_v37 = vpop.f32.mrf.mxu1 }
 0x10e   :  { %v1318_v36 = vpack.c.bf16 %v345_v30, %v343_v29  ;;  %v1319_v38 = vpack.c.bf16 %v458_v34, %v456_v42  ;;  %v495_v40 = vadd.f32 %v494_v35, %v1665_v32  ;;  %v608_v45 = vadd.f32 %v607_v37, %v1676_v48 }
 0x10f   :  { %v496_v39 = vpop.f32.mrf.mxu0  ;;  %v609_v52 = vpop.f32.mrf.mxu1 }
 0x110   :  { %1130 = vst [vmem:[%s1850_s3 + $0x1e0] sm:$0xff] %v1318_v36  ;;  %v497_v51 = vadd.f32 %v496_v39, %v1668_v33  ;;  %1131 = vst [vmem:[%s1850_s3 + $0x1e8] sm:$0xff] %v1319_v38  ;;  %v610_v41 = vadd.f32 %v609_v52, %v1679_v49 }
 0x111   :  { %v498_v43 = vpop.f32.mrf.mxu0  ;;  %v611_v46 = vpop.f32.mrf.mxu1 }
 0x112   :  { %v1260_v44 = vpack.c.bf16 %v497_v51, %v495_v40  ;;  %v1261_v47 = vpack.c.bf16 %v610_v41, %v608_v45  ;;  %v499_v53 = vadd.f32 %v498_v43, %v1665_v32  ;;  %v612_v56 = vadd.f32 %v611_v46, %v1676_v48 }
 0x113   :  { %v500_v50 = vpop.f32.mrf.mxu0  ;;  %v613_v55 = vpop.f32.mrf.mxu1 }
 0x114   :  { %1072 = vst [vmem:[%s1850_s3 + $0x10] sm:$0xff] %v1260_v44  ;;  %v501_v54 = vadd.f32 %v500_v50, %v1668_v33  ;;  %1073 = vst [vmem:[%s1850_s3 + $0x18] sm:$0xff] %v1261_v47  ;;  %v614_v57 = vadd.f32 %v613_v55, %v1679_v49 }
 0x115   :  { %v504_v58 = vpop.f32.mrf.mxu0  ;;  %v617_v60 = vpop.f32.mrf.mxu1 }
 0x116   :  { %v1264_v59 = vpack.c.bf16 %v501_v54, %v499_v53  ;;  %v1265_v61 = vpack.c.bf16 %v614_v57, %v612_v56  ;;  %v505_v63 = vadd.f32 %v504_v58, %v1665_v32  ;;  %v618_v2 = vadd.f32 %v617_v60, %v1676_v48 }
 0x117   :  { %v506_v62 = vpop.f32.mrf.mxu0  ;;  %v619_v1 = vpop.f32.mrf.mxu1 }
 0x118   :  { %1076 = vst [vmem:[%s1850_s3 + $0x30] sm:$0xff] %v1264_v59  ;;  %v507_v0 = vadd.f32 %v506_v62, %v1668_v33  ;;  %1077 = vst [vmem:[%s1850_s3 + $0x38] sm:$0xff] %v1265_v61  ;;  %v620_v3 = vadd.f32 %v619_v1, %v1679_v49 }
 0x119   :  { %v508_v4 = vpop.f32.mrf.mxu0  ;;  %v621_v6 = vpop.f32.mrf.mxu1 }
 0x11a   :  { %v1268_v5 = vpack.c.bf16 %v507_v0, %v505_v63  ;;  %v1269_v7 = vpack.c.bf16 %v620_v3, %v618_v2  ;;  %v509_v9 = vadd.f32 %v508_v4, %v1665_v32  ;;  %v622_v12 = vadd.f32 %v621_v6, %v1676_v48 }
 0x11b   :  { %v510_v8 = vpop.f32.mrf.mxu0  ;;  %v623_v11 = vpop.f32.mrf.mxu1 }
 0x11c   :  { %1080 = vst [vmem:[%s1850_s3 + $0x50] sm:$0xff] %v1268_v5  ;;  %v511_v10 = vadd.f32 %v510_v8, %v1668_v33  ;;  %1081 = vst [vmem:[%s1850_s3 + $0x58] sm:$0xff] %v1269_v7  ;;  %v624_v13 = vadd.f32 %v623_v11, %v1679_v49 }
 0x11d   :  { %v514_v14 = vpop.f32.mrf.mxu0  ;;  %v627_v16 = vpop.f32.mrf.mxu1 }
 0x11e   :  { %v1272_v15 = vpack.c.bf16 %v511_v10, %v509_v9  ;;  %v1273_v17 = vpack.c.bf16 %v624_v13, %v622_v12  ;;  %v515_v19 = vadd.f32 %v514_v14, %v1665_v32  ;;  %v628_v22 = vadd.f32 %v627_v16, %v1676_v48 }
 0x11f   :  { %v516_v18 = vpop.f32.mrf.mxu0  ;;  %v629_v21 = vpop.f32.mrf.mxu1 }
 0x120   :  { %1084 = vst [vmem:[%s1850_s3 + $0x70] sm:$0xff] %v1272_v15  ;;  %v517_v20 = vadd.f32 %v516_v18, %v1668_v33  ;;  %1085 = vst [vmem:[%s1850_s3 + $0x78] sm:$0xff] %v1273_v17  ;;  %v630_v23 = vadd.f32 %v629_v21, %v1679_v49 }
 0x121   :  { %v518_v24 = vpop.f32.mrf.mxu0  ;;  %v631_v26 = vpop.f32.mrf.mxu1 }
 0x122   :  { %v1276_v25 = vpack.c.bf16 %v517_v20, %v515_v19  ;;  %v1277_v27 = vpack.c.bf16 %v630_v23, %v628_v22  ;;  %v519_v29 = vadd.f32 %v518_v24, %v1665_v32  ;;  %v632_v42 = vadd.f32 %v631_v26, %v1676_v48 }
 0x123   :  { %v520_v28 = vpop.f32.mrf.mxu0  ;;  %v633_v31 = vpop.f32.mrf.mxu1 }
 0x124   :  { %1088 = vst [vmem:[%s1850_s3 + $0x90] sm:$0xff] %v1276_v25  ;;  %v521_v30 = vadd.f32 %v520_v28, %v1668_v33  ;;  %1089 = vst [vmem:[%s1850_s3 + $0x98] sm:$0xff] %v1277_v27  ;;  %v634_v34 = vadd.f32 %v633_v31, %v1679_v49 }
 0x125   :  { %v524_v35 = vpop.f32.mrf.mxu0  ;;  %v637_v37 = vpop.f32.mrf.mxu1 }
 0x126   :  { %v1280_v36 = vpack.c.bf16 %v521_v30, %v519_v29  ;;  %v1281_v38 = vpack.c.bf16 %v634_v34, %v632_v42  ;;  %v525_v40 = vadd.f32 %v524_v35, %v1665_v32  ;;  %v638_v45 = vadd.f32 %v637_v37, %v1676_v48 }
 0x127   :  { %v526_v39 = vpop.f32.mrf.mxu0  ;;  %v639_v52 = vpop.f32.mrf.mxu1 }
 0x128   :  { %1092 = vst [vmem:[%s1850_s3 + $0xb0] sm:$0xff] %v1280_v36  ;;  %v527_v51 = vadd.f32 %v526_v39, %v1668_v33  ;;  %1093 = vst [vmem:[%s1850_s3 + $0xb8] sm:$0xff] %v1281_v38  ;;  %v640_v41 = vadd.f32 %v639_v52, %v1679_v49 }
 0x129   :  { %v528_v43 = vpop.f32.mrf.mxu0  ;;  %v641_v46 = vpop.f32.mrf.mxu1 }
 0x12a   :  { %v1284_v44 = vpack.c.bf16 %v527_v51, %v525_v40  ;;  %v1285_v47 = vpack.c.bf16 %v640_v41, %v638_v45  ;;  %v529_v53 = vadd.f32 %v528_v43, %v1665_v32  ;;  %v642_v56 = vadd.f32 %v641_v46, %v1676_v48 }
 0x12b   :  { %v530_v50 = vpop.f32.mrf.mxu0  ;;  %v643_v55 = vpop.f32.mrf.mxu1 }
 0x12c   :  { %1096 = vst [vmem:[%s1850_s3 + $0xd0] sm:$0xff] %v1284_v44  ;;  %v531_v54 = vadd.f32 %v530_v50, %v1668_v33  ;;  %1097 = vst [vmem:[%s1850_s3 + $0xd8] sm:$0xff] %v1285_v47  ;;  %v644_v57 = vadd.f32 %v643_v55, %v1679_v49 }
 0x12d   :  { %v534_v58 = vpop.f32.mrf.mxu0  ;;  %v647_v60 = vpop.f32.mrf.mxu1 }
 0x12e   :  { %v1288_v59 = vpack.c.bf16 %v531_v54, %v529_v53  ;;  %v1289_v61 = vpack.c.bf16 %v644_v57, %v642_v56  ;;  %v535_v63 = vadd.f32 %v534_v58, %v1665_v32  ;;  %v648_v2 = vadd.f32 %v647_v60, %v1676_v48 }
 0x12f   :  { %v536_v62 = vpop.f32.mrf.mxu0  ;;  %v649_v1 = vpop.f32.mrf.mxu1 }
 0x130   :  { %1100 = vst [vmem:[%s1850_s3 + $0xf0] sm:$0xff] %v1288_v59  ;;  %v537_v0 = vadd.f32 %v536_v62, %v1668_v33  ;;  %1101 = vst [vmem:[%s1850_s3 + $0xf8] sm:$0xff] %v1289_v61  ;;  %v650_v3 = vadd.f32 %v649_v1, %v1679_v49 }
 0x131   :  { %v538_v4 = vpop.f32.mrf.mxu0  ;;  %v651_v6 = vpop.f32.mrf.mxu1 }
 0x132   :  { %v1292_v5 = vpack.c.bf16 %v537_v0, %v535_v63  ;;  %v1293_v7 = vpack.c.bf16 %v650_v3, %v648_v2  ;;  %v539_v9 = vadd.f32 %v538_v4, %v1665_v32  ;;  %v652_v12 = vadd.f32 %v651_v6, %v1676_v48 }
 0x133   :  { %v540_v8 = vpop.f32.mrf.mxu0  ;;  %v653_v11 = vpop.f32.mrf.mxu1 }
 0x134   :  { %1104 = vst [vmem:[%s1850_s3 + $0x110] sm:$0xff] %v1292_v5  ;;  %v541_v10 = vadd.f32 %v540_v8, %v1668_v33  ;;  %1105 = vst [vmem:[%s1850_s3 + $0x118] sm:$0xff] %v1293_v7  ;;  %v654_v13 = vadd.f32 %v653_v11, %v1679_v49 }
 0x135   :  { %v544_v14 = vpop.f32.mrf.mxu0  ;;  %v657_v16 = vpop.f32.mrf.mxu1 }
 0x136   :  { %v1296_v15 = vpack.c.bf16 %v541_v10, %v539_v9  ;;  %v1297_v17 = vpack.c.bf16 %v654_v13, %v652_v12  ;;  %v545_v19 = vadd.f32 %v544_v14, %v1665_v32  ;;  %v658_v22 = vadd.f32 %v657_v16, %v1676_v48 }
 0x137   :  { %v546_v18 = vpop.f32.mrf.mxu0  ;;  %v659_v21 = vpop.f32.mrf.mxu1 }
 0x138   :  { %1108 = vst [vmem:[%s1850_s3 + $0x130] sm:$0xff] %v1296_v15  ;;  %v547_v20 = vadd.f32 %v546_v18, %v1668_v33  ;;  %1109 = vst [vmem:[%s1850_s3 + $0x138] sm:$0xff] %v1297_v17  ;;  %v660_v23 = vadd.f32 %v659_v21, %v1679_v49 }
 0x139   :  { %v548_v24 = vpop.f32.mrf.mxu0  ;;  %v661_v26 = vpop.f32.mrf.mxu1 }
 0x13a   :  { %v1300_v25 = vpack.c.bf16 %v547_v20, %v545_v19  ;;  %v1301_v27 = vpack.c.bf16 %v660_v23, %v658_v22  ;;  %v549_v29 = vadd.f32 %v548_v24, %v1665_v32  ;;  %v662_v42 = vadd.f32 %v661_v26, %v1676_v48 }
 0x13b   :  { %v550_v28 = vpop.f32.mrf.mxu0  ;;  %v663_v31 = vpop.f32.mrf.mxu1 }
 0x13c   :  { %1112 = vst [vmem:[%s1850_s3 + $0x150] sm:$0xff] %v1300_v25  ;;  %v551_v30 = vadd.f32 %v550_v28, %v1668_v33  ;;  %1113 = vst [vmem:[%s1850_s3 + $0x158] sm:$0xff] %v1301_v27  ;;  %v664_v34 = vadd.f32 %v663_v31, %v1679_v49 }
 0x13d   :  { %v554_v35 = vpop.f32.mrf.mxu0  ;;  %v667_v37 = vpop.f32.mrf.mxu1 }
 0x13e   :  { %v1304_v36 = vpack.c.bf16 %v551_v30, %v549_v29  ;;  %v1305_v38 = vpack.c.bf16 %v664_v34, %v662_v42  ;;  %v555_v40 = vadd.f32 %v554_v35, %v1665_v32  ;;  %v668_v45 = vadd.f32 %v667_v37, %v1676_v48 }
 0x13f   :  { %v556_v39 = vpop.f32.mrf.mxu0  ;;  %v669_v52 = vpop.f32.mrf.mxu1 }
 0x140   :  { %1116 = vst [vmem:[%s1850_s3 + $0x170] sm:$0xff] %v1304_v36  ;;  %v557_v51 = vadd.f32 %v556_v39, %v1668_v33  ;;  %1117 = vst [vmem:[%s1850_s3 + $0x178] sm:$0xff] %v1305_v38  ;;  %v670_v41 = vadd.f32 %v669_v52, %v1679_v49 }
 0x141   :  { %v558_v43 = vpop.f32.mrf.mxu0  ;;  %v671_v46 = vpop.f32.mrf.mxu1 }
 0x142   :  { %v1308_v44 = vpack.c.bf16 %v557_v51, %v555_v40  ;;  %v1309_v47 = vpack.c.bf16 %v670_v41, %v668_v45  ;;  %v559_v53 = vadd.f32 %v558_v43, %v1665_v32  ;;  %v672_v56 = vadd.f32 %v671_v46, %v1676_v48 }
 0x143   :  { %v560_v50 = vpop.f32.mrf.mxu0  ;;  %v673_v55 = vpop.f32.mrf.mxu1 }
 0x144   :  { %1120 = vst [vmem:[%s1850_s3 + $0x190] sm:$0xff] %v1308_v44  ;;  %v561_v54 = vadd.f32 %v560_v50, %v1668_v33  ;;  %1121 = vst [vmem:[%s1850_s3 + $0x198] sm:$0xff] %v1309_v47  ;;  %v674_v57 = vadd.f32 %v673_v55, %v1679_v49 }
 0x145   :  { %v564_v58 = vpop.f32.mrf.mxu0  ;;  %v677_v60 = vpop.f32.mrf.mxu1 }
 0x146   :  { %v1312_v59 = vpack.c.bf16 %v561_v54, %v559_v53  ;;  %v1313_v61 = vpack.c.bf16 %v674_v57, %v672_v56  ;;  %v565_v63 = vadd.f32 %v564_v58, %v1665_v32  ;;  %v678_v2 = vadd.f32 %v677_v60, %v1676_v48 }
 0x147   :  { %v566_v62 = vpop.f32.mrf.mxu0  ;;  %v679_v1 = vpop.f32.mrf.mxu1 }
 0x148   :  { %1124 = vst [vmem:[%s1850_s3 + $0x1b0] sm:$0xff] %v1312_v59  ;;  %v567_v0 = vadd.f32 %v566_v62, %v1668_v33  ;;  %1125 = vst [vmem:[%s1850_s3 + $0x1b8] sm:$0xff] %v1313_v61  ;;  %v680_v3 = vadd.f32 %v679_v1, %v1679_v49 }
 0x149   :  { %v568_v4 = vpop.f32.mrf.mxu0  ;;  %v681_v6 = vpop.f32.mrf.mxu1 }
 0x14a   :  { %v1316_v5 = vpack.c.bf16 %v567_v0, %v565_v63  ;;  %v1317_v7 = vpack.c.bf16 %v680_v3, %v678_v2  ;;  %v569_v9 = vadd.f32 %v568_v4, %v1665_v32  ;;  %v682_v12 = vadd.f32 %v681_v6, %v1676_v48 }
 0x14b   :  { %v570_v8 = vpop.f32.mrf.mxu0  ;;  %v683_v11 = vpop.f32.mrf.mxu1 }
 0x14c   :  { %1128 = vst [vmem:[%s1850_s3 + $0x1d0] sm:$0xff] %v1316_v5  ;;  %v571_v10 = vadd.f32 %v570_v8, %v1668_v33  ;;  %1129 = vst [vmem:[%s1850_s3 + $0x1d8] sm:$0xff] %v1317_v7  ;;  %v684_v13 = vadd.f32 %v683_v11, %v1679_v49 }
 0x14e   :  { %v1320_v14 = vpack.c.bf16 %v571_v10, %v569_v9  ;;  %v1321_v15 = vpack.c.bf16 %v684_v13, %v682_v12 }
 0x150   :  { %1132 = vst [vmem:[%s1850_s3 + $0x1f0] sm:$0xff] %v1320_v14  ;;  %1133 = vst [vmem:[%s1850_s3 + $0x1f8] sm:$0xff] %v1321_v15 }

// kernel: _forward_impl.6
= control target key start
LH: loop header
LB: loop body
LE: loop exit
PB: predicated region body
PF: predicated region fallthrough
CT: control target
= control target key end

     0   :  { %v1390_v6 = vmov 0.0   ;;  %s1629_s30 = smov 0   ;;  %s1898_s0 = inlined_call_operand.vmem [shape: s32[16,1], index: 0, kind: input, shape index: {}]   ;;  %s1899_s1 = inlined_call_operand.vmem [shape: bf16[8,16,1024], index: 1, kind: input, shape index: {}, may-alias: {1,2}]   ;;  %s1900_s2 = inlined_call_operand.vmem [shape: bf16[8,16,1024], index: 2, kind: input, shape index: {}, may-alias: {1,2}]   ;;  %s1901_s3 = inlined_call_operand.vmem [shape: bf16[128,512], index: 3, kind: input, shape index: {}]   ;;  %s1902_s4 = inlined_call_operand.vmem [shape: bf16[128,512], index: 4, kind: input, shape index: {}]   ;;  %s1903_s5 = inlined_call_operand.vmem [shape: bf16[8,16,128], index: 5, kind: output, shape index: {0}]   ;;  %s1904_s6 = inlined_call_operand.vmem [shape: bf16[8,16,128], index: 6, kind: output, shape index: {1}]  }
   0x1   :  { %v28_v0 = vld [vmem:[%s1899_s1] sm:$0xff]  ;;  %v30_v1 = vld [vmem:[%s1899_s1 + $0x8] sm:$0xff]  ;;  %213 = vst [vmem:[#allocation2] sm:$0xff] %v1390_v6  ;;  %214 = vst [vmem:[#allocation2 + $0x8] sm:$0xff] %v1390_v6 }
   0x2   :  { %v32_v2 = vld [vmem:[%s1899_s1 + $0x20] sm:$0xff]  ;;  %29 = vst [vmem:[#allocation6] sm:$0xff] %v28_v0  ;;  %31 = vst [vmem:[#allocation6 + $0x8] sm:$0xff] %v30_v1  ;;  %v34_v3 = vld [vmem:[%s1899_s1 + $0x28] sm:$0xff] }
   0x3   :  { %33 = vst [vmem:[#allocation6 + $0x10] sm:$0xff] %v32_v2  ;;  %v36_v4 = vld [vmem:[%s1899_s1 + $0x40] sm:$0xff]  ;;  %v38_v5 = vld [vmem:[%s1899_s1 + $0x48] sm:$0xff]  ;;  %215 = vst [vmem:[#allocation3 + $0x8] sm:$0xff] %v1390_v6 }
   0x4   :  { %216 = vst [vmem:[#allocation3] sm:$0xff] %v1390_v6  ;;  %217 = vst [vmem:[#allocation4 + $0x8] sm:$0xff] %v1390_v6  ;;  %v40_v7 = vld [vmem:[%s1899_s1 + $0x60] sm:$0xff]  ;;  %v42_v8 = vld [vmem:[%s1899_s1 + $0x68] sm:$0xff] }
   0x5   :  { %218 = vst [vmem:[#allocation4] sm:$0xff] %v1390_v6  ;;  %219 = vst [vmem:[#allocation5] sm:$0xff] %v1390_v6  ;;  %v44_v9 = vld [vmem:[%s1899_s1 + $0x80] sm:$0xff]  ;;  %v46_v10 = vld [vmem:[%s1899_s1 + $0x88] sm:$0xff] }
   0x6   :  { %220 = vst [vmem:[#allocation5 + $0x8] sm:$0xff] %v1390_v6  ;;  %35 = vst [vmem:[#allocation6 + $0x18] sm:$0xff] %v34_v3  ;;  %v48_v11 = vld [vmem:[%s1899_s1 + $0xa0] sm:$0xff]  ;;  %v50_v12 = vld [vmem:[%s1899_s1 + $0xa8] sm:$0xff] }
   0x7   :  { %37 = vst [vmem:[#allocation6 + $0x20] sm:$0xff] %v36_v4  ;;  %39 = vst [vmem:[#allocation6 + $0x28] sm:$0xff] %v38_v5  ;;  %v52_v13 = vld [vmem:[%s1899_s1 + $0xc0] sm:$0xff]  ;;  %v54_v14 = vld [vmem:[%s1899_s1 + $0xc8] sm:$0xff] }
   0x8   :  { %41 = vst [vmem:[#allocation6 + $0x30] sm:$0xff] %v40_v7  ;;  %43 = vst [vmem:[#allocation6 + $0x38] sm:$0xff] %v42_v8  ;;  %v56_v15 = vld [vmem:[%s1899_s1 + $0xe0] sm:$0xff]  ;;  %v58_v16 = vld [vmem:[%s1899_s1 + $0xe8] sm:$0xff] }
   0x9   :  { %45 = vst [vmem:[#allocation6 + $0x40] sm:$0xff] %v44_v9  ;;  %47 = vst [vmem:[#allocation6 + $0x48] sm:$0xff] %v46_v10  ;;  %v60_v17 = vld [vmem:[%s1899_s1 + $0x100] sm:$0xff]  ;;  %v62_v18 = vld [vmem:[%s1899_s1 + $0x108] sm:$0xff] }
   0xa   :  { %49 = vst [vmem:[#allocation6 + $0x50] sm:$0xff] %v48_v11  ;;  %51 = vst [vmem:[#allocation6 + $0x58] sm:$0xff] %v50_v12  ;;  %v64_v19 = vld [vmem:[%s1899_s1 + $0x120] sm:$0xff]  ;;  %v66_v20 = vld [vmem:[%s1899_s1 + $0x128] sm:$0xff] }
   0xb   :  { %53 = vst [vmem:[#allocation6 + $0x60] sm:$0xff] %v52_v13  ;;  %55 = vst [vmem:[#allocation6 + $0x68] sm:$0xff] %v54_v14  ;;  %v68_v21 = vld [vmem:[%s1899_s1 + $0x140] sm:$0xff]  ;;  %v70_v22 = vld [vmem:[%s1899_s1 + $0x148] sm:$0xff] }
   0xc   :  { %57 = vst [vmem:[#allocation6 + $0x70] sm:$0xff] %v56_v15  ;;  %59 = vst [vmem:[#allocation6 + $0x78] sm:$0xff] %v58_v16  ;;  %v72_v23 = vld [vmem:[%s1899_s1 + $0x160] sm:$0xff]  ;;  %v74_v24 = vld [vmem:[%s1899_s1 + $0x168] sm:$0xff] }
   0xd   :  { %61 = vst [vmem:[#allocation6 + $0x80] sm:$0xff] %v60_v17  ;;  %63 = vst [vmem:[#allocation6 + $0x88] sm:$0xff] %v62_v18  ;;  %v76_v25 = vld [vmem:[%s1899_s1 + $0x180] sm:$0xff]  ;;  %v78_v26 = vld [vmem:[%s1899_s1 + $0x188] sm:$0xff] }
   0xe   :  { %65 = vst [vmem:[#allocation6 + $0x90] sm:$0xff] %v64_v19  ;;  %67 = vst [vmem:[#allocation6 + $0x98] sm:$0xff] %v66_v20  ;;  %v80_v27 = vld [vmem:[%s1899_s1 + $0x1a0] sm:$0xff]  ;;  %v82_v28 = vld [vmem:[%s1899_s1 + $0x1a8] sm:$0xff] }
   0xf   :  { %69 = vst [vmem:[#allocation6 + $0xa0] sm:$0xff] %v68_v21  ;;  %71 = vst [vmem:[#allocation6 + $0xa8] sm:$0xff] %v70_v22  ;;  %v84_v29 = vld [vmem:[%s1899_s1 + $0x1c0] sm:$0xff]  ;;  %v86_v30 = vld [vmem:[%s1899_s1 + $0x1c8] sm:$0xff] }
  0x10   :  { %73 = vst [vmem:[#allocation6 + $0xb0] sm:$0xff] %v72_v23  ;;  %75 = vst [vmem:[#allocation6 + $0xb8] sm:$0xff] %v74_v24  ;;  %v88_v31 = vld [vmem:[%s1899_s1 + $0x1e0] sm:$0xff]  ;;  %v90_v32 = vld [vmem:[%s1899_s1 + $0x1e8] sm:$0xff] }
  0x11   :  { %77 = vst [vmem:[#allocation6 + $0xc0] sm:$0xff] %v76_v25  ;;  %79 = vst [vmem:[#allocation6 + $0xc8] sm:$0xff] %v78_v26  ;;  %v1072_v33 = vld [vmem:[%s1900_s2 + $0x10] sm:$0xff]  ;;  %v1073_v34 = vld [vmem:[%s1900_s2 + $0x18] sm:$0xff] }
  0x12   :  { %81 = vst [vmem:[#allocation6 + $0xd0] sm:$0xff] %v80_v27  ;;  %83 = vst [vmem:[#allocation6 + $0xd8] sm:$0xff] %v82_v28  ;;  %v1074_v35 = vld [vmem:[%s1900_s2 + $0x30] sm:$0xff]  ;;  %v1075_v36 = vld [vmem:[%s1900_s2 + $0x38] sm:$0xff] }
  0x13   :  { %85 = vst [vmem:[#allocation6 + $0xe0] sm:$0xff] %v84_v29  ;;  %87 = vst [vmem:[#allocation6 + $0xe8] sm:$0xff] %v86_v30  ;;  %v1076_v37 = vld [vmem:[%s1900_s2 + $0x50] sm:$0xff]  ;;  %v1077_v38 = vld [vmem:[%s1900_s2 + $0x58] sm:$0xff] }
  0x14   :  { %89 = vst [vmem:[#allocation6 + $0xf0] sm:$0xff] %v88_v31  ;;  %91 = vst [vmem:[#allocation6 + $0xf8] sm:$0xff] %v90_v32  ;;  %v1078_v39 = vld [vmem:[%s1900_s2 + $0x70] sm:$0xff]  ;;  %v1079_v40 = vld [vmem:[%s1900_s2 + $0x78] sm:$0xff] }
  0x15   :  { %116 = vst [vmem:[#allocation7] sm:$0xff] %v1072_v33  ;;  %118 = vst [vmem:[#allocation7 + $0x8] sm:$0xff] %v1073_v34  ;;  %v1080_v41 = vld [vmem:[%s1900_s2 + $0x90] sm:$0xff]  ;;  %v1081_v42 = vld [vmem:[%s1900_s2 + $0x98] sm:$0xff] }
  0x16   :  { %120 = vst [vmem:[#allocation7 + $0x10] sm:$0xff] %v1074_v35  ;;  %122 = vst [vmem:[#allocation7 + $0x18] sm:$0xff] %v1075_v36  ;;  %v1082_v43 = vld [vmem:[%s1900_s2 + $0xb0] sm:$0xff]  ;;  %v1083_v44 = vld [vmem:[%s1900_s2 + $0xb8] sm:$0xff] }
  0x17   :  { %124 = vst [vmem:[#allocation7 + $0x20] sm:$0xff] %v1076_v37  ;;  %126 = vst [vmem:[#allocation7 + $0x28] sm:$0xff] %v1077_v38  ;;  %v1084_v45 = vld [vmem:[%s1900_s2 + $0xd0] sm:$0xff]  ;;  %v1085_v46 = vld [vmem:[%s1900_s2 + $0xd8] sm:$0xff] }
  0x18   :  { %128 = vst [vmem:[#allocation7 + $0x30] sm:$0xff] %v1078_v39  ;;  %130 = vst [vmem:[#allocation7 + $0x38] sm:$0xff] %v1079_v40  ;;  %v1086_v47 = vld [vmem:[%s1900_s2 + $0xf0] sm:$0xff]  ;;  %v1087_v48 = vld [vmem:[%s1900_s2 + $0xf8] sm:$0xff] }
  0x19   :  { %132 = vst [vmem:[#allocation7 + $0x40] sm:$0xff] %v1080_v41  ;;  %134 = vst [vmem:[#allocation7 + $0x48] sm:$0xff] %v1081_v42  ;;  %v1088_v49 = vld [vmem:[%s1900_s2 + $0x110] sm:$0xff]  ;;  %v1089_v50 = vld [vmem:[%s1900_s2 + $0x118] sm:$0xff] }
  0x1a   :  { %136 = vst [vmem:[#allocation7 + $0x50] sm:$0xff] %v1082_v43  ;;  %138 = vst [vmem:[#allocation7 + $0x58] sm:$0xff] %v1083_v44  ;;  %v1090_v51 = vld [vmem:[%s1900_s2 + $0x130] sm:$0xff]  ;;  %v1091_v52 = vld [vmem:[%s1900_s2 + $0x138] sm:$0xff] }
  0x1b   :  { %140 = vst [vmem:[#allocation7 + $0x60] sm:$0xff] %v1084_v45  ;;  %142 = vst [vmem:[#allocation7 + $0x68] sm:$0xff] %v1085_v46  ;;  %v1092_v53 = vld [vmem:[%s1900_s2 + $0x150] sm:$0xff]  ;;  %v1093_v54 = vld [vmem:[%s1900_s2 + $0x158] sm:$0xff] }
  0x1c   :  { %144 = vst [vmem:[#allocation7 + $0x70] sm:$0xff] %v1086_v47  ;;  %146 = vst [vmem:[#allocation7 + $0x78] sm:$0xff] %v1087_v48  ;;  %v1094_v55 = vld [vmem:[%s1900_s2 + $0x170] sm:$0xff]  ;;  %v1095_v56 = vld [vmem:[%s1900_s2 + $0x178] sm:$0xff] }
  0x1d   :  { %148 = vst [vmem:[#allocation7 + $0x80] sm:$0xff] %v1088_v49  ;;  %150 = vst [vmem:[#allocation7 + $0x88] sm:$0xff] %v1089_v50  ;;  %v1096_v57 = vld [vmem:[%s1900_s2 + $0x190] sm:$0xff]  ;;  %v1097_v58 = vld [vmem:[%s1900_s2 + $0x198] sm:$0xff] }
  0x1e   :  { %152 = vst [vmem:[#allocation7 + $0x90] sm:$0xff] %v1090_v51  ;;  %154 = vst [vmem:[#allocation7 + $0x98] sm:$0xff] %v1091_v52  ;;  %v1098_v59 = vld [vmem:[%s1900_s2 + $0x1b0] sm:$0xff]  ;;  %v1099_v60 = vld [vmem:[%s1900_s2 + $0x1b8] sm:$0xff] }
  0x1f   :  { %156 = vst [vmem:[#allocation7 + $0xa0] sm:$0xff] %v1092_v53  ;;  %158 = vst [vmem:[#allocation7 + $0xa8] sm:$0xff] %v1093_v54  ;;  %v1100_v61 = vld [vmem:[%s1900_s2 + $0x1d0] sm:$0xff]  ;;  %v1101_v62 = vld [vmem:[%s1900_s2 + $0x1d8] sm:$0xff] }
  0x20   :  { %160 = vst [vmem:[#allocation7 + $0xb0] sm:$0xff] %v1094_v55  ;;  %162 = vst [vmem:[#allocation7 + $0xb8] sm:$0xff] %v1095_v56  ;;  %v1102_v63 = vld [vmem:[%s1900_s2 + $0x1f0] sm:$0xff]  ;;  %v1103_v0 = vld [vmem:[%s1900_s2 + $0x1f8] sm:$0xff] }
  0x21   :  { %164 = vst [vmem:[#allocation7 + $0xc0] sm:$0xff] %v1096_v57  ;;  %166 = vst [vmem:[#allocation7 + $0xc8] sm:$0xff] %v1097_v58  ;;  %v1622_v1 = vld [vmem:[%s1898_s0] sm:$0xff]  ;;  %v1627_v2 = vld [vmem:[%s1898_s0 + $0x8] sm:$0xff] }
  0x22   :  { %168 = vst [vmem:[#allocation7 + $0xd0] sm:$0xff] %v1098_v59  ;;  %170 = vst [vmem:[#allocation7 + $0xd8] sm:$0xff] %v1099_v60 }
  0x23   :  { %172 = vst [vmem:[#allocation7 + $0xe0] sm:$0xff] %v1100_v61  ;;  %174 = vst [vmem:[#allocation7 + $0xe8] sm:$0xff] %v1101_v62 }
  0x24   :  { %176 = vst [vmem:[#allocation7 + $0xf0] sm:$0xff] %v1102_v63  ;;  %178 = vst [vmem:[#allocation7 + $0xf8] sm:$0xff] %v1103_v0 }
  0x25 LB: > { %v1222_v3 = vld [vmem:[%s1901_s3 + $0xe4] ss:$16 sps:$4 sm:$0xff]   ;;  %v1224_v4 = vld [vmem:[%s1901_s3 + $0xe0] ss:$16 sps:$4 sm:$0xff]   ;;  %v1391_v5 = vmov 0   ;;  %v589_v7 = vstv %s1388_s30  ;;  %s1648_s11 = ssub.s32 7, %s1388_s30  ;;  %s1388_s30 = sphi %s1629_s30, %s231_s30  }
  0x26   : > { %464 = vmatprep.mubr.bf16.mxu0 %v1391_v5  ;;  %507 = vmatprep.mubr.bf16.mxu1 %v1391_v5  ;;  %v1225_v6 = vld [vmem:[%s1901_s3 + $0xc4] ss:$16 sps:$4 sm:$0xff]   ;;  %v1227_v8 = vld [vmem:[%s1901_s3 + $0xc0] ss:$16 sps:$4 sm:$0xff]   ;;  %vm590_vm0 = vcmp.lt.s32.totalorder %v589_v7, %v1622_v1  ;;  %vm591_vm1 = vcmp.lt.s32.totalorder %v589_v7, %v1627_v2  ;;  %v979_v9 = vstv %s1648_s11  ;;  %v1233_v12 = vld [vmem:[%s1901_s3 + $0xec] ss:$16 sps:$4 sm:$0xff]  }
  0x27   : > { %432 = vmatprep.subr.bf16.mxu0 %v1222_v3  ;;  %1220 = vset.pattern.permute.xlu0 %v1391_v5  ;;  %v1228_v10 = vld [vmem:[%s1901_s3 + $0xa4] ss:$16 sps:$4 sm:$0xff]   ;;  %v592_v11 = vsel %vm590_vm0, 1, %v1391_v5  ;;  %vm980_vm2 = vcmp.lt.s32.totalorder %v979_v9, %v1622_v1  ;;  %vm981_vm3 = vcmp.lt.s32.totalorder %v979_v9, %v1627_v2  ;;  %v1236_v14 = vld [vmem:[%s1901_s3 + $0xe8] ss:$16 sps:$4 sm:$0xff]   ;;  %v593_v15 = vsel %vm591_vm1, 1, %v1391_v5 }
  0x28   : > { %433 = vmatpush1.bf16.msra.mxu0 %v1224_v4  ;;  %1221 = vset.pattern.permute.xlu1 %v1391_v5  ;;  %v982_v13 = vsel %vm980_vm2, 1, %v1391_v5  ;;  %v1230_v16 = vld [vmem:[%s1901_s3 + $0xa0] ss:$16 sps:$4 sm:$0xff]   ;;  %v983_v17 = vsel %vm981_vm3, 1, %v1391_v5  ;;  %v1231_v18 = vld [vmem:[%s1901_s3 + $0x84] ss:$16 sps:$4 sm:$0xff]  }
  0x29   : > { %434 = vmatprep.subr.bf16.mxu0 %v1225_v6  ;;  %595 = vperm.xlu0 %1220, %v592_v11   ;;  %v1239_v19 = vld [vmem:[%s1901_s3 + $0xcc] ss:$16 sps:$4 sm:$0xff]   ;;  %v1242_v20 = vld [vmem:[%s1901_s3 + $0xc8] ss:$16 sps:$4 sm:$0xff]   ;;  %v1235_v21 = vld [vmem:[%s1901_s3 + $0x80] ss:$16 sps:$4 sm:$0xff]  }
  0x2a   : > { %985 = vperm.xlu1 %1221, %v982_v13   ;;  %475 = vmatprep.subr.bf16.mxu1 %v1233_v12  ;;  %v1237_v22 = vld [vmem:[%s1901_s3 + $0x64] ss:$16 sps:$4 sm:$0xff]   ;;  %v1245_v23 = vld [vmem:[%s1901_s3 + $0xac] ss:$16 sps:$4 sm:$0xff]   ;;  %v1248_v24 = vld [vmem:[%s1901_s3 + $0xa8] ss:$16 sps:$4 sm:$0xff]  }
  0x2b   : > { %476 = vmatpush1.bf16.msra.mxu1 %v1236_v14  ;;  %v1251_v25 = vld [vmem:[%s1901_s3 + $0x8c] ss:$16 sps:$4 sm:$0xff]   ;;  %v1241_v26 = vld [vmem:[%s1901_s3 + $0x60] ss:$16 sps:$4 sm:$0xff]   ;;  %v1243_v27 = vld [vmem:[%s1901_s3 + $0x44] ss:$16 sps:$4 sm:$0xff]  }
  0x2c   : > { %435 = vmatpush1.bf16.msra.mxu0 %v1227_v8  ;;  %477 = vmatprep.subr.bf16.mxu1 %v1239_v19  ;;  %v1254_v28 = vld [vmem:[%s1901_s3 + $0x88] ss:$16 sps:$4 sm:$0xff]   ;;  %v1257_v29 = vld [vmem:[%s1901_s3 + $0x6c] ss:$16 sps:$4 sm:$0xff]   ;;  %v1247_v30 = vld [vmem:[%s1901_s3 + $0x40] ss:$16 sps:$4 sm:$0xff]  }
  0x2d   : > { %436 = vmatprep.subr.bf16.mxu0 %v1228_v10  ;;  %598 = vperm.xlu0 %1220, %v593_v15   ;;  %v1249_v31 = vld [vmem:[%s1901_s3 + $0x24] ss:$16 sps:$4 sm:$0xff]   ;;  %v1260_v32 = vld [vmem:[%s1901_s3 + $0x68] ss:$16 sps:$4 sm:$0xff]   ;;  %v1261_v33 = vld [vmem:[%s1901_s3 + $0x4c] ss:$16 sps:$4 sm:$0xff]  }
  0x2e   : > { %988 = vperm.xlu1 %1221, %v983_v17   ;;  %v1253_v34 = vld [vmem:[%s1901_s3 + $0x20] ss:$16 sps:$4 sm:$0xff]   ;;  %v1255_v35 = vld [vmem:[%s1901_s3 + $0x4] ss:$16 sps:$4 sm:$0xff]   ;;  %v1266_v36 = vld [vmem:[%s1901_s3 + $0x48] ss:$16 sps:$4 sm:$0xff]  }
  0x2f   : > { %478 = vmatpush1.bf16.msra.mxu1 %v1242_v20  ;;  %v1259_v37 = vld [vmem:[%s1901_s3] ss:$16 sps:$4 sm:$0xff]   ;;  %v1267_v38 = vld [vmem:[%s1901_s3 + $0x2c] ss:$16 sps:$4 sm:$0xff]   ;;  %v1265_v41 = vld [vmem:[%s1902_s4 + $0xe4] ss:$16 sps:$4 sm:$0xff]  }
  0x30   : > { %437 = vmatpush1.bf16.msra.mxu0 %v1230_v16  ;;  %479 = vmatprep.subr.bf16.mxu1 %v1245_v23  ;;  %v1738_v39 = vld [vmem:[#allocation2] sm:$0xff]  ;;  %v1740_v40 = vld [vmem:[#allocation2 + $0x8] sm:$0xff]  ;;  %s1192_s9 = sshll.u32 %s1388_s30, 5  ;;  %s1196_s10 = sshll.u32 %s1648_s11, 5 }
  0x31   : > { %438 = vmatprep.subr.bf16.mxu0 %v1231_v18  ;;  %v1272_v42 = vld [vmem:[%s1901_s3 + $0x28] ss:$16 sps:$4 sm:$0xff]   ;;  %v1273_v43 = vld [vmem:[%s1901_s3 + $0xc] ss:$16 sps:$4 sm:$0xff]   ;;  %v239_v44 = vpack.c.bf16 %v1740_v40, %v1738_v39  ;;  %v1263_v45 = vld [vmem:[%s1902_s4 + $0xe0] ss:$16 sps:$4 sm:$0xff]  }
  0x32   : > { %v1271_v46 = vld [vmem:[%s1902_s4 + $0xc4] ss:$16 sps:$4 sm:$0xff]   ;;  %v1278_v47 = vld [vmem:[%s1901_s3 + $0x8] ss:$16 sps:$4 sm:$0xff]   ;;  %v1284_v48 = vld [vmem:[%s1902_s4 + $0xec] ss:$16 sps:$4 sm:$0xff]  }
  0x33   : > { %480 = vmatpush1.bf16.msra.mxu1 %v1248_v24  ;;  %v1269_v49 = vld [vmem:[%s1902_s4 + $0xc0] ss:$16 sps:$4 sm:$0xff]   ;;  %v1277_v50 = vld [vmem:[%s1902_s4 + $0xa4] ss:$16 sps:$4 sm:$0xff]   ;;  %v1282_v51 = vld [vmem:[%s1902_s4 + $0xe8] ss:$16 sps:$4 sm:$0xff]  }
  0x34   : > { %439 = vmatpush1.bf16.msra.mxu0 %v1235_v21  ;;  %481 = vmatprep.subr.bf16.mxu1 %v1251_v25  ;;  %v1290_v52 = vld [vmem:[%s1902_s4 + $0xcc] ss:$16 sps:$4 sm:$0xff]   ;;  %v1275_v53 = vld [vmem:[%s1902_s4 + $0xa0] ss:$16 sps:$4 sm:$0xff]   ;;  %v1281_v54 = vld [vmem:[%s1902_s4 + $0x84] ss:$16 sps:$4 sm:$0xff]  }
  0x35   : > { %440 = vmatprep.subr.bf16.mxu0 %v1237_v22  ;;  %v1288_v55 = vld [vmem:[%s1902_s4 + $0xc8] ss:$16 sps:$4 sm:$0xff]   ;;  %v1296_v56 = vld [vmem:[%s1902_s4 + $0xac] ss:$16 sps:$4 sm:$0xff]   ;;  %v1279_v57 = vld [vmem:[%s1902_s4 + $0x80] ss:$16 sps:$4 sm:$0xff]  }
  0x36   : > { %v1287_v58 = vld [vmem:[%s1902_s4 + $0x64] ss:$16 sps:$4 sm:$0xff]   ;;  %v1294_v59 = vld [vmem:[%s1902_s4 + $0xa8] ss:$16 sps:$4 sm:$0xff]   ;;  %v1302_v60 = vld [vmem:[%s1902_s4 + $0x8c] ss:$16 sps:$4 sm:$0xff]  }
  0x37   : > { %482 = vmatpush1.bf16.msra.mxu1 %v1254_v28  ;;  %v1285_v61 = vld [vmem:[%s1902_s4 + $0x60] ss:$16 sps:$4 sm:$0xff]   ;;  %v1293_v62 = vld [vmem:[%s1902_s4 + $0x44] ss:$16 sps:$4 sm:$0xff]   ;;  %v1300_v63 = vld [vmem:[%s1902_s4 + $0x88] ss:$16 sps:$4 sm:$0xff]  }
  0x38   : > { %441 = vmatpush1.bf16.msra.mxu0 %v1241_v26  ;;  %483 = vmatprep.subr.bf16.mxu1 %v1257_v29  ;;  %v1308_v0 = vld [vmem:[%s1902_s4 + $0x6c] ss:$16 sps:$4 sm:$0xff]   ;;  %v1291_v3 = vld [vmem:[%s1902_s4 + $0x40] ss:$16 sps:$4 sm:$0xff]   ;;  %v1299_v4 = vld [vmem:[%s1902_s4 + $0x24] ss:$16 sps:$4 sm:$0xff]  }
  0x39   : > { %442 = vmatprep.subr.bf16.mxu0 %v1243_v27  ;;  %v1311_v6 = vld [vmem:[%s1902_s4 + $0x4c] ss:$16 sps:$4 sm:$0xff]   ;;  %v1297_v7 = vld [vmem:[%s1902_s4 + $0x20] ss:$16 sps:$4 sm:$0xff]   ;;  %v1305_v8 = vld [vmem:[%s1902_s4 + $0x4] ss:$16 sps:$4 sm:$0xff]  }
  0x3a   : > { %v1309_v9 = vld [vmem:[%s1902_s4 + $0x48] ss:$16 sps:$4 sm:$0xff]   ;;  %v1314_v10 = vld [vmem:[%s1902_s4 + $0x2c] ss:$16 sps:$4 sm:$0xff]   ;;  %v1303_v11 = vld [vmem:[%s1902_s4] ss:$16 sps:$4 sm:$0xff]  }
  0x3b   : > { %484 = vmatpush1.bf16.msra.mxu1 %v1260_v32  ;;  %v1842_v12 = vld [vmem:[#allocation4 + $0x8] sm:$0xff]  ;;  %v1844_v13 = vld [vmem:[#allocation4] sm:$0xff]  ;;  %s520_s0 = scalar_lea.vmem [#allocation6], %s1192_s9  ;;  %s1859_s12 = scalar_lea.vmem [#allocation7], %s1196_s10 }
  0x3c   : > { %443 = vmatpush1.bf16.msra.mxu0 %v1247_v30  ;;  %485 = vmatprep.subr.bf16.mxu1 %v1261_v33  ;;  %v1312_v14 = vld [vmem:[%s1902_s4 + $0x28] ss:$16 sps:$4 sm:$0xff]   ;;  %v1317_v15 = vld [vmem:[%s1902_s4 + $0xc] ss:$16 sps:$4 sm:$0xff]   ;;  %v629_v16 = vpack.c.bf16 %v1844_v13, %v1842_v12  ;;  %v521_v18 = vld [vmem:[%s520_s0] sm:$0xff]  ;;  %s1195_s13 = sshll.u32 %s1388_s30, 3 }
  0x3d   : > { %444 = vmatprep.subr.bf16.mxu0 %v1249_v31  ;;  %v1315_v17 = vld [vmem:[%s1902_s4 + $0x8] ss:$16 sps:$4 sm:$0xff]   ;;  %v525_v19 = vunpack.c.l.bf16 %v521_v18  ;;  %v523_v20 = vld [vmem:[%s520_s0 + $0x10] sm:$0xff]  ;;  %v526_v21 = vunpack.c.h.bf16 %v521_v18  ;;  %s622_s16 = scalar_lea.vmem %s1903_s5, %s1195_s13  ;;  %s1199_s17 = sshll.u32 %s1648_s11, 3 }
  0x3e   : > { %v529_v24 = vunpack.c.l.bf16 %v523_v20  ;;  %v530_v28 = vunpack.c.h.bf16 %v523_v20  ;;  %v522_v33 = vld [vmem:[%s520_s0 + $0x8] sm:$0xff]  ;;  %s1012_s20 = scalar_lea.vmem %s1904_s6, %s1199_s17  ;;  %s231_s30 = sadd.s32 1, %s1388_s30  }
  0x3f   : > { %486 = vmatpush1.bf16.msra.mxu1 %v1266_v36  ;;  %p228_p0 = scmp.ge.s32.totalorder %s231_s30, 8  }
  0x40   : > { %445 = vmatpush1.bf16.msra.mxu0 %v1253_v34  ;;  %487 = vmatprep.subr.bf16.mxu1 %v1267_v38  ;;  %v528_v38 = vunpack.c.h.bf16 %v522_v33 }
  0x41   : > { %446 = vmatprep.subr.bf16.mxu0 %v1255_v35 }
  0x43   : > { %488 = vmatpush1.bf16.msra.mxu1 %v1272_v42 }
  0x44   : > { %447 = vmatpush1.bf16.msra.mxu0 %v1259_v37  ;;  %489 = vmatprep.subr.bf16.mxu1 %v1273_v43  ;;  %v524_v43 = vld [vmem:[%s520_s0 + $0x18] sm:$0xff] }
  0x45   : > { %822 = vmatprep.subr.bf16.mxu0 %v1265_v41 }
  0x47   : > { %465 = vmatmul.mubr.bf16.vlgmr.msra.gmra.mxu0 %v239_v44  ;;  %490 = vmatpush1.bf16.msra.mxu1 %v1278_v47 }
  0x48   : > { %823 = vmatpush1.bf16.msra.mxu0 %v1263_v45  ;;  %854 = vmatprep.mubr.bf16.mxu0 %v1391_v5 }
  0x49   : > { %824 = vmatprep.subr.bf16.mxu0 %v1271_v46  ;;  %865 = vmatprep.subr.bf16.mxu1 %v1284_v48  ;;  %v532_v46 = vunpack.c.h.bf16 %v524_v43 }
  0x4a   : > { %508 = vmatmul.mubr.bf16.vlgmr.msra.gmra.mxu1 %v239_v44  ;;  %v527_v44 = vunpack.c.l.bf16 %v522_v33 }
  0x4b   : > { %866 = vmatpush1.bf16.msra.mxu1 %v1282_v51  ;;  %897 = vmatprep.mubr.bf16.mxu1 %v1391_v5  ;;  %v1306_v5 = vld [vmem:[%s1902_s4 + $0x68] ss:$16 sps:$4 sm:$0xff]  }
  0x4c   : > { %825 = vmatpush1.bf16.msra.mxu0 %v1269_v49  ;;  %867 = vmatprep.subr.bf16.mxu1 %v1290_v52  ;;  %v531_v52 = vunpack.c.l.bf16 %v524_v43 }
  0x4d   : > { %826 = vmatprep.subr.bf16.mxu0 %v1277_v50 }
  0x4f   : > { %868 = vmatpush1.bf16.msra.mxu1 %v1288_v55 }
  0x50   : > { %827 = vmatpush1.bf16.msra.mxu0 %v1275_v53  ;;  %869 = vmatprep.subr.bf16.mxu1 %v1296_v56 }
  0x51   : > { %828 = vmatprep.subr.bf16.mxu0 %v1281_v54 }
  0x53   : > { %870 = vmatpush1.bf16.msra.mxu1 %v1294_v59 }
  0x54   : > { %829 = vmatpush1.bf16.msra.mxu0 %v1279_v57  ;;  %871 = vmatprep.subr.bf16.mxu1 %v1302_v60 }
  0x55   : > { %830 = vmatprep.subr.bf16.mxu0 %v1287_v58 }
  0x57   : > { %872 = vmatpush1.bf16.msra.mxu1 %v1300_v63 }
  0x58   : > { %831 = vmatpush1.bf16.msra.mxu0 %v1285_v61  ;;  %873 = vmatprep.subr.bf16.mxu1 %v1308_v0  ;;  %v913_v0 = vld [vmem:[%s1859_s12 + $0x10] sm:$0xff] }
  0x59   : > { %832 = vmatprep.subr.bf16.mxu0 %v1293_v62  ;;  %v911_v62 = vld [vmem:[%s1859_s12] sm:$0xff] }
  0x5a   : > { %v915_v63 = vunpack.c.l.bf16 %v911_v62 }
  0x5b   : > { %874 = vmatpush1.bf16.msra.mxu1 %v1306_v5 }
  0x5c   : > { %833 = vmatpush1.bf16.msra.mxu0 %v1291_v3  ;;  %875 = vmatprep.subr.bf16.mxu1 %v1311_v6  ;;  %v916_v3 = vunpack.c.h.bf16 %v911_v62 }
  0x5d   : > { %834 = vmatprep.subr.bf16.mxu0 %v1299_v4 }
  0x5f   : > { %876 = vmatpush1.bf16.msra.mxu1 %v1309_v9 }
  0x60   : > { %835 = vmatpush1.bf16.msra.mxu0 %v1297_v7  ;;  %877 = vmatprep.subr.bf16.mxu1 %v1314_v10 }
  0x61   : > { %836 = vmatprep.subr.bf16.mxu0 %v1305_v8  ;;  %v919_v8 = vunpack.c.l.bf16 %v913_v0 }
  0x63   : > { %878 = vmatpush1.bf16.msra.mxu1 %v1312_v14  ;;  %v237_v14 = vld [vmem:[#allocation3 + $0x8] sm:$0xff] }
  0x64   : > { %837 = vmatpush1.bf16.msra.mxu0 %v1303_v11  ;;  %879 = vmatprep.subr.bf16.mxu1 %v1317_v15 }
  0x67   : > { %855 = vmatmul.mubr.bf16.vlgmr.msra.gmra.mxu0 %v629_v16  ;;  %880 = vmatpush1.bf16.msra.mxu1 %v1315_v17  ;;  %v920_v17 = vunpack.c.h.bf16 %v913_v0 }
  0x6a   : > { %898 = vmatmul.mubr.bf16.vlgmr.msra.gmra.mxu1 %v629_v16 }
  0xa4   : > { %v1863_v9 = vpop.permute.xlu0 %595 }
  0xa5   : > { %vm600_vm4 = vcmp.eq.s32.totalorder %v1863_v9, 1 }
 0x107   : > { %v466_v22 = vpop.f32.mrf.mxu0 }
 0x108   : > { %v533_v23 = vadd.f32 %v525_v19, %v466_v22 }
 0x109   : > { %v468_v25 = vpop.f32.mrf.mxu0 }
 0x10a   : > { %v1138_v26 = vmul.f32 -1.442695, %v533_v23  ;;  %v534_v27 = vadd.f32 %v526_v21, %v468_v25  ;;  %v509_v32 = vpop.f32.mrf.mxu1 }
 0x10b   : > { %v470_v29 = vpop.f32.mrf.mxu0  ;;  %v535_v48 = vadd.f32 %v527_v44, %v509_v32 }
 0x10c   : > { %1318 = vpow2.f32 %v1138_v26  ;;  %v1140_v30 = vmul.f32 -1.442695, %v534_v27  ;;  %v537_v31 = vadd.f32 %v529_v24, %v470_v29  ;;  %v511_v37 = vpop.f32.mrf.mxu1  ;;  %v912_v27 = vld [vmem:[%s1859_s12 + $0x8] sm:$0xff] }
 0x10d   : > { %v472_v34 = vpop.f32.mrf.mxu0  ;;  %v536_v45 = vadd.f32 %v528_v38, %v511_v37 }
 0x10e   : > { %1320 = vpow2.f32 %v1140_v30  ;;  %v1139_v35 = vmul.f32 -1.442695, %v537_v31  ;;  %v538_v36 = vadd.f32 %v530_v28, %v472_v34  ;;  %v513_v42 = vpop.f32.mrf.mxu1  ;;  %v238_v30 = vld [vmem:[#allocation3] sm:$0xff] }
 0x10f   : > { %v1142_v49 = vmul.f32 -1.442695, %v536_v45  ;;  %v539_v58 = vadd.f32 %v531_v52, %v513_v42  ;;  %v918_v42 = vunpack.c.h.bf16 %v912_v27 }
 0x110   : > { %1322 = vpow2.f32 %v1139_v35  ;;  %v1141_v41 = vmul.f32 -1.442695, %v538_v36  ;;  %v515_v47 = vpop.f32.mrf.mxu1  ;;  %v599_v35 = vpop.permute.xlu0 %598 }
 0x111   : > { %v540_v50 = vadd.f32 %v532_v46, %v515_v47  ;;  %v914_v47 = vld [vmem:[%s1859_s12 + $0x18] sm:$0xff]  ;;  %vm601_vm5 = vcmp.eq.s32.totalorder %v599_v35, 1 }
 0x112   : > { %1324 = vpow2.f32 %v1141_v41 }
 0x113   : > { %1326 = vtanh.f32 %v535_v48  ;;  %v1143_v55 = vmul.f32 -1.442695, %v540_v50 }
 0x114   : > { %1328 = vpow2.f32 %v1142_v49  ;;  %v917_v49 = vunpack.c.l.bf16 %v912_v27 }
 0x119   : > { %v1319_v51 = vpop.eup %1318 }
 0x11a   : > { %v547_v53 = vadd.f32 1.0, %v1319_v51  ;;  %v922_v51 = vunpack.c.h.bf16 %v914_v47 }
 0x11b   : > { %v1321_v54 = vpop.eup %1320 }
 0x11c   : > { %1330 = vrcp.f32 %v547_v53  ;;  %v559_v56 = vadd.f32 1.0, %v1321_v54 }
 0x11d   : > { %v1323_v57 = vpop.eup %1322 }
 0x11e   : > { %1332 = vrcp.f32 %v559_v56  ;;  %v548_v59 = vadd.f32 1.0, %v1323_v57 }
 0x11f   : > { %v1325_v60 = vpop.eup %1324  ;;  %1334 = vpow2.f32 %v1143_v55 }
 0x120   : > { %1336 = vrcp.f32 %v548_v59  ;;  %v560_v61 = vadd.f32 1.0, %v1325_v60  ;;  %v1327_v4 = vpop.eup %1326 }
 0x121   : > { %1338 = vtanh.f32 %v539_v58  ;;  %v1329_v6 = vpop.eup %1328  ;;  %v921_v58 = vunpack.c.l.bf16 %v914_v47 }
 0x122   : > { %1340 = vrcp.f32 %v560_v61  ;;  %v573_v20 = vadd.f32 1.0, %v1329_v6 }
 0x127   : > { %v856_v5 = vpop.f32.mrf.mxu0 }
 0x128   : > { %v923_v7 = vadd.f32 %v915_v63, %v856_v5 }
 0x129   : > { %v1331_v10 = vpop.eup %1330  ;;  %v858_v11 = vpop.f32.mrf.mxu0 }
 0x12a   : > { %v1182_v15 = vmul.f32 -1.442695, %v923_v7  ;;  %v924_v16 = vadd.f32 %v916_v3, %v858_v11  ;;  %v581_v18 = vmul.f32 %v1331_v10, %v1327_v4  ;;  %v899_v26 = vpop.f32.mrf.mxu1 }
 0x12b   : > { %v1333_v19 = vpop.eup %1332  ;;  %v860_v21 = vpop.f32.mrf.mxu0  ;;  %v925_v54 = vadd.f32 %v917_v49, %v899_v26 }
 0x12c   : > { %v1335_v22 = vpop.eup %1334  ;;  %1342 = vpow2.f32 %v1182_v15  ;;  %v1184_v23 = vmul.f32 -1.442695, %v924_v16  ;;  %v927_v24 = vadd.f32 %v919_v8, %v860_v21  ;;  %v579_v25 = vmul.f32 %v1333_v19, %v237_v14  ;;  %v901_v36 = vpop.f32.mrf.mxu1 }
 0x12d   : > { %v1337_v28 = vpop.eup %1336  ;;  %v862_v29 = vpop.f32.mrf.mxu0  ;;  %v574_v38 = vadd.f32 1.0, %v1335_v22  ;;  %v926_v50 = vadd.f32 %v918_v42, %v901_v36 }
 0x12e   : > { %v1339_v31 = vpop.eup %1338  ;;  %1344 = vpow2.f32 %v1184_v23  ;;  %v1183_v32 = vmul.f32 -1.442695, %v927_v24  ;;  %v928_v33 = vadd.f32 %v920_v17, %v862_v29  ;;  %v583_v34 = vadd.f32 %v581_v18, %v579_v25  ;;  %v903_v46 = vpop.f32.mrf.mxu1  ;;  %v627_v23 = vld [vmem:[#allocation5] sm:$0xff]  ;;  %v628_v29 = vld [vmem:[#allocation5 + $0x8] sm:$0xff] }
 0x12f   : > { %v1341_v37 = vpop.eup %1340  ;;  %1346 = vrcp.f32 %v573_v20  ;;  %v582_v41 = vmul.f32 %v1339_v31, %v1337_v28  ;;  %v1186_v55 = vmul.f32 -1.442695, %v926_v50  ;;  %v929_v3 = vadd.f32 %v921_v58, %v903_v46  ;;  %v986_v21 = vpop.permute.xlu1 %985 }
 0x130   : > { %1348 = vpow2.f32 %v1183_v32  ;;  %v1185_v43 = vmul.f32 -1.442695, %v928_v33  ;;  %v602_v44 = vsel %vm600_vm4, %v583_v34, %v237_v14  ;;  %v580_v45 = vmul.f32 %v1341_v37, %v238_v30  ;;  %v905_v53 = vpop.f32.mrf.mxu1 }
 0x131   : > { %1350 = vtanh.f32 %v583_v34  ;;  %604 = vst [vmem:[#allocation3 + $0x8] sm:$0xff] %v602_v44  ;;  %v930_v56 = vadd.f32 %v922_v51, %v905_v53  ;;  %vm990_vm6 = vcmp.eq.s32.totalorder %v986_v21, 1 }
 0x132   : > { %1352 = vpow2.f32 %v1185_v43  ;;  %v584_v48 = vadd.f32 %v582_v41, %v580_v45 }
 0x133   : > { %1354 = vrcp.f32 %v574_v38  ;;  %v1187_v61 = vmul.f32 -1.442695, %v930_v56  ;;  %v989_v31 = vpop.permute.xlu1 %988 }
 0x134   : > { %1356 = vtanh.f32 %v584_v48  ;;  %v603_v52 = vsel %vm601_vm5, %v584_v48, %v238_v30  ;;  %vm991_vm7 = vcmp.eq.s32.totalorder %v989_v31, 1 }
 0x135   : > { %605 = vst [vmem:[#allocation3] sm:$0xff] %v603_v52  ;;  %1358 = vtanh.f32 %v925_v54 }
 0x136   : > { %1360 = vpow2.f32 %v1186_v55 }
 0x139   : > { %v1343_v57 = vpop.eup %1342 }
 0x13a   : > { %v937_v59 = vadd.f32 1.0, %v1343_v57 }
 0x13b   : > { %v1345_v60 = vpop.eup %1344 }
 0x13c   : > { %v1347_v62 = vpop.eup %1346  ;;  %1362 = vrcp.f32 %v937_v59  ;;  %v949_v63 = vadd.f32 1.0, %v1345_v60 }
 0x13d   : > { %v1349_v0 = vpop.eup %1348 }
 0x13e   : > { %v1351_v4 = vpop.eup %1350  ;;  %1364 = vrcp.f32 %v949_v63  ;;  %v938_v5 = vadd.f32 1.0, %v1349_v0 }
 0x13f   : > { %v1353_v6 = vpop.eup %1352  ;;  %v587_v7 = vmul.f32 %v1351_v4, %v1347_v62  ;;  %1366 = vpow2.f32 %v1187_v61 }
 0x140   : > { %v1355_v8 = vpop.eup %1354  ;;  %1368 = vrcp.f32 %v938_v5  ;;  %v950_v10 = vadd.f32 1.0, %v1353_v6 }
 0x141   : > { %v1357_v11 = vpop.eup %1356  ;;  %v606_v14 = vsel %vm600_vm4, %v587_v7, %v1738_v39  ;;  %1370 = vtanh.f32 %v929_v3  ;;  %v610_v16 = vsel %vm600_vm4, %v587_v7, 0.0 }
 0x142   : > { %1372 = vrcp.f32 %v950_v10  ;;  %608 = vst [vmem:[#allocation2] sm:$0xff] %v606_v14  ;;  %v588_v15 = vmul.f32 %v1357_v11, %v1355_v8  ;;  %v1359_v39 = vpop.eup %1358 }
 0x143   : > { %v1361_v20 = vpop.eup %1360 }
 0x144   : > { %v607_v17 = vsel %vm601_vm5, %v588_v15, %v1740_v40  ;;  %v611_v18 = vsel %vm601_vm5, %v588_v15, 0.0  ;;  %v963_v9 = vadd.f32 1.0, %v1361_v20 }
 0x145   : > { %609 = vst [vmem:[#allocation2 + $0x8] sm:$0xff] %v607_v17  ;;  %v1203_v19 = vpack.c.bf16 %v611_v18, %v610_v16 }
 0x146   : > { %1374 = vrcp.f32 %v963_v9 }
 0x147   : > { %1204 = vst [vmem:[%s622_s16] sm:$0xff] %v1203_v19  }
 0x149   : > { %v1363_v22 = vpop.eup %1362 }
 0x14a   : > { %v971_v27 = vmul.f32 %v1363_v22, %v1359_v39 }
 0x14b   : > { %v1365_v24 = vpop.eup %1364 }
 0x14c   : > { %v1367_v25 = vpop.eup %1366  ;;  %v969_v26 = vmul.f32 %v1365_v24, %v627_v23 }
 0x14d   : > { %v1369_v28 = vpop.eup %1368  ;;  %v964_v33 = vadd.f32 1.0, %v1367_v25 }
 0x14e   : > { %v1371_v30 = vpop.eup %1370  ;;  %v973_v40 = vadd.f32 %v971_v27, %v969_v26 }
 0x14f   : > { %v1373_v32 = vpop.eup %1372  ;;  %v972_v36 = vmul.f32 %v1371_v30, %v1369_v28 }
 0x150   : > { %1376 = vtanh.f32 %v973_v40  ;;  %v992_v34 = vsel %vm990_vm6, %v973_v40, %v627_v23  ;;  %v970_v35 = vmul.f32 %v1373_v32, %v628_v29 }
 0x151   : > { %994 = vst [vmem:[#allocation5] sm:$0xff] %v992_v34  ;;  %1378 = vrcp.f32 %v964_v33 }
 0x152   : > { %v974_v37 = vadd.f32 %v972_v36, %v970_v35 }
 0x153   : > { %v1375_v41 = vpop.eup %1374 }
 0x154   : > { %1380 = vtanh.f32 %v974_v37  ;;  %v993_v38 = vsel %vm991_vm7, %v974_v37, %v628_v29 }
 0x155   : > { %995 = vst [vmem:[#allocation5 + $0x8] sm:$0xff] %v993_v38 }
 0x15d   : > { %v1377_v42 = vpop.eup %1376 }
 0x15e   : > { %v977_v43 = vmul.f32 %v1377_v42, %v1375_v41  ;;  %v1379_v44 = vpop.eup %1378 }
 0x160   : > { %v996_v45 = vsel %vm990_vm6, %v977_v43, %v1842_v12  ;;  %v1000_v48 = vsel %vm990_vm6, %v977_v43, 0.0 }
 0x161   : > { %v1381_v46 = vpop.eup %1380  ;;  %998 = vst [vmem:[#allocation4 + $0x8] sm:$0xff] %v996_v45 }
 0x162   : > { %v978_v47 = vmul.f32 %v1381_v46, %v1379_v44 }
 0x163   :  { %230 = sbr.rel (!%p228_p0) target bundleno = 37 (0x25), region = 122 }
 0x164   : > { %v997_v49 = vsel %vm991_vm7, %v978_v47, %v1844_v13  ;;  %v1001_v50 = vsel %vm991_vm7, %v978_v47, 0.0 }
 0x165   : > { %999 = vst [vmem:[#allocation4] sm:$0xff] %v997_v49  ;;  %v1208_v51 = vpack.c.bf16 %v1001_v50, %v1000_v48 }
 0x167   : > { %1209 = vst [vmem:[%s1012_s20] sm:$0xff] %v1208_v51  }

// kernel: _forward_impl.7
= control target key start
LH: loop header
LB: loop body
LE: loop exit
PB: predicated region body
PF: predicated region fallthrough
CT: control target
= control target key end

     0   :  { %v2732_v3 = vmov 0   ;;  %s4098_s3 = inlined_call_operand.vmem [shape: bf16[128,1024], index: 3, kind: input, shape index: {}]   ;;  %s4099_s1 = inlined_call_operand.vmem [shape: bf16[128,128], index: 1, kind: input, shape index: {}]   ;;  %s4100_s0 = inlined_call_operand.vmem [shape: bf16[128,128], index: 0, kind: input, shape index: {}]   ;;  %s4101_s2 = inlined_call_operand.vmem [shape: bf16[128,1024], index: 2, kind: input, shape index: {}]   ;;  %s4102_s4 = inlined_call_operand.vmem [shape: f32[1,1024], index: 4, kind: input, shape index: {}]   ;;  %s4103_s5 = inlined_call_operand.vmem [shape: bf16[128,1024], index: 5, kind: output, shape index: {}]  }
   0x1   :  { %v173_v0 = vld [vmem:[%s4098_s3 + $0x1c0] sm:$0xff]  ;;  %v174_v2 = vld [vmem:[%s4098_s3 + $0x1c8] sm:$0xff]  ;;  %581 = vmatprep.mubr.bf16.mxu0 %v2732_v3  ;;  %694 = vmatprep.mubr.bf16.mxu1 %v2732_v3  ;;  %v175_v63 = vld [vmem:[%s4098_s3 + $0x1d0] sm:$0xff] }
   0x2   :  { %v177_v1 = vld [vmem:[%s4098_s3 + $0x1e0] sm:$0xff]  ;;  %v178_v5 = vld [vmem:[%s4098_s3 + $0x1e8] sm:$0xff] }
   0x3   :  { %v2508_v4 = vcombine.high %v173_v0, %v177_v1  ;;  %v2507_v6 = vcombine.low %v173_v0, %v177_v1  ;;  %v165_v7 = vld [vmem:[%s4098_s3 + $0x180] sm:$0xff]  ;;  %v2510_v9 = vcombine.high %v174_v2, %v178_v5  ;;  %v2509_v10 = vcombine.low %v174_v2, %v178_v5  ;;  %v166_v12 = vld [vmem:[%s4098_s3 + $0x188] sm:$0xff]  ;;  %v179_v0 = vld [vmem:[%s4098_s3 + $0x1f0] sm:$0xff] }
   0x4   :  { %v169_v8 = vld [vmem:[%s4098_s3 + $0x1a0] sm:$0xff]  ;;  %v170_v13 = vld [vmem:[%s4098_s3 + $0x1a8] sm:$0xff]  ;;  %v176_v1 = vld [vmem:[%s4098_s3 + $0x1d8] sm:$0xff] }
   0x5   :  { %v2500_v11 = vcombine.high %v165_v7, %v169_v8  ;;  %v157_v14 = vld [vmem:[%s4098_s3 + $0x140] sm:$0xff]  ;;  %549 = vmatprep.subr.bf16.mxu0 %v2508_v4  ;;  %v2502_v15 = vcombine.high %v166_v12, %v170_v13  ;;  %v158_v17 = vld [vmem:[%s4098_s3 + $0x148] sm:$0xff]  ;;  %662 = vmatprep.subr.bf16.mxu1 %v2510_v9  ;;  %v2499_v19 = vcombine.low %v165_v7, %v169_v8  ;;  %v180_v2 = vld [vmem:[%s4098_s3 + $0x1f8] sm:$0xff] }
   0x6   :  { %v161_v16 = vld [vmem:[%s4098_s3 + $0x160] sm:$0xff]  ;;  %v162_v18 = vld [vmem:[%s4098_s3 + $0x168] sm:$0xff]  ;;  %550 = vmatpush1.bf16.msra.mxu0 %v2507_v6  ;;  %663 = vmatpush1.bf16.msra.mxu1 %v2509_v10  ;;  %v2501_v20 = vcombine.low %v166_v12, %v170_v13  ;;  %v2512_v6 = vcombine.high %v175_v63, %v179_v0  ;;  %v2514_v7 = vcombine.high %v176_v1, %v180_v2  ;;  %v167_v9 = vld [vmem:[%s4098_s3 + $0x190] sm:$0xff] }
   0x7   :  { %551 = vmatprep.subr.bf16.mxu0 %v2500_v11  ;;  %v2492_v21 = vcombine.high %v157_v14, %v161_v16  ;;  %664 = vmatprep.subr.bf16.mxu1 %v2502_v15  ;;  %v2494_v22 = vcombine.high %v158_v17, %v162_v18  ;;  %v149_v23 = vld [vmem:[%s4098_s3 + $0x100] sm:$0xff]  ;;  %v150_v25 = vld [vmem:[%s4098_s3 + $0x108] sm:$0xff]  ;;  %v2491_v27 = vcombine.low %v157_v14, %v161_v16  ;;  %v171_v10 = vld [vmem:[%s4098_s3 + $0x1b0] sm:$0xff] }
   0x8   :  { %v153_v24 = vld [vmem:[%s4098_s3 + $0x120] sm:$0xff]  ;;  %v154_v26 = vld [vmem:[%s4098_s3 + $0x128] sm:$0xff]  ;;  %v2493_v28 = vcombine.low %v158_v17, %v162_v18  ;;  %v2511_v11 = vcombine.low %v175_v63, %v179_v0  ;;  %v168_v12 = vld [vmem:[%s4098_s3 + $0x198] sm:$0xff]  ;;  %v2513_v14 = vcombine.low %v176_v1, %v180_v2  ;;  %v2504_v15 = vcombine.high %v167_v9, %v171_v10 }
   0x9   :  { %v2484_v29 = vcombine.high %v149_v23, %v153_v24  ;;  %v2486_v30 = vcombine.high %v150_v25, %v154_v26  ;;  %v141_v31 = vld [vmem:[%s4098_s3 + $0xc0] sm:$0xff]  ;;  %v142_v33 = vld [vmem:[%s4098_s3 + $0xc8] sm:$0xff]  ;;  %v2483_v35 = vcombine.low %v149_v23, %v153_v24  ;;  %v2485_v36 = vcombine.low %v150_v25, %v154_v26  ;;  %v172_v13 = vld [vmem:[%s4098_s3 + $0x1b8] sm:$0xff] }
   0xa   :  { %552 = vmatpush1.bf16.msra.mxu0 %v2499_v19  ;;  %665 = vmatpush1.bf16.msra.mxu1 %v2501_v20  ;;  %v145_v32 = vld [vmem:[%s4098_s3 + $0xe0] sm:$0xff]  ;;  %v146_v34 = vld [vmem:[%s4098_s3 + $0xe8] sm:$0xff]  ;;  %v159_v16 = vld [vmem:[%s4098_s3 + $0x150] sm:$0xff]  ;;  %v2506_v18 = vcombine.high %v168_v12, %v172_v13 }
   0xb   :  { %553 = vmatprep.subr.bf16.mxu0 %v2492_v21  ;;  %666 = vmatprep.subr.bf16.mxu1 %v2494_v22  ;;  %v2476_v37 = vcombine.high %v141_v31, %v145_v32  ;;  %v2478_v38 = vcombine.high %v142_v33, %v146_v34  ;;  %v133_v39 = vld [vmem:[%s4098_s3 + $0x80] sm:$0xff]  ;;  %v134_v41 = vld [vmem:[%s4098_s3 + $0x88] sm:$0xff]  ;;  %v2475_v43 = vcombine.low %v141_v31, %v145_v32  ;;  %v163_v17 = vld [vmem:[%s4098_s3 + $0x170] sm:$0xff] }
   0xc   :  { %v137_v40 = vld [vmem:[%s4098_s3 + $0xa0] sm:$0xff]  ;;  %v138_v42 = vld [vmem:[%s4098_s3 + $0xa8] sm:$0xff]  ;;  %v2477_v44 = vcombine.low %v142_v33, %v146_v34  ;;  %v160_v19 = vld [vmem:[%s4098_s3 + $0x158] sm:$0xff]  ;;  %v2503_v21 = vcombine.low %v167_v9, %v171_v10  ;;  %v2505_v22 = vcombine.low %v168_v12, %v172_v13  ;;  %v2496_v23 = vcombine.high %v159_v16, %v163_v17 }
   0xd   :  { %v2468_v45 = vcombine.high %v133_v39, %v137_v40  ;;  %v2470_v46 = vcombine.high %v134_v41, %v138_v42  ;;  %v125_v47 = vld [vmem:[%s4098_s3 + $0x40] sm:$0xff]  ;;  %v126_v49 = vld [vmem:[%s4098_s3 + $0x48] sm:$0xff]  ;;  %v2467_v51 = vcombine.low %v133_v39, %v137_v40  ;;  %v2469_v52 = vcombine.low %v134_v41, %v138_v42  ;;  %v164_v20 = vld [vmem:[%s4098_s3 + $0x178] sm:$0xff] }
   0xe   :  { %554 = vmatpush1.bf16.msra.mxu0 %v2491_v27  ;;  %667 = vmatpush1.bf16.msra.mxu1 %v2493_v28  ;;  %v129_v48 = vld [vmem:[%s4098_s3 + $0x60] sm:$0xff]  ;;  %v130_v50 = vld [vmem:[%s4098_s3 + $0x68] sm:$0xff]  ;;  %v2498_v25 = vcombine.high %v160_v19, %v164_v20  ;;  %v151_v26 = vld [vmem:[%s4098_s3 + $0x110] sm:$0xff]  ;;  %v2497_v31 = vcombine.low %v160_v19, %v164_v20 }
   0xf   :  { %555 = vmatprep.subr.bf16.mxu0 %v2484_v29  ;;  %668 = vmatprep.subr.bf16.mxu1 %v2486_v30  ;;  %v2460_v53 = vcombine.high %v125_v47, %v129_v48  ;;  %v117_v54 = vld [vmem:[%s4098_s3] sm:$0xff]  ;;  %v2462_v55 = vcombine.high %v126_v49, %v130_v50  ;;  %v118_v57 = vld [vmem:[%s4098_s3 + $0x8] sm:$0xff]  ;;  %v2459_v59 = vcombine.low %v125_v47, %v129_v48  ;;  %v155_v27 = vld [vmem:[%s4098_s3 + $0x130] sm:$0xff] }
  0x10   :  { %v121_v56 = vld [vmem:[%s4098_s3 + $0x20] sm:$0xff]  ;;  %v122_v58 = vld [vmem:[%s4098_s3 + $0x28] sm:$0xff]  ;;  %v2461_v60 = vcombine.low %v126_v49, %v130_v50  ;;  %v152_v28 = vld [vmem:[%s4098_s3 + $0x118] sm:$0xff]  ;;  %v2495_v30 = vcombine.low %v159_v16, %v163_v17  ;;  %v2488_v32 = vcombine.high %v151_v26, %v155_v27  ;;  %v2487_v39 = vcombine.low %v151_v26, %v155_v27 }
  0x11   :  { %v2452_v61 = vcombine.high %v117_v54, %v121_v56  ;;  %v2454_v62 = vcombine.high %v118_v57, %v122_v58  ;;  %v2451_v4 = vcombine.low %v117_v54, %v121_v56  ;;  %v2453_v5 = vcombine.low %v118_v57, %v122_v58  ;;  %v2876_v8 = vld [vmem:[%s4099_s1] sm:$0xff]   ;;  %v2909_v24 = vld [vmem:[%s4099_s1 + $0x8] sm:$0xff]   ;;  %v156_v29 = vld [vmem:[%s4098_s3 + $0x138] sm:$0xff] }
  0x12   :  { %556 = vmatpush1.bf16.msra.mxu0 %v2483_v35  ;;  %669 = vmatpush1.bf16.msra.mxu1 %v2485_v36  ;;  %v143_v33 = vld [vmem:[%s4098_s3 + $0xd0] sm:$0xff]  ;;  %v2490_v34 = vcombine.high %v152_v28, %v156_v29  ;;  %v144_v36 = vld [vmem:[%s4098_s3 + $0xd8] sm:$0xff]  ;;  %v2489_v42 = vcombine.low %v152_v28, %v156_v29  ;;  %v98_v9 = vld [vmem:[%s4101_s2 + $0x1e8] sm:$0xff] }
  0x13   :  { %557 = vmatprep.subr.bf16.mxu0 %v2476_v37  ;;  %670 = vmatprep.subr.bf16.mxu1 %v2478_v38  ;;  %v147_v35 = vld [vmem:[%s4098_s3 + $0xf0] sm:$0xff]  ;;  %v148_v37 = vld [vmem:[%s4098_s3 + $0xf8] sm:$0xff]  ;;  %v3008_v13 = vld [vmem:[%s4099_s1 + $0x20] sm:$0xff]  }
  0x14   :  { %v2942_v38 = vld [vmem:[%s4099_s1 + $0x10] sm:$0xff]   ;;  %v2479_v47 = vcombine.low %v143_v33, %v147_v35  ;;  %v2481_v48 = vcombine.low %v144_v36, %v148_v37  ;;  %v132_v54 = vld [vmem:[%s4098_s3 + $0x78] sm:$0xff]  ;;  %v89_v19 = vld [vmem:[%s4101_s2 + $0x1a0] sm:$0xff] }
  0x15   :  { %v135_v40 = vld [vmem:[%s4098_s3 + $0x90] sm:$0xff]  ;;  %v2975_v58 = vld [vmem:[%s4099_s1 + $0x18] sm:$0xff]   ;;  %v77_v26 = vld [vmem:[%s4101_s2 + $0x140] sm:$0xff] }
  0x16   :  { %558 = vmatpush1.bf16.msra.mxu0 %v2475_v43  ;;  %671 = vmatpush1.bf16.msra.mxu1 %v2477_v44  ;;  %v139_v41 = vld [vmem:[%s4098_s3 + $0xb0] sm:$0xff]  ;;  %v2480_v43 = vcombine.high %v143_v33, %v147_v35  ;;  %v136_v44 = vld [vmem:[%s4098_s3 + $0x98] sm:$0xff]  ;;  %v81_v27 = vld [vmem:[%s4101_s2 + $0x160] sm:$0xff] }
  0x17   :  { %559 = vmatprep.subr.bf16.mxu0 %v2468_v45  ;;  %672 = vmatprep.subr.bf16.mxu1 %v2470_v46  ;;  %v140_v45 = vld [vmem:[%s4098_s3 + $0xb8] sm:$0xff]  ;;  %v2482_v46 = vcombine.high %v144_v36, %v148_v37  ;;  %v2472_v49 = vcombine.high %v135_v40, %v139_v41  ;;  %v3026_v16 = vld [vmem:[%s4099_s1 + $0x30] sm:$0xff]   ;;  %v78_v29 = vld [vmem:[%s4101_s2 + $0x148] sm:$0xff]  ;;  %v2564_v33 = vcombine.high %v77_v26, %v81_v27 }
  0x18   :  { %v2474_v50 = vcombine.high %v136_v44, %v140_v45  ;;  %v2473_v56 = vcombine.low %v136_v44, %v140_v45  ;;  %v124_v63 = vld [vmem:[%s4098_s3 + $0x38] sm:$0xff]  ;;  %v69_v35 = vld [vmem:[%s4101_s2 + $0x100] sm:$0xff]  ;;  %v70_v36 = vld [vmem:[%s4101_s2 + $0x108] sm:$0xff] }
  0x19   :  { %v3035_v17 = vld [vmem:[%s4099_s1 + $0x38] sm:$0xff]   ;;  %v74_v37 = vld [vmem:[%s4101_s2 + $0x128] sm:$0xff]  ;;  %v65_v44 = vld [vmem:[%s4101_s2 + $0xe0] sm:$0xff] }
  0x1a   :  { %560 = vmatpush1.bf16.msra.mxu0 %v2467_v51  ;;  %673 = vmatpush1.bf16.msra.mxu1 %v2469_v52  ;;  %v127_v51 = vld [vmem:[%s4098_s3 + $0x50] sm:$0xff]  ;;  %v62_v45 = vld [vmem:[%s4101_s2 + $0xc8] sm:$0xff] }
  0x1b   :  { %561 = vmatprep.subr.bf16.mxu0 %v2460_v53  ;;  %674 = vmatprep.subr.bf16.mxu1 %v2462_v55  ;;  %v131_v52 = vld [vmem:[%s4098_s3 + $0x70] sm:$0xff]  ;;  %v128_v53 = vld [vmem:[%s4098_s3 + $0x58] sm:$0xff]  ;;  %v2471_v55 = vcombine.low %v135_v40, %v139_v41 }
  0x1c   :  { %v2464_v57 = vcombine.high %v127_v51, %v131_v52  ;;  %v2463_v0 = vcombine.low %v127_v51, %v131_v52  ;;  %v2465_v1 = vcombine.low %v128_v53, %v132_v54  ;;  %v57_v51 = vld [vmem:[%s4101_s2 + $0xa0] sm:$0xff]  ;;  %v54_v52 = vld [vmem:[%s4101_s2 + $0x88] sm:$0xff] }
  0x1e   :  { %562 = vmatpush1.bf16.msra.mxu0 %v2459_v59  ;;  %675 = vmatpush1.bf16.msra.mxu1 %v2461_v60  ;;  %v2466_v59 = vcombine.high %v128_v53, %v132_v54  ;;  %v119_v60 = vld [vmem:[%s4098_s3 + $0x10] sm:$0xff]  ;;  %v58_v53 = vld [vmem:[%s4101_s2 + $0xa8] sm:$0xff] }
  0x1f   :  { %563 = vmatprep.subr.bf16.mxu0 %v2452_v61  ;;  %676 = vmatprep.subr.bf16.mxu1 %v2454_v62  ;;  %v123_v61 = vld [vmem:[%s4098_s3 + $0x30] sm:$0xff]  ;;  %v120_v62 = vld [vmem:[%s4098_s3 + $0x18] sm:$0xff] }
  0x20   :  { %v2456_v2 = vcombine.high %v119_v60, %v123_v61  ;;  %v2455_v10 = vcombine.low %v119_v60, %v123_v61  ;;  %v49_v60 = vld [vmem:[%s4101_s2 + $0x60] sm:$0xff]  ;;  %v46_v61 = vld [vmem:[%s4101_s2 + $0x48] sm:$0xff] }
  0x22   :  { %564 = vmatpush1.bf16.msra.mxu0 %v2451_v4  ;;  %677 = vmatpush1.bf16.msra.mxu1 %v2453_v5  ;;  %v2458_v4 = vcombine.high %v120_v62, %v124_v63  ;;  %v93_v5 = vld [vmem:[%s4101_s2 + $0x1c0] sm:$0xff] }
  0x23   :  { %775 = vmatprep.subr.bf16.mxu0 %v2512_v6  ;;  %888 = vmatprep.subr.bf16.mxu1 %v2514_v7  ;;  %v97_v6 = vld [vmem:[%s4101_s2 + $0x1e0] sm:$0xff]  ;;  %v94_v7 = vld [vmem:[%s4101_s2 + $0x1c8] sm:$0xff] }
  0x24   :  { %v2580_v12 = vcombine.high %v93_v5, %v97_v6  ;;  %v2579_v20 = vcombine.low %v93_v5, %v97_v6  ;;  %v38_v5 = vld [vmem:[%s4101_s2 + $0x8] sm:$0xff] }
  0x25   :  { %582 = vmatmul.mubr.bf16.vlgmr.msra.gmra.mxu0 %v2876_v8  ;;  %695 = vmatmul.mubr.bf16.vlgmr.msra.gmra.mxu1 %v2876_v8  ;;  %v42_v6 = vld [vmem:[%s4101_s2 + $0x28] sm:$0xff] }
  0x26   :  { %776 = vmatpush1.bf16.msra.mxu0 %v2511_v11  ;;  %889 = vmatpush1.bf16.msra.mxu1 %v2513_v14  ;;  %v2457_v11 = vcombine.low %v120_v62, %v124_v63  ;;  %v2582_v14 = vcombine.high %v94_v7, %v98_v9  ;;  %v50_v62 = vld [vmem:[%s4101_s2 + $0x68] sm:$0xff] }
  0x27   :  { %591 = vmatprep.mubr.bf16.mxu0 %v2732_v3  ;;  %704 = vmatprep.mubr.bf16.mxu1 %v2732_v3 }
  0x28   :  { %777 = vmatprep.subr.bf16.mxu0 %v2504_v15  ;;  %890 = vmatprep.subr.bf16.mxu1 %v2506_v18  ;;  %v3017_v15 = vld [vmem:[%s4099_s1 + $0x28] sm:$0xff]   ;;  %v85_v18 = vld [vmem:[%s4101_s2 + $0x180] sm:$0xff] }
  0x2a   :  { %778 = vmatpush1.bf16.msra.mxu0 %v2503_v21  ;;  %891 = vmatpush1.bf16.msra.mxu1 %v2505_v22  ;;  %v86_v21 = vld [vmem:[%s4101_s2 + $0x188] sm:$0xff] }
  0x2b   :  { %779 = vmatprep.subr.bf16.mxu0 %v2496_v23  ;;  %892 = vmatprep.subr.bf16.mxu1 %v2498_v25  ;;  %v90_v22 = vld [vmem:[%s4101_s2 + $0x1a8] sm:$0xff]  ;;  %v2581_v23 = vcombine.low %v94_v7, %v98_v9  ;;  %v2572_v25 = vcombine.high %v85_v18, %v89_v19  ;;  %v2533_v9 = vcombine.low %v46_v61, %v50_v62 }
  0x2c   :  { %v2574_v28 = vcombine.high %v86_v21, %v90_v22 }
  0x2d   :  { %592 = vmatmul.mubr.bf16.gmra.mxu0 %v2909_v24  ;;  %705 = vmatmul.mubr.bf16.gmra.mxu1 %v2909_v24 }
  0x2e   :  { %601 = vmatprep.mubr.bf16.mxu0 %v2732_v3  ;;  %714 = vmatprep.mubr.bf16.mxu1 %v2732_v3 }
  0x2f   :  { %780 = vmatpush1.bf16.msra.mxu0 %v2495_v30  ;;  %893 = vmatpush1.bf16.msra.mxu1 %v2497_v31  ;;  %v82_v30 = vld [vmem:[%s4101_s2 + $0x168] sm:$0xff]  ;;  %v2571_v31 = vcombine.low %v85_v18, %v89_v19  ;;  %v96_v18 = vld [vmem:[%s4101_s2 + $0x1d8] sm:$0xff] }
  0x30   :  { %781 = vmatprep.subr.bf16.mxu0 %v2488_v32  ;;  %894 = vmatprep.subr.bf16.mxu1 %v2490_v34  ;;  %v2573_v32 = vcombine.low %v86_v21, %v90_v22  ;;  %v2566_v34 = vcombine.high %v78_v29, %v82_v30  ;;  %v2565_v40 = vcombine.low %v78_v29, %v82_v30  ;;  %v100_v19 = vld [vmem:[%s4101_s2 + $0x1f8] sm:$0xff]  ;;  %v83_v29 = vld [vmem:[%s4101_s2 + $0x170] sm:$0xff] }
  0x31   :  { %v2525_v21 = vcombine.low %v38_v5, %v42_v6 }
  0x33   :  { %782 = vmatpush1.bf16.msra.mxu0 %v2487_v39  ;;  %895 = vmatpush1.bf16.msra.mxu1 %v2489_v42  ;;  %v2563_v39 = vcombine.low %v77_v26, %v81_v27  ;;  %v2558_v42 = vcombine.high %v70_v36, %v74_v37  ;;  %v2585_v26 = vcombine.low %v96_v18, %v100_v19 }
  0x34   :  { %783 = vmatprep.subr.bf16.mxu0 %v2480_v43  ;;  %896 = vmatprep.subr.bf16.mxu1 %v2482_v46  ;;  %v61_v43 = vld [vmem:[%s4101_s2 + $0xc0] sm:$0xff]  ;;  %v66_v46 = vld [vmem:[%s4101_s2 + $0xe8] sm:$0xff] }
  0x35   :  { %602 = vmatmul.mubr.bf16.gmra.mxu0 %v2942_v38  ;;  %715 = vmatmul.mubr.bf16.gmra.mxu1 %v2942_v38  ;;  %v2547_v54 = vcombine.low %v61_v43, %v65_v44 }
  0x36   :  { %611 = vmatprep.mubr.bf16.mxu0 %v2732_v3  ;;  %724 = vmatprep.mubr.bf16.mxu1 %v2732_v3 }
  0x37   :  { %784 = vmatpush1.bf16.msra.mxu0 %v2479_v47  ;;  %897 = vmatpush1.bf16.msra.mxu1 %v2481_v48  ;;  %v2557_v48 = vcombine.low %v70_v36, %v74_v37  ;;  %v3205_v36 = vld [vmem:[%s4100_s0 + $0x8] sm:$0xff]   ;;  %v71_v37 = vld [vmem:[%s4101_s2 + $0x110] sm:$0xff] }
  0x38   :  { %785 = vmatprep.subr.bf16.mxu0 %v2472_v49  ;;  %898 = vmatprep.subr.bf16.mxu1 %v2474_v50  ;;  %v2548_v49 = vcombine.high %v61_v43, %v65_v44  ;;  %v53_v50 = vld [vmem:[%s4101_s2 + $0x80] sm:$0xff] }
  0x39   :  { %v2539_v63 = vcombine.low %v53_v50, %v57_v51 }
  0x3b   :  { %786 = vmatpush1.bf16.msra.mxu0 %v2471_v55  ;;  %899 = vmatpush1.bf16.msra.mxu1 %v2473_v56  ;;  %v2549_v55 = vcombine.low %v62_v45, %v66_v46  ;;  %v2540_v56 = vcombine.high %v53_v50, %v57_v51 }
  0x3c   :  { %787 = vmatprep.subr.bf16.mxu0 %v2464_v57  ;;  %900 = vmatprep.subr.bf16.mxu1 %v2466_v59  ;;  %v2542_v57 = vcombine.high %v54_v52, %v58_v53  ;;  %v45_v59 = vld [vmem:[%s4101_s2 + $0x40] sm:$0xff] }
  0x3d   :  { %612 = vmatmul.mubr.bf16.gmra.mxu0 %v2975_v58  ;;  %725 = vmatmul.mubr.bf16.gmra.mxu1 %v2975_v58  ;;  %v2531_v7 = vcombine.low %v45_v59, %v49_v60 }
  0x3e   :  { %621 = vmatprep.mubr.bf16.mxu0 %v2732_v3  ;;  %734 = vmatprep.mubr.bf16.mxu1 %v2732_v3 }
  0x3f   :  { %788 = vmatpush1.bf16.msra.mxu0 %v2463_v0  ;;  %901 = vmatpush1.bf16.msra.mxu1 %v2465_v1  ;;  %v2541_v0 = vcombine.low %v54_v52, %v58_v53  ;;  %v2532_v1 = vcombine.high %v45_v59, %v49_v60  ;;  %v3238_v52 = vld [vmem:[%s4100_s0 + $0x10] sm:$0xff]  }
  0x40   :  { %789 = vmatprep.subr.bf16.mxu0 %v2456_v2  ;;  %902 = vmatprep.subr.bf16.mxu1 %v2458_v4  ;;  %v37_v2 = vld [vmem:[%s4101_s2] sm:$0xff] }
  0x41   :  { %v41_v4 = vld [vmem:[%s4101_s2 + $0x20] sm:$0xff] }
  0x43   :  { %790 = vmatpush1.bf16.msra.mxu0 %v2455_v10  ;;  %903 = vmatpush1.bf16.msra.mxu1 %v2457_v11  ;;  %v2524_v10 = vcombine.high %v37_v2, %v41_v4  ;;  %v2526_v11 = vcombine.high %v38_v5, %v42_v6  ;;  %v3271_v6 = vld [vmem:[%s4100_s0 + $0x18] sm:$0xff]  }
  0x44   :  { %1369 = vmatprep.subr.bf16.mxu0 %v2580_v12  ;;  %1482 = vmatprep.subr.bf16.mxu1 %v2582_v14  ;;  %v95_v12 = vld [vmem:[%s4101_s2 + $0x1d0] sm:$0xff] }
  0x45   :  { %622 = vmatmul.mubr.bf16.gmra.mxu0 %v3008_v13  ;;  %735 = vmatmul.mubr.bf16.gmra.mxu1 %v3008_v13  ;;  %v99_v14 = vld [vmem:[%s4101_s2 + $0x1f0] sm:$0xff] }
  0x46   :  { %631 = vmatprep.mubr.bf16.mxu0 %v2732_v3  ;;  %744 = vmatprep.mubr.bf16.mxu1 %v2732_v3  ;;  %v2584_v22 = vcombine.high %v95_v12, %v99_v14 }
  0x4d   :  { %632 = vmatmul.mubr.bf16.gmra.mxu0 %v3017_v15  ;;  %745 = vmatmul.mubr.bf16.gmra.mxu1 %v3017_v15 }
  0x4e   :  { %641 = vmatprep.mubr.bf16.mxu0 %v2732_v3  ;;  %754 = vmatprep.mubr.bf16.mxu1 %v2732_v3 }
  0x55   :  { %642 = vmatmul.mubr.bf16.gmra.mxu0 %v3026_v16  ;;  %755 = vmatmul.mubr.bf16.gmra.mxu1 %v3026_v16 }
  0x56   :  { %651 = vmatprep.mubr.bf16.mxu0 %v2732_v3  ;;  %764 = vmatprep.mubr.bf16.mxu1 %v2732_v3 }
  0x5d   :  { %652 = vmatmul.mubr.bf16.gmra.mxu0 %v3035_v17  ;;  %765 = vmatmul.mubr.bf16.gmra.mxu1 %v3035_v17 }
  0x5e   :  { %807 = vmatprep.mubr.bf16.mxu0 %v2732_v3  ;;  %920 = vmatprep.mubr.bf16.mxu1 %v2732_v3 }
  0x65   :  { %808 = vmatmul.mubr.bf16.vlgmr.msra.gmra.mxu0 %v2876_v8  ;;  %921 = vmatmul.mubr.bf16.vlgmr.msra.gmra.mxu1 %v2876_v8  ;;  %v73_v8 = vld [vmem:[%s4101_s2 + $0x120] sm:$0xff] }
  0x66   :  { %1370 = vmatpush1.bf16.msra.mxu0 %v2579_v20  ;;  %1483 = vmatpush1.bf16.msra.mxu1 %v2581_v23  ;;  %v2556_v41 = vcombine.high %v69_v35, %v73_v8  ;;  %v2555_v47 = vcombine.low %v69_v35, %v73_v8  ;;  %v2523_v20 = vcombine.low %v37_v2, %v41_v4 }
  0x67   :  { %817 = vmatprep.mubr.bf16.mxu0 %v2732_v3  ;;  %930 = vmatprep.mubr.bf16.mxu1 %v2732_v3  ;;  %v2583_v23 = vcombine.low %v95_v12, %v99_v14  ;;  %v44_v12 = vld [vmem:[%s4101_s2 + $0x38] sm:$0xff] }
  0x68   :  { %1371 = vmatprep.subr.bf16.mxu0 %v2572_v25  ;;  %1484 = vmatprep.subr.bf16.mxu1 %v2574_v28  ;;  %v92_v25 = vld [vmem:[%s4101_s2 + $0x1b8] sm:$0xff]  ;;  %v79_v28 = vld [vmem:[%s4101_s2 + $0x150] sm:$0xff] }
  0x69   :  { %v2568_v35 = vcombine.high %v79_v28, %v83_v29 }
  0x6a   :  { %1372 = vmatpush1.bf16.msra.mxu0 %v2571_v31  ;;  %1485 = vmatpush1.bf16.msra.mxu1 %v2573_v32  ;;  %v80_v31 = vld [vmem:[%s4101_s2 + $0x158] sm:$0xff] }
  0x6b   :  { %1373 = vmatprep.subr.bf16.mxu0 %v2564_v33  ;;  %1486 = vmatprep.subr.bf16.mxu1 %v2566_v34  ;;  %v84_v32 = vld [vmem:[%s4101_s2 + $0x178] sm:$0xff] }
  0x6c   :  { %v2570_v8 = vcombine.high %v80_v31, %v84_v32  ;;  %v2569_v43 = vcombine.low %v80_v31, %v84_v32 }
  0x6d   :  { %818 = vmatmul.mubr.bf16.gmra.mxu0 %v2909_v24  ;;  %931 = vmatmul.mubr.bf16.gmra.mxu1 %v2909_v24  ;;  %v2550_v24 = vcombine.high %v62_v45, %v66_v46  ;;  %v63_v46 = vld [vmem:[%s4101_s2 + $0xd0] sm:$0xff] }
  0x6e   :  { %827 = vmatprep.mubr.bf16.mxu0 %v2732_v3  ;;  %940 = vmatprep.mubr.bf16.mxu1 %v2732_v3 }
  0x6f   :  { %1374 = vmatpush1.bf16.msra.mxu0 %v2563_v39  ;;  %1487 = vmatpush1.bf16.msra.mxu1 %v2565_v40  ;;  %v75_v39 = vld [vmem:[%s4101_s2 + $0x130] sm:$0xff]  ;;  %v72_v40 = vld [vmem:[%s4101_s2 + $0x118] sm:$0xff] }
  0x70   :  { %1375 = vmatprep.subr.bf16.mxu0 %v2556_v41  ;;  %1488 = vmatprep.subr.bf16.mxu1 %v2558_v42  ;;  %v76_v41 = vld [vmem:[%s4101_s2 + $0x138] sm:$0xff]  ;;  %v2567_v42 = vcombine.low %v79_v28, %v83_v29  ;;  %v2560_v44 = vcombine.high %v71_v37, %v75_v39 }
  0x71   :  { %v2562_v45 = vcombine.high %v72_v40, %v76_v41  ;;  %v2561_v50 = vcombine.low %v72_v40, %v76_v41 }
  0x73   :  { %1376 = vmatpush1.bf16.msra.mxu0 %v2555_v47  ;;  %1489 = vmatpush1.bf16.msra.mxu1 %v2557_v48  ;;  %v67_v47 = vld [vmem:[%s4101_s2 + $0xf0] sm:$0xff]  ;;  %v64_v48 = vld [vmem:[%s4101_s2 + $0xd8] sm:$0xff] }
  0x74   :  { %1377 = vmatprep.subr.bf16.mxu0 %v2548_v49  ;;  %1490 = vmatprep.subr.bf16.mxu1 %v2550_v24  ;;  %v68_v49 = vld [vmem:[%s4101_s2 + $0xf8] sm:$0xff]  ;;  %v2559_v24 = vcombine.low %v71_v37, %v75_v39  ;;  %v2552_v51 = vcombine.high %v63_v46, %v67_v47  ;;  %v2551_v59 = vcombine.low %v63_v46, %v67_v47 }
  0x75   :  { %828 = vmatmul.mubr.bf16.gmra.mxu0 %v2942_v38  ;;  %941 = vmatmul.mubr.bf16.gmra.mxu1 %v2942_v38  ;;  %v2534_v38 = vcombine.high %v46_v61, %v50_v62  ;;  %v2554_v53 = vcombine.high %v64_v48, %v68_v49  ;;  %v2553_v60 = vcombine.low %v64_v48, %v68_v49 }
  0x76   :  { %837 = vmatprep.mubr.bf16.mxu0 %v2732_v3  ;;  %950 = vmatprep.mubr.bf16.mxu1 %v2732_v3 }
  0x77   :  { %1378 = vmatpush1.bf16.msra.mxu0 %v2547_v54  ;;  %1491 = vmatpush1.bf16.msra.mxu1 %v2549_v55  ;;  %v55_v54 = vld [vmem:[%s4101_s2 + $0x90] sm:$0xff] }
  0x78   :  { %1379 = vmatprep.subr.bf16.mxu0 %v2540_v56  ;;  %1492 = vmatprep.subr.bf16.mxu1 %v2542_v57  ;;  %v59_v55 = vld [vmem:[%s4101_s2 + $0xb0] sm:$0xff]  ;;  %v56_v56 = vld [vmem:[%s4101_s2 + $0x98] sm:$0xff] }
  0x79   :  { %v60_v57 = vld [vmem:[%s4101_s2 + $0xb8] sm:$0xff]  ;;  %v2544_v61 = vcombine.high %v55_v54, %v59_v55  ;;  %v2543_v2 = vcombine.low %v55_v54, %v59_v55 }
  0x7a   :  { %v2546_v62 = vcombine.high %v56_v56, %v60_v57  ;;  %v2545_v4 = vcombine.low %v56_v56, %v60_v57 }
  0x7b   :  { %1380 = vmatpush1.bf16.msra.mxu0 %v2539_v63  ;;  %1493 = vmatpush1.bf16.msra.mxu1 %v2541_v0  ;;  %v47_v63 = vld [vmem:[%s4101_s2 + $0x50] sm:$0xff] }
  0x7c   :  { %1381 = vmatprep.subr.bf16.mxu0 %v2532_v1  ;;  %1494 = vmatprep.subr.bf16.mxu1 %v2534_v38  ;;  %v51_v0 = vld [vmem:[%s4101_s2 + $0x70] sm:$0xff]  ;;  %v48_v1 = vld [vmem:[%s4101_s2 + $0x58] sm:$0xff] }
  0x7d   :  { %838 = vmatmul.mubr.bf16.gmra.mxu0 %v2975_v58  ;;  %951 = vmatmul.mubr.bf16.gmra.mxu1 %v2975_v58  ;;  %v2586_v58 = vcombine.high %v96_v18, %v100_v19  ;;  %v52_v38 = vld [vmem:[%s4101_s2 + $0x78] sm:$0xff]  ;;  %v2536_v5 = vcombine.high %v47_v63, %v51_v0  ;;  %v2535_v14 = vcombine.low %v47_v63, %v51_v0 }
  0x7e   :  { %847 = vmatprep.mubr.bf16.mxu0 %v2732_v3  ;;  %960 = vmatprep.mubr.bf16.mxu1 %v2732_v3  ;;  %v2537_v18 = vcombine.low %v48_v1, %v52_v38 }
  0x7f   :  { %1382 = vmatpush1.bf16.msra.mxu0 %v2531_v7  ;;  %1495 = vmatpush1.bf16.msra.mxu1 %v2533_v9  ;;  %v2538_v7 = vcombine.high %v48_v1, %v52_v38  ;;  %v39_v9 = vld [vmem:[%s4101_s2 + $0x10] sm:$0xff] }
  0x80   :  { %1383 = vmatprep.subr.bf16.mxu0 %v2524_v10  ;;  %1496 = vmatprep.subr.bf16.mxu1 %v2526_v11  ;;  %v43_v10 = vld [vmem:[%s4101_s2 + $0x30] sm:$0xff]  ;;  %v40_v11 = vld [vmem:[%s4101_s2 + $0x18] sm:$0xff] }
  0x81   :  { %v2528_v19 = vcombine.high %v39_v9, %v43_v10 }
  0x83   :  { %1384 = vmatpush1.bf16.msra.mxu0 %v2523_v20  ;;  %1497 = vmatpush1.bf16.msra.mxu1 %v2525_v21  ;;  %v2530_v20 = vcombine.high %v40_v11, %v44_v12  ;;  %v2527_v21 = vcombine.low %v39_v9, %v43_v10 }
  0x84   :  { %1595 = vmatprep.subr.bf16.mxu0 %v2584_v22  ;;  %1708 = vmatprep.subr.bf16.mxu1 %v2586_v58  ;;  %v2529_v22 = vcombine.low %v40_v11, %v44_v12  ;;  %v3292_v58 = vld [vmem:[%s4100_s0 + $0x20] sm:$0xff]  }
  0x85   :  { %848 = vmatmul.mubr.bf16.gmra.mxu0 %v3008_v13  ;;  %961 = vmatmul.mubr.bf16.gmra.mxu1 %v3008_v13  ;;  %v3172_v13 = vld [vmem:[%s4100_s0] sm:$0xff]  }
  0x86   :  { %857 = vmatprep.mubr.bf16.mxu0 %v2732_v3  ;;  %970 = vmatprep.mubr.bf16.mxu1 %v2732_v3 }
  0x8d   :  { %858 = vmatmul.mubr.bf16.gmra.mxu0 %v3017_v15  ;;  %971 = vmatmul.mubr.bf16.gmra.mxu1 %v3017_v15  ;;  %v87_v15 = vld [vmem:[%s4101_s2 + $0x190] sm:$0xff] }
  0x8e   :  { %867 = vmatprep.mubr.bf16.mxu0 %v2732_v3  ;;  %980 = vmatprep.mubr.bf16.mxu1 %v2732_v3 }
  0x95   :  { %868 = vmatmul.mubr.bf16.gmra.mxu0 %v3026_v16  ;;  %981 = vmatmul.mubr.bf16.gmra.mxu1 %v3026_v16  ;;  %v91_v16 = vld [vmem:[%s4101_s2 + $0x1b0] sm:$0xff] }
  0x96   :  { %877 = vmatprep.mubr.bf16.mxu0 %v2732_v3  ;;  %990 = vmatprep.mubr.bf16.mxu1 %v2732_v3  ;;  %v2576_v27 = vcombine.high %v87_v15, %v91_v16  ;;  %v2575_v33 = vcombine.low %v87_v15, %v91_v16  ;;  %v3301_v15 = vld [vmem:[%s4100_s0 + $0x28] sm:$0xff]   ;;  %v3310_v16 = vld [vmem:[%s4100_s0 + $0x30] sm:$0xff]  }
  0x9d   :  { %878 = vmatmul.mubr.bf16.gmra.mxu0 %v3035_v17  ;;  %991 = vmatmul.mubr.bf16.gmra.mxu1 %v3035_v17  ;;  %v88_v17 = vld [vmem:[%s4101_s2 + $0x198] sm:$0xff] }
  0x9e   :  { %1401 = vmatprep.mubr.bf16.mxu0 %v2732_v3  ;;  %1514 = vmatprep.mubr.bf16.mxu1 %v2732_v3  ;;  %v2578_v30 = vcombine.high %v88_v17, %v92_v25  ;;  %v2577_v34 = vcombine.low %v88_v17, %v92_v25 }
  0xa5   :  { %1402 = vmatmul.mubr.bf16.vlgmr.msra.gmra.mxu0 %v3172_v13  ;;  %1515 = vmatmul.mubr.bf16.vlgmr.msra.gmra.mxu1 %v3172_v13 }
  0xa6   :  { %1596 = vmatpush1.bf16.msra.mxu0 %v2583_v23  ;;  %1709 = vmatpush1.bf16.msra.mxu1 %v2585_v26  ;;  %v3319_v23 = vld [vmem:[%s4100_s0 + $0x38] sm:$0xff]  }
  0xa7   :  { %1411 = vmatprep.mubr.bf16.mxu0 %v2732_v3  ;;  %1524 = vmatprep.mubr.bf16.mxu1 %v2732_v3 }
  0xa8   :  { %1597 = vmatprep.subr.bf16.mxu0 %v2576_v27  ;;  %1710 = vmatprep.subr.bf16.mxu1 %v2578_v30 }
  0xaa   :  { %1598 = vmatpush1.bf16.msra.mxu0 %v2575_v33  ;;  %1711 = vmatpush1.bf16.msra.mxu1 %v2577_v34 }
  0xab   :  { %1599 = vmatprep.subr.bf16.mxu0 %v2568_v35  ;;  %1712 = vmatprep.subr.bf16.mxu1 %v2570_v8 }
  0xad   :  { %1412 = vmatmul.mubr.bf16.gmra.mxu0 %v3205_v36  ;;  %1525 = vmatmul.mubr.bf16.gmra.mxu1 %v3205_v36 }
  0xae   :  { %1421 = vmatprep.mubr.bf16.mxu0 %v2732_v3  ;;  %1534 = vmatprep.mubr.bf16.mxu1 %v2732_v3 }
  0xaf   :  { %1600 = vmatpush1.bf16.msra.mxu0 %v2567_v42  ;;  %1713 = vmatpush1.bf16.msra.mxu1 %v2569_v43 }
  0xb0   :  { %1601 = vmatprep.subr.bf16.mxu0 %v2560_v44  ;;  %1714 = vmatprep.subr.bf16.mxu1 %v2562_v45 }
  0xb3   :  { %1602 = vmatpush1.bf16.msra.mxu0 %v2559_v24  ;;  %1715 = vmatpush1.bf16.msra.mxu1 %v2561_v50 }
  0xb4   :  { %1603 = vmatprep.subr.bf16.mxu0 %v2552_v51  ;;  %1716 = vmatprep.subr.bf16.mxu1 %v2554_v53 }
  0xb5   :  { %1422 = vmatmul.mubr.bf16.gmra.mxu0 %v3238_v52  ;;  %1535 = vmatmul.mubr.bf16.gmra.mxu1 %v3238_v52 }
  0xb6   :  { %1431 = vmatprep.mubr.bf16.mxu0 %v2732_v3  ;;  %1544 = vmatprep.mubr.bf16.mxu1 %v2732_v3 }
  0xb7   :  { %1604 = vmatpush1.bf16.msra.mxu0 %v2551_v59  ;;  %1717 = vmatpush1.bf16.msra.mxu1 %v2553_v60 }
  0xb8   :  { %1605 = vmatprep.subr.bf16.mxu0 %v2544_v61  ;;  %1718 = vmatprep.subr.bf16.mxu1 %v2546_v62 }
  0xbb   :  { %1606 = vmatpush1.bf16.msra.mxu0 %v2543_v2  ;;  %1719 = vmatpush1.bf16.msra.mxu1 %v2545_v4 }
  0xbc   :  { %1607 = vmatprep.subr.bf16.mxu0 %v2536_v5  ;;  %1720 = vmatprep.subr.bf16.mxu1 %v2538_v7 }
  0xbd   :  { %1432 = vmatmul.mubr.bf16.gmra.mxu0 %v3271_v6  ;;  %1545 = vmatmul.mubr.bf16.gmra.mxu1 %v3271_v6 }
  0xbe   :  { %1441 = vmatprep.mubr.bf16.mxu0 %v2732_v3  ;;  %1554 = vmatprep.mubr.bf16.mxu1 %v2732_v3 }
  0xbf   :  { %1608 = vmatpush1.bf16.msra.mxu0 %v2535_v14  ;;  %1721 = vmatpush1.bf16.msra.mxu1 %v2537_v18 }
  0xc0   :  { %1609 = vmatprep.subr.bf16.mxu0 %v2528_v19  ;;  %1722 = vmatprep.subr.bf16.mxu1 %v2530_v20 }
  0xc3   :  { %1610 = vmatpush1.bf16.msra.mxu0 %v2527_v21  ;;  %1723 = vmatpush1.bf16.msra.mxu1 %v2529_v22 }
  0xc5   :  { %1442 = vmatmul.mubr.bf16.gmra.mxu0 %v3292_v58  ;;  %1555 = vmatmul.mubr.bf16.gmra.mxu1 %v3292_v58 }
  0xc6   :  { %1451 = vmatprep.mubr.bf16.mxu0 %v2732_v3  ;;  %1564 = vmatprep.mubr.bf16.mxu1 %v2732_v3 }
  0xcd   :  { %1452 = vmatmul.mubr.bf16.gmra.mxu0 %v3301_v15  ;;  %1565 = vmatmul.mubr.bf16.gmra.mxu1 %v3301_v15 }
  0xce   :  { %1461 = vmatprep.mubr.bf16.mxu0 %v2732_v3  ;;  %1574 = vmatprep.mubr.bf16.mxu1 %v2732_v3 }
  0xd5   :  { %1462 = vmatmul.mubr.bf16.gmra.mxu0 %v3310_v16  ;;  %1575 = vmatmul.mubr.bf16.gmra.mxu1 %v3310_v16 }
  0xd6   :  { %1471 = vmatprep.mubr.bf16.mxu0 %v2732_v3  ;;  %1584 = vmatprep.mubr.bf16.mxu1 %v2732_v3 }
  0xdd   :  { %1472 = vmatmul.mubr.bf16.gmra.mxu0 %v3319_v23  ;;  %1585 = vmatmul.mubr.bf16.gmra.mxu1 %v3319_v23 }
  0xde   :  { %1627 = vmatprep.mubr.bf16.mxu0 %v2732_v3  ;;  %1740 = vmatprep.mubr.bf16.mxu1 %v2732_v3 }
  0xe5   :  { %v3325_v17 = vpop.f32.mrf.mxu0  ;;  %1628 = vmatmul.mubr.bf16.vlgmr.msra.gmra.mxu0 %v3172_v13  ;;  %v3328_v25 = vpop.f32.mrf.mxu1  ;;  %1741 = vmatmul.mubr.bf16.vlgmr.msra.gmra.mxu1 %v3172_v13 }
  0xe6   :  { %1637 = vmatprep.mubr.bf16.mxu0 %v2732_v3  ;;  %1750 = vmatprep.mubr.bf16.mxu1 %v2732_v3 }
  0xe7   :  { %v3332_v26 = vpop.f32.mrf.mxu0  ;;  %v3335_v27 = vpop.f32.mrf.mxu1 }
  0xe9   :  { %v3337_v28 = vpop.f32.mrf.mxu0  ;;  %v3339_v29 = vpop.f32.mrf.mxu1 }
  0xeb   :  { %v3341_v30 = vpop.f32.mrf.mxu0  ;;  %v3343_v31 = vpop.f32.mrf.mxu1 }
  0xed   :  { %v3345_v32 = vpop.f32.mrf.mxu0  ;;  %1638 = vmatmul.mubr.bf16.gmra.mxu0 %v3205_v36  ;;  %v3348_v13 = vpop.f32.mrf.mxu1  ;;  %1751 = vmatmul.mubr.bf16.gmra.mxu1 %v3205_v36 }
  0xee   :  { %1647 = vmatprep.mubr.bf16.mxu0 %v2732_v3  ;;  %1760 = vmatprep.mubr.bf16.mxu1 %v2732_v3 }
  0xef   :  { %v3352_v33 = vpop.f32.mrf.mxu0  ;;  %v3355_v34 = vpop.f32.mrf.mxu1 }
  0xf1   :  { %v3357_v35 = vpop.f32.mrf.mxu0  ;;  %v3359_v8 = vpop.f32.mrf.mxu1 }
  0xf3   :  { %v3361_v37 = vpop.f32.mrf.mxu0  ;;  %v3363_v39 = vpop.f32.mrf.mxu1 }
  0xf5   :  { %v3365_v40 = vpop.f32.mrf.mxu0  ;;  %1648 = vmatmul.mubr.bf16.gmra.mxu0 %v3238_v52  ;;  %v3368_v36 = vpop.f32.mrf.mxu1  ;;  %1761 = vmatmul.mubr.bf16.gmra.mxu1 %v3238_v52 }
  0xf6   :  { %1657 = vmatprep.mubr.bf16.mxu0 %v2732_v3  ;;  %1770 = vmatprep.mubr.bf16.mxu1 %v2732_v3 }
  0xf7   :  { %v3372_v41 = vpop.f32.mrf.mxu0  ;;  %v3375_v42 = vpop.f32.mrf.mxu1 }
  0xf9   :  { %v3377_v43 = vpop.f32.mrf.mxu0  ;;  %v3379_v44 = vpop.f32.mrf.mxu1 }
  0xfb   :  { %v3381_v45 = vpop.f32.mrf.mxu0  ;;  %v3383_v46 = vpop.f32.mrf.mxu1 }
  0xfd   :  { %v3385_v47 = vpop.f32.mrf.mxu0  ;;  %1658 = vmatmul.mubr.bf16.gmra.mxu0 %v3271_v6  ;;  %v3388_v48 = vpop.f32.mrf.mxu1  ;;  %1771 = vmatmul.mubr.bf16.gmra.mxu1 %v3271_v6 }
  0xfe   :  { %1667 = vmatprep.mubr.bf16.mxu0 %v2732_v3  ;;  %1780 = vmatprep.mubr.bf16.mxu1 %v2732_v3 }
  0xff   :  { %v3392_v49 = vpop.f32.mrf.mxu0  ;;  %v3395_v24 = vpop.f32.mrf.mxu1 }
 0x101   :  { %v3397_v50 = vpop.f32.mrf.mxu0  ;;  %v3399_v51 = vpop.f32.mrf.mxu1 }
 0x103   :  { %v3401_v52 = vpop.f32.mrf.mxu0  ;;  %v3403_v53 = vpop.f32.mrf.mxu1 }
 0x105   :  { %v3405_v54 = vpop.f32.mrf.mxu0  ;;  %1668 = vmatmul.mubr.bf16.gmra.mxu0 %v3292_v58  ;;  %v3408_v55 = vpop.f32.mrf.mxu1  ;;  %1781 = vmatmul.mubr.bf16.gmra.mxu1 %v3292_v58 }
 0x106   :  { %1677 = vmatprep.mubr.bf16.mxu0 %v2732_v3  ;;  %1790 = vmatprep.mubr.bf16.mxu1 %v2732_v3 }
 0x107   :  { %v3412_v56 = vpop.f32.mrf.mxu0  ;;  %v3415_v57 = vpop.f32.mrf.mxu1 }
 0x109   :  { %v3417_v59 = vpop.f32.mrf.mxu0  ;;  %v3419_v60 = vpop.f32.mrf.mxu1 }
 0x10b   :  { %v3421_v61 = vpop.f32.mrf.mxu0  ;;  %v3423_v62 = vpop.f32.mrf.mxu1 }
 0x10d   :  { %v3425_v63 = vpop.f32.mrf.mxu0  ;;  %1678 = vmatmul.mubr.bf16.gmra.mxu0 %v3301_v15  ;;  %v3428_v0 = vpop.f32.mrf.mxu1  ;;  %1791 = vmatmul.mubr.bf16.gmra.mxu1 %v3301_v15 }
 0x10e   :  { %1687 = vmatprep.mubr.bf16.mxu0 %v2732_v3  ;;  %1800 = vmatprep.mubr.bf16.mxu1 %v2732_v3 }
 0x10f   :  { %v3432_v1 = vpop.f32.mrf.mxu0  ;;  %v3435_v38 = vpop.f32.mrf.mxu1 }
 0x111   :  { %v3437_v2 = vpop.f32.mrf.mxu0  ;;  %v3439_v4 = vpop.f32.mrf.mxu1 }
 0x113   :  { %v3441_v5 = vpop.f32.mrf.mxu0  ;;  %v3443_v6 = vpop.f32.mrf.mxu1 }
 0x114   :  { %4108 = vst [vmem:[#allocation2_spill] sm:$0xff] %v3441_v5  ;;  %4109 = vst [vmem:[#allocation3_spill] sm:$0xff] %v3443_v6 }
 0x115   :  { %v3445_v7 = vpop.f32.mrf.mxu0  ;;  %1688 = vmatmul.mubr.bf16.gmra.mxu0 %v3310_v16  ;;  %v3448_v9 = vpop.f32.mrf.mxu1  ;;  %1801 = vmatmul.mubr.bf16.gmra.mxu1 %v3310_v16 }
 0x116   :  { %4110 = vst [vmem:[#allocation4_spill] sm:$0xff] %v3445_v7  ;;  %4111 = vst [vmem:[#allocation5_spill] sm:$0xff] %v3448_v9  ;;  %1697 = vmatprep.mubr.bf16.mxu0 %v2732_v3  ;;  %1810 = vmatprep.mubr.bf16.mxu1 %v2732_v3 }
 0x117   :  { %v3452_v10 = vpop.f32.mrf.mxu0  ;;  %v3455_v11 = vpop.f32.mrf.mxu1 }
 0x118   :  { %4112 = vst [vmem:[#allocation6_spill] sm:$0xff] %v3452_v10  ;;  %4113 = vst [vmem:[#allocation7_spill] sm:$0xff] %v3455_v11 }
 0x119   :  { %v3457_v12 = vpop.f32.mrf.mxu0  ;;  %v3459_v14 = vpop.f32.mrf.mxu1 }
 0x11a   :  { %4114 = vst [vmem:[#allocation8_spill] sm:$0xff] %v3457_v12  ;;  %4115 = vst [vmem:[#allocation9_spill] sm:$0xff] %v3459_v14 }
 0x11b   :  { %v3461_v18 = vpop.f32.mrf.mxu0  ;;  %v3463_v19 = vpop.f32.mrf.mxu1 }
 0x11c   :  { %4116 = vst [vmem:[#allocation10_spill] sm:$0xff] %v3461_v18  ;;  %4117 = vst [vmem:[#allocation11_spill] sm:$0xff] %v3463_v19 }
 0x11d   :  { %v3465_v20 = vpop.f32.mrf.mxu0  ;;  %1698 = vmatmul.mubr.bf16.gmra.mxu0 %v3319_v23  ;;  %v3468_v21 = vpop.f32.mrf.mxu1  ;;  %1811 = vmatmul.mubr.bf16.gmra.mxu1 %v3319_v23 }
 0x11e   :  { %4118 = vst [vmem:[#allocation12_spill] sm:$0xff] %v3465_v20  ;;  %4119 = vst [vmem:[#allocation13_spill] sm:$0xff] %v3468_v21 }
 0x11f   :  { %v3471_v22 = vpop.f32.mrf.mxu0  ;;  %v3473_v3 = vpop.f32.mrf.mxu1 }
 0x120   :  { %4120 = vst [vmem:[#allocation14_spill] sm:$0xff] %v3471_v22  ;;  %4121 = vst [vmem:[#allocation15_spill] sm:$0xff] %v3473_v3 }
 0x121   :  { %v3475_v58 = vpop.f32.mrf.mxu0  ;;  %v3477_v15 = vpop.f32.mrf.mxu1 }
 0x122   :  { %4122 = vst [vmem:[#allocation16_spill] sm:$0xff] %v3475_v58  ;;  %4123 = vst [vmem:[#allocation17_spill] sm:$0xff] %v3477_v15 }
 0x123   :  { %v3479_v16 = vpop.f32.mrf.mxu0  ;;  %v3481_v18 = vpop.f32.mrf.mxu1 }
 0x124   :  { %4124 = vst [vmem:[#allocation18_spill] sm:$0xff] %v3479_v16  ;;  %4125 = vst [vmem:[#allocation19_spill] sm:$0xff] %v3481_v18 }
 0x125   :  { %v3483_v19 = vpop.f32.mrf.mxu0  ;;  %v3485_v20 = vpop.f32.mrf.mxu1 }
 0x126   :  { %4126 = vst [vmem:[#allocation20_spill] sm:$0xff] %v3483_v19  ;;  %4127 = vst [vmem:[#allocation21_spill] sm:$0xff] %v3485_v20 }
 0x127   :  { %v3487_v14 = vpop.f32.mrf.mxu0  ;;  %v3489_v21 = vpop.f32.mrf.mxu1 }
 0x128   :  { %4128 = vst [vmem:[#allocation22_spill] sm:$0xff] %v3487_v14  ;;  %4129 = vst [vmem:[#allocation23_spill] sm:$0xff] %v3489_v21 }
 0x129   :  { %v3491_v23 = vpop.f32.mrf.mxu0  ;;  %v3493_v22 = vpop.f32.mrf.mxu1 }
 0x12a   :  { %4130 = vst [vmem:[#allocation24_spill] sm:$0xff] %v3491_v23  ;;  %4131 = vst [vmem:[#allocation25_spill] sm:$0xff] %v3493_v22 }
 0x12b   :  { %v3495_v3 = vpop.f32.mrf.mxu0  ;;  %v3497_v58 = vpop.f32.mrf.mxu1 }
 0x12c   :  { %4132 = vst [vmem:[#allocation26_spill] sm:$0xff] %v3495_v3  ;;  %4133 = vst [vmem:[#allocation27_spill] sm:$0xff] %v3497_v58 }
 0x12d   :  { %v3499_v15 = vpop.f32.mrf.mxu0  ;;  %v3501_v16 = vpop.f32.mrf.mxu1 }
 0x12e   :  { %4134 = vst [vmem:[#allocation28_spill] sm:$0xff] %v3499_v15  ;;  %4135 = vst [vmem:[#allocation29_spill] sm:$0xff] %v3501_v16 }
 0x12f   :  { %v3503_v18 = vpop.f32.mrf.mxu0  ;;  %v3505_v19 = vpop.f32.mrf.mxu1 }
 0x130   :  { %4136 = vst [vmem:[#allocation30_spill] sm:$0xff] %v3503_v18  ;;  %4137 = vst [vmem:[#allocation31_spill] sm:$0xff] %v3505_v19 }
 0x131   :  { %v3507_v20 = vpop.f32.mrf.mxu0  ;;  %v3509_v14 = vpop.f32.mrf.mxu1 }
 0x132   :  { %4138 = vst [vmem:[#allocation32_spill] sm:$0xff] %v3507_v20  ;;  %4139 = vst [vmem:[#allocation33_spill] sm:$0xff] %v3509_v14 }
 0x133   :  { %v3511_v21 = vpop.f32.mrf.mxu0  ;;  %v3513_v23 = vpop.f32.mrf.mxu1 }
 0x134   :  { %4140 = vst [vmem:[#allocation34_spill] sm:$0xff] %v3511_v21  ;;  %4141 = vst [vmem:[#allocation35_spill] sm:$0xff] %v3513_v23 }
 0x135   :  { %v3515_v22 = vpop.f32.mrf.mxu0  ;;  %v3517_v3 = vpop.f32.mrf.mxu1 }
 0x136   :  { %4142 = vst [vmem:[#allocation36_spill] sm:$0xff] %v3515_v22  ;;  %4143 = vst [vmem:[#allocation37_spill] sm:$0xff] %v3517_v3 }
 0x137   :  { %v3519_v58 = vpop.f32.mrf.mxu0  ;;  %v3521_v15 = vpop.f32.mrf.mxu1 }
 0x138   :  { %4144 = vst [vmem:[#allocation38_spill] sm:$0xff] %v3519_v58  ;;  %4145 = vst [vmem:[#allocation39_spill] sm:$0xff] %v3521_v15 }
 0x139   :  { %v3523_v16 = vpop.f32.mrf.mxu0  ;;  %v3525_v18 = vpop.f32.mrf.mxu1 }
 0x13a   :  { %4146 = vst [vmem:[#allocation40_spill] sm:$0xff] %v3523_v16  ;;  %4147 = vst [vmem:[#allocation41_spill] sm:$0xff] %v3525_v18 }
 0x13b   :  { %v3527_v19 = vpop.f32.mrf.mxu0  ;;  %v3529_v20 = vpop.f32.mrf.mxu1 }
 0x13c   :  { %4148 = vst [vmem:[#allocation42_spill] sm:$0xff] %v3527_v19  ;;  %4149 = vst [vmem:[#allocation43_spill] sm:$0xff] %v3529_v20 }
 0x13d   :  { %v3531_v14 = vpop.f32.mrf.mxu0  ;;  %v3533_v21 = vpop.f32.mrf.mxu1 }
 0x13e   :  { %4150 = vst [vmem:[#allocation44_spill] sm:$0xff] %v3531_v14  ;;  %4151 = vst [vmem:[#allocation45_spill] sm:$0xff] %v3533_v21 }
 0x13f   :  { %v3535_v23 = vpop.f32.mrf.mxu0  ;;  %v3537_v22 = vpop.f32.mrf.mxu1 }
 0x140   :  { %4152 = vst [vmem:[#allocation46_spill] sm:$0xff] %v3535_v23  ;;  %4153 = vst [vmem:[#allocation47_spill] sm:$0xff] %v3537_v22 }
 0x141   :  { %v3539_v3 = vpop.f32.mrf.mxu0  ;;  %v3541_v58 = vpop.f32.mrf.mxu1 }
 0x142   :  { %4154 = vst [vmem:[#allocation48_spill] sm:$0xff] %v3539_v3  ;;  %4155 = vst [vmem:[#allocation49_spill] sm:$0xff] %v3541_v58 }
 0x143   :  { %v3543_v15 = vpop.f32.mrf.mxu0  ;;  %v3545_v16 = vpop.f32.mrf.mxu1 }
 0x144   :  { %4156 = vst [vmem:[#allocation50_spill] sm:$0xff] %v3543_v15  ;;  %4157 = vst [vmem:[#allocation51_spill] sm:$0xff] %v3545_v16 }
 0x145   :  { %v3547_v18 = vpop.f32.mrf.mxu0  ;;  %v3549_v19 = vpop.f32.mrf.mxu1 }
 0x146   :  { %4158 = vst [vmem:[#allocation52_spill] sm:$0xff] %v3547_v18  ;;  %4159 = vst [vmem:[#allocation53_spill] sm:$0xff] %v3549_v19 }
 0x147   :  { %v3551_v20 = vpop.f32.mrf.mxu0  ;;  %v3553_v14 = vpop.f32.mrf.mxu1 }
 0x148   :  { %4160 = vst [vmem:[#allocation54_spill] sm:$0xff] %v3551_v20  ;;  %4161 = vst [vmem:[#allocation55_spill] sm:$0xff] %v3553_v14 }
 0x149   :  { %v3555_v21 = vpop.f32.mrf.mxu0  ;;  %v3557_v23 = vpop.f32.mrf.mxu1 }
 0x14a   :  { %4162 = vst [vmem:[#allocation56_spill] sm:$0xff] %v3555_v21  ;;  %4163 = vst [vmem:[#allocation57_spill] sm:$0xff] %v3557_v23 }
 0x14b   :  { %v3559_v22 = vpop.f32.mrf.mxu0  ;;  %v3561_v3 = vpop.f32.mrf.mxu1 }
 0x14c   :  { %4164 = vst [vmem:[#allocation58_spill] sm:$0xff] %v3559_v22  ;;  %4165 = vst [vmem:[#allocation59_spill] sm:$0xff] %v3561_v3 }
 0x14d   :  { %v3563_v58 = vpop.f32.mrf.mxu0  ;;  %v3565_v15 = vpop.f32.mrf.mxu1 }
 0x14e   :  { %4166 = vst [vmem:[#allocation60_spill] sm:$0xff] %v3563_v58  ;;  %4167 = vst [vmem:[#allocation61_spill] sm:$0xff] %v3565_v15 }
 0x14f   :  { %v3567_v16 = vpop.f32.mrf.mxu0  ;;  %v3569_v18 = vpop.f32.mrf.mxu1 }
 0x150   :  { %4168 = vst [vmem:[#allocation62_spill] sm:$0xff] %v3567_v16  ;;  %4169 = vst [vmem:[#allocation63_spill] sm:$0xff] %v3569_v18  ;;  %v1823_v18 = vlaneseq }
 0x151   :  { %v3571_v19 = vpop.f32.mrf.mxu0  ;;  %v3573_v20 = vpop.f32.mrf.mxu1 }
 0x152   :  { %4170 = vst [vmem:[#allocation64_spill] sm:$0xff] %v3571_v19  ;;  %4171 = vst [vmem:[#allocation65_spill] sm:$0xff] %v3573_v20 }
 0x153   :  { %v3575_v14 = vpop.f32.mrf.mxu0  ;;  %v3577_v21 = vpop.f32.mrf.mxu1 }
 0x154   :  { %4172 = vst [vmem:[#allocation66_spill] sm:$0xff] %v3575_v14  ;;  %4173 = vst [vmem:[#allocation67_spill] sm:$0xff] %v3577_v21 }
 0x155   :  { %v3579_v23 = vpop.f32.mrf.mxu0  ;;  %v3581_v22 = vpop.f32.mrf.mxu1 }
 0x156   :  { %4174 = vst [vmem:[#allocation68_spill] sm:$0xff] %v3579_v23  ;;  %4175 = vst [vmem:[#allocation69_spill] sm:$0xff] %v3581_v22  ;;  %v3599_v23 = vshrl.u32 %v1823_v18, 7 }
 0x157   :  { %v3583_v3 = vpop.f32.mrf.mxu0  ;;  %v3585_v58 = vpop.f32.mrf.mxu1 }
 0x158   :  { %4176 = vst [vmem:[#allocation70_spill] sm:$0xff] %v3583_v3  ;;  %4177 = vst [vmem:[#allocation71_spill] sm:$0xff] %v3585_v58  ;;  %v1833_v18 = vsub.s32 2, %v3599_v23 }
 0x159   :  { %v3587_v15 = vpop.f32.mrf.mxu0  ;;  %v3589_v16 = vpop.f32.mrf.mxu1  ;;  %4184 = vst [vmem:[#allocation78_spill] sm:$0xff] %v3599_v23 }
 0x15a   :  { %4178 = vst [vmem:[#allocation72_spill] sm:$0xff] %v3587_v15  ;;  %4179 = vst [vmem:[#allocation73_spill] sm:$0xff] %v3589_v16  ;;  %v1825_v16 = vsub.s32 0, %v3599_v23 }
 0x15b   :  { %v3591_v19 = vpop.f32.mrf.mxu0  ;;  %v3593_v20 = vpop.f32.mrf.mxu1 }
 0x15c   :  { %4180 = vst [vmem:[#allocation74_spill] sm:$0xff] %v3591_v19  ;;  %4181 = vst [vmem:[#allocation75_spill] sm:$0xff] %v3593_v20  ;;  %v1829_v19 = vsub.s32 1, %v3599_v23 }
 0x15d   :  { %v3595_v14 = vpop.f32.mrf.mxu0  ;;  %v3597_v21 = vpop.f32.mrf.mxu1 }
 0x15e   :  { %4182 = vst [vmem:[#allocation76_spill] sm:$0xff] %v3595_v14  ;;  %4183 = vst [vmem:[#allocation77_spill] sm:$0xff] %v3597_v21  ;;  %v3616_v21 = vld [vmem:[%s4102_s4] sm:$0xff] }
 0x15f   :  { %v3601_v22 = vpop.f32.mrf.mxu0  ;;  %v3603_v3 = vpop.f32.mrf.mxu1  ;;  %4190 = vst [vmem:[#allocation84_spill] sm:$0xff] %v3616_v21  ;;  %v3624_v14 = vrot.slane %v3616_v21, %v1825_v16  ;;  %v3631_v10 = vrot.slane %v3616_v21, %v1833_v18 }
 0x160   :  { %4185 = vst [vmem:[#allocation79_spill] sm:$0xff] %v3601_v22  ;;  %4186 = vst [vmem:[#allocation80_spill] sm:$0xff] %v3603_v3  ;;  %v1837_v22 = vsub.s32 3, %v3599_v23 }
 0x161   :  { %v3605_v58 = vpop.f32.mrf.mxu0  ;;  %v3607_v15 = vpop.f32.mrf.mxu1 }
 0x162   :  { %4187 = vst [vmem:[#allocation81_spill] sm:$0xff] %v3605_v58  ;;  %4188 = vst [vmem:[#allocation82_spill] sm:$0xff] %v3607_v15  ;;  %v3634_v23 = vrot.slane %v3616_v21, %v1837_v22 }
 0x163   :  { %v3611_v12 = vpop.f32.mrf.mxu0  ;;  %v3620_v3 = vpop.f32.mrf.mxu1 }
 0x164   :  { %4189 = vst [vmem:[#allocation83_spill] sm:$0xff] %v3611_v12  ;;  %4191 = vst [vmem:[#allocation85_spill] sm:$0xff] %v3620_v3  ;;  %v3627_v12 = vrot.slane %v3616_v21, %v1829_v19 }
 0x165   :  { %v1403_v58 = vpop.f32.mrf.mxu0  ;;  %v1516_v20 = vpop.f32.mrf.mxu1 }
 0x166   :  { %v1404_v15 = vadd.f32 %v1403_v58, %v3325_v17  ;;  %v1517_v11 = vadd.f32 %v1516_v20, %v3328_v25 }
 0x167   :  { %v1405_v9 = vpop.f32.mrf.mxu0  ;;  %v1518_v7 = vpop.f32.mrf.mxu1 }
 0x168   :  { %v1406_v3 = vadd.f32 %v1405_v9, %v3332_v26  ;;  %v1519_v17 = vadd.f32 %v1518_v7, %v3335_v27  ;;  %v1863_v16 = vadd.f32 %v3624_v14, %v1404_v15  ;;  %v1865_v20 = vadd.f32 %v3631_v10, %v1517_v11 }
 0x169   :  { %v1407_v58 = vpop.f32.mrf.mxu0  ;;  %v1520_v25 = vpop.f32.mrf.mxu1 }
 0x16a   :  { %v1864_v19 = vadd.f32 %v3627_v12, %v1406_v3  ;;  %v1408_v6 = vadd.f32 %v1407_v58, %v3337_v28  ;;  %v1866_v18 = vadd.f32 %v3634_v23, %v1519_v17  ;;  %v1521_v22 = vadd.f32 %v1520_v25, %v3339_v29 }
 0x16b   :  { %v1409_v21 = vpop.f32.mrf.mxu0  ;;  %v1522_v9 = vpop.f32.mrf.mxu1 }
 0x16c   :  { %v2651_v5 = vpack.c.bf16 %v1864_v19, %v1863_v16  ;;  %v1410_v26 = vadd.f32 %v1409_v21, %v3341_v30  ;;  %v2652_v27 = vpack.c.bf16 %v1866_v18, %v1865_v20  ;;  %v1523_v7 = vadd.f32 %v1522_v9, %v3343_v31 }
 0x16d   :  { %v1413_v15 = vpop.f32.mrf.mxu0  ;;  %v1871_v28 = vadd.f32 %v3624_v14, %v1408_v6  ;;  %v1526_v29 = vpop.f32.mrf.mxu1  ;;  %v1873_v30 = vadd.f32 %v3631_v10, %v1521_v22 }
 0x16e   :  { %2375 = vst [vmem:[%s4103_s5] sm:$0xff] %v2651_v5  ;;  %v1872_v11 = vadd.f32 %v3627_v12, %v1410_v26  ;;  %v1414_v3 = vadd.f32 %v1413_v15, %v3345_v32  ;;  %2376 = vst [vmem:[%s4103_s5 + $0x8] sm:$0xff] %v2652_v27  ;;  %v1874_v31 = vadd.f32 %v3634_v23, %v1523_v7 }
 0x16f   :  { %v1527_v21 = vadd.f32 %v1526_v29, %v3348_v13  ;;  %v1415_v17 = vpop.f32.mrf.mxu0  ;;  %v1528_v6 = vpop.f32.mrf.mxu1 }
 0x170   :  { %v2655_v58 = vpack.c.bf16 %v1872_v11, %v1871_v28  ;;  %v1416_v5 = vadd.f32 %v1415_v17, %v3352_v33  ;;  %v2656_v16 = vpack.c.bf16 %v1874_v31, %v1873_v30  ;;  %v1529_v19 = vadd.f32 %v1528_v6, %v3355_v34 }
 0x171   :  { %v1417_v32 = vpop.f32.mrf.mxu0  ;;  %v1879_v25 = vadd.f32 %v3624_v14, %v1414_v3  ;;  %v1530_v13 = vpop.f32.mrf.mxu1  ;;  %v1881_v33 = vadd.f32 %v3631_v10, %v1527_v21 }
 0x172   :  { %2379 = vst [vmem:[%s4103_s5 + $0x20] sm:$0xff] %v2655_v58  ;;  %v1880_v20 = vadd.f32 %v3627_v12, %v1416_v5  ;;  %v1418_v18 = vadd.f32 %v1417_v32, %v3357_v35  ;;  %2380 = vst [vmem:[%s4103_s5 + $0x28] sm:$0xff] %v2656_v16  ;;  %v1882_v34 = vadd.f32 %v3634_v23, %v1529_v19 }
 0x173   :  { %v1531_v22 = vadd.f32 %v1530_v13, %v3359_v8  ;;  %v1419_v26 = vpop.f32.mrf.mxu0  ;;  %v1532_v7 = vpop.f32.mrf.mxu1 }
 0x174   :  { %v2659_v9 = vpack.c.bf16 %v1880_v20, %v1879_v25  ;;  %v1420_v27 = vadd.f32 %v1419_v26, %v3361_v37  ;;  %v2660_v15 = vpack.c.bf16 %v1882_v34, %v1881_v33  ;;  %v1533_v28 = vadd.f32 %v1532_v7, %v3363_v39 }
 0x175   :  { %v1423_v35 = vpop.f32.mrf.mxu0  ;;  %v1887_v11 = vadd.f32 %v3624_v14, %v1418_v18  ;;  %v1536_v8 = vpop.f32.mrf.mxu1  ;;  %v1889_v37 = vadd.f32 %v3631_v10, %v1531_v22 }
 0x176   :  { %2383 = vst [vmem:[%s4103_s5 + $0x40] sm:$0xff] %v2659_v9  ;;  %v1888_v3 = vadd.f32 %v3627_v12, %v1420_v27  ;;  %v1424_v29 = vadd.f32 %v1423_v35, %v3365_v40  ;;  %2384 = vst [vmem:[%s4103_s5 + $0x48] sm:$0xff] %v2660_v15  ;;  %v1890_v39 = vadd.f32 %v3634_v23, %v1533_v28 }
 0x177   :  { %v1537_v30 = vadd.f32 %v1536_v8, %v3368_v36  ;;  %v1425_v31 = vpop.f32.mrf.mxu0  ;;  %v1538_v58 = vpop.f32.mrf.mxu1 }
 0x178   :  { %v2663_v21 = vpack.c.bf16 %v1888_v3, %v1887_v11  ;;  %v1426_v17 = vadd.f32 %v1425_v31, %v3372_v41  ;;  %v2664_v5 = vpack.c.bf16 %v1890_v39, %v1889_v37  ;;  %v1539_v6 = vadd.f32 %v1538_v58, %v3375_v42 }
 0x179   :  { %v1427_v40 = vpop.f32.mrf.mxu0  ;;  %v1895_v16 = vadd.f32 %v3624_v14, %v1424_v29  ;;  %v1540_v36 = vpop.f32.mrf.mxu1  ;;  %v1897_v41 = vadd.f32 %v3631_v10, %v1537_v30 }
 0x17a   :  { %2387 = vst [vmem:[%s4103_s5 + $0x60] sm:$0xff] %v2663_v21  ;;  %v1896_v19 = vadd.f32 %v3627_v12, %v1426_v17  ;;  %v1428_v32 = vadd.f32 %v1427_v40, %v3377_v43  ;;  %2388 = vst [vmem:[%s4103_s5 + $0x68] sm:$0xff] %v2664_v5  ;;  %v1898_v42 = vadd.f32 %v3634_v23, %v1539_v6 }
 0x17b   :  { %v1541_v25 = vadd.f32 %v1540_v36, %v3379_v44  ;;  %v1429_v20 = vpop.f32.mrf.mxu0  ;;  %v1542_v33 = vpop.f32.mrf.mxu1 }
 0x17c   :  { %v2667_v18 = vpack.c.bf16 %v1896_v19, %v1895_v16  ;;  %v1430_v13 = vadd.f32 %v1429_v20, %v3381_v45  ;;  %v2668_v34 = vpack.c.bf16 %v1898_v42, %v1897_v41  ;;  %v1543_v22 = vadd.f32 %v1542_v33, %v3383_v46 }
 0x17d   :  { %v1433_v43 = vpop.f32.mrf.mxu0  ;;  %v1903_v26 = vadd.f32 %v3624_v14, %v1428_v32  ;;  %v1546_v44 = vpop.f32.mrf.mxu1  ;;  %v1905_v45 = vadd.f32 %v3631_v10, %v1541_v25 }
 0x17e   :  { %2391 = vst [vmem:[%s4103_s5 + $0x80] sm:$0xff] %v2667_v18  ;;  %v1904_v9 = vadd.f32 %v3627_v12, %v1430_v13  ;;  %v1434_v27 = vadd.f32 %v1433_v43, %v3385_v47  ;;  %2392 = vst [vmem:[%s4103_s5 + $0x88] sm:$0xff] %v2668_v34  ;;  %v1906_v46 = vadd.f32 %v3634_v23, %v1543_v22 }
 0x17f   :  { %v1547_v7 = vadd.f32 %v1546_v44, %v3388_v48  ;;  %v1435_v15 = vpop.f32.mrf.mxu0  ;;  %v1548_v11 = vpop.f32.mrf.mxu1 }
 0x180   :  { %v2671_v28 = vpack.c.bf16 %v1904_v9, %v1903_v26  ;;  %v1436_v35 = vadd.f32 %v1435_v15, %v3392_v49  ;;  %v2672_v3 = vpack.c.bf16 %v1906_v46, %v1905_v45  ;;  %v1549_v29 = vadd.f32 %v1548_v11, %v3395_v24 }
 0x181   :  { %v1437_v47 = vpop.f32.mrf.mxu0  ;;  %v1911_v8 = vadd.f32 %v3624_v14, %v1434_v27  ;;  %v1550_v48 = vpop.f32.mrf.mxu1  ;;  %v1913_v49 = vadd.f32 %v3631_v10, %v1547_v7 }
 0x182   :  { %2395 = vst [vmem:[%s4103_s5 + $0xa0] sm:$0xff] %v2671_v28  ;;  %v1912_v37 = vadd.f32 %v3627_v12, %v1436_v35  ;;  %v1438_v39 = vadd.f32 %v1437_v47, %v3397_v50  ;;  %2396 = vst [vmem:[%s4103_s5 + $0xa8] sm:$0xff] %v2672_v3  ;;  %v1914_v24 = vadd.f32 %v3634_v23, %v1549_v29 }
 0x183   :  { %v1551_v30 = vadd.f32 %v1550_v48, %v3399_v51  ;;  %v1439_v31 = vpop.f32.mrf.mxu0  ;;  %v1552_v58 = vpop.f32.mrf.mxu1 }
 0x184   :  { %v2675_v21 = vpack.c.bf16 %v1912_v37, %v1911_v8  ;;  %v1440_v17 = vadd.f32 %v1439_v31, %v3401_v52  ;;  %v2676_v5 = vpack.c.bf16 %v1914_v24, %v1913_v49  ;;  %v1553_v6 = vadd.f32 %v1552_v58, %v3403_v53  ;;  %v4192_v31 = vld [vmem:[#allocation2_spill] sm:$0xff] }
 0x185   :  { %v1443_v50 = vpop.f32.mrf.mxu0  ;;  %v1919_v40 = vadd.f32 %v3624_v14, %v1438_v39  ;;  %v1556_v51 = vpop.f32.mrf.mxu1  ;;  %v1921_v52 = vadd.f32 %v3631_v10, %v1551_v30 }
 0x186   :  { %2399 = vst [vmem:[%s4103_s5 + $0xc0] sm:$0xff] %v2675_v21  ;;  %v1920_v16 = vadd.f32 %v3627_v12, %v1440_v17  ;;  %v1444_v19 = vadd.f32 %v1443_v50, %v3405_v54  ;;  %2400 = vst [vmem:[%s4103_s5 + $0xc8] sm:$0xff] %v2676_v5  ;;  %v1922_v53 = vadd.f32 %v3634_v23, %v1553_v6  ;;  %v4193_v5 = vld [vmem:[#allocation3_spill] sm:$0xff] }
 0x187   :  { %v1557_v32 = vadd.f32 %v1556_v51, %v3408_v55  ;;  %v1445_v36 = vpop.f32.mrf.mxu0  ;;  %v1558_v25 = vpop.f32.mrf.mxu1 }
 0x188   :  { %v2679_v41 = vpack.c.bf16 %v1920_v16, %v1919_v40  ;;  %v1446_v42 = vadd.f32 %v1445_v36, %v3412_v56  ;;  %v2680_v20 = vpack.c.bf16 %v1922_v53, %v1921_v52  ;;  %v1559_v18 = vadd.f32 %v1558_v25, %v3415_v57  ;;  %v4194_v16 = vld [vmem:[#allocation4_spill] sm:$0xff]  ;;  %v4195_v53 = vld [vmem:[#allocation5_spill] sm:$0xff] }
 0x189   :  { %v1447_v54 = vpop.f32.mrf.mxu0  ;;  %v1927_v13 = vadd.f32 %v3624_v14, %v1444_v19  ;;  %v1560_v55 = vpop.f32.mrf.mxu1  ;;  %v1929_v56 = vadd.f32 %v3631_v10, %v1557_v32 }
 0x18a   :  { %2403 = vst [vmem:[%s4103_s5 + $0xe0] sm:$0xff] %v2679_v41  ;;  %v1928_v33 = vadd.f32 %v3627_v12, %v1446_v42  ;;  %v1448_v34 = vadd.f32 %v1447_v54, %v3417_v59  ;;  %2404 = vst [vmem:[%s4103_s5 + $0xe8] sm:$0xff] %v2680_v20  ;;  %v1930_v57 = vadd.f32 %v3634_v23, %v1559_v18  ;;  %v4196_v42 = vld [vmem:[#allocation6_spill] sm:$0xff]  ;;  %v4197_v54 = vld [vmem:[#allocation7_spill] sm:$0xff] }
 0x18b   :  { %v1561_v22 = vadd.f32 %v1560_v55, %v3419_v60  ;;  %v1449_v43 = vpop.f32.mrf.mxu0  ;;  %v1562_v27 = vpop.f32.mrf.mxu1 }
 0x18c   :  { %v2683_v26 = vpack.c.bf16 %v1928_v33, %v1927_v13  ;;  %v1450_v9 = vadd.f32 %v1449_v43, %v3421_v61  ;;  %v2684_v44 = vpack.c.bf16 %v1930_v57, %v1929_v56  ;;  %v1563_v45 = vadd.f32 %v1562_v27, %v3423_v62  ;;  %v4198_v56 = vld [vmem:[#allocation8_spill] sm:$0xff] }
 0x18d   :  { %v1453_v59 = vpop.f32.mrf.mxu0  ;;  %v1935_v46 = vadd.f32 %v3624_v14, %v1448_v34  ;;  %v1566_v60 = vpop.f32.mrf.mxu1  ;;  %v1937_v61 = vadd.f32 %v3631_v10, %v1561_v22 }
 0x18e   :  { %2407 = vst [vmem:[%s4103_s5 + $0x100] sm:$0xff] %v2683_v26  ;;  %v1936_v7 = vadd.f32 %v3627_v12, %v1450_v9  ;;  %v1454_v15 = vadd.f32 %v1453_v59, %v3425_v63  ;;  %2408 = vst [vmem:[%s4103_s5 + $0x108] sm:$0xff] %v2684_v44  ;;  %v1938_v62 = vadd.f32 %v3634_v23, %v1563_v45  ;;  %v4199_v9 = vld [vmem:[#allocation9_spill] sm:$0xff]  ;;  %v4200_v59 = vld [vmem:[#allocation10_spill] sm:$0xff] }
 0x18f   :  { %v1567_v28 = vadd.f32 %v1566_v60, %v3428_v0  ;;  %v1455_v35 = vpop.f32.mrf.mxu0  ;;  %v1568_v29 = vpop.f32.mrf.mxu1  ;;  %v4201_v60 = vld [vmem:[#allocation11_spill] sm:$0xff] }
 0x190   :  { %v2687_v11 = vpack.c.bf16 %v1936_v7, %v1935_v46  ;;  %v1456_v3 = vadd.f32 %v1455_v35, %v3432_v1  ;;  %v2688_v47 = vpack.c.bf16 %v1938_v62, %v1937_v61  ;;  %v1569_v8 = vadd.f32 %v1568_v29, %v3435_v38 }
 0x191   :  { %v1457_v63 = vpop.f32.mrf.mxu0  ;;  %v1943_v37 = vadd.f32 %v3624_v14, %v1454_v15  ;;  %v1570_v0 = vpop.f32.mrf.mxu1  ;;  %v1945_v1 = vadd.f32 %v3631_v10, %v1567_v28 }
 0x192   :  { %2411 = vst [vmem:[%s4103_s5 + $0x120] sm:$0xff] %v2687_v11  ;;  %v1944_v39 = vadd.f32 %v3627_v12, %v1456_v3  ;;  %v1458_v48 = vadd.f32 %v1457_v63, %v3437_v2  ;;  %2412 = vst [vmem:[%s4103_s5 + $0x128] sm:$0xff] %v2688_v47  ;;  %v1946_v38 = vadd.f32 %v3634_v23, %v1569_v8  ;;  %v4202_v11 = vld [vmem:[#allocation12_spill] sm:$0xff]  ;;  %v4203_v63 = vld [vmem:[#allocation13_spill] sm:$0xff] }
 0x193   :  { %v1571_v49 = vadd.f32 %v1570_v0, %v3439_v4  ;;  %v1459_v24 = vpop.f32.mrf.mxu0  ;;  %v1572_v17 = vpop.f32.mrf.mxu1  ;;  %v4204_v0 = vld [vmem:[#allocation14_spill] sm:$0xff] }
 0x194   :  { %v2691_v30 = vpack.c.bf16 %v1944_v39, %v1943_v37  ;;  %v1460_v21 = vadd.f32 %v1459_v24, %v4192_v31  ;;  %v2692_v58 = vpack.c.bf16 %v1946_v38, %v1945_v1  ;;  %v1573_v6 = vadd.f32 %v1572_v17, %v4193_v5  ;;  %v4205_v24 = vld [vmem:[#allocation15_spill] sm:$0xff] }
 0x195   :  { %v1463_v2 = vpop.f32.mrf.mxu0  ;;  %v1951_v50 = vadd.f32 %v3624_v14, %v1458_v48  ;;  %v1576_v4 = vpop.f32.mrf.mxu1  ;;  %v1953_v51 = vadd.f32 %v3631_v10, %v1571_v49 }
 0x196   :  { %2415 = vst [vmem:[%s4103_s5 + $0x140] sm:$0xff] %v2691_v30  ;;  %v1952_v40 = vadd.f32 %v3627_v12, %v1460_v21  ;;  %v1464_v19 = vadd.f32 %v1463_v2, %v4194_v16  ;;  %2416 = vst [vmem:[%s4103_s5 + $0x148] sm:$0xff] %v2692_v58  ;;  %v1954_v52 = vadd.f32 %v3634_v23, %v1573_v6  ;;  %v4206_v21 = vld [vmem:[#allocation78_spill] sm:$0xff]  ;;  %v4207_v2 = vld [vmem:[#allocation16_spill] sm:$0xff] }
 0x197   :  { %v1577_v32 = vadd.f32 %v1576_v4, %v4195_v53  ;;  %v1465_v36 = vpop.f32.mrf.mxu0  ;;  %v1578_v20 = vpop.f32.mrf.mxu1  ;;  %v1841_v17 = vsub.s32 4, %v4206_v21  ;;  %v1849_v58 = vsub.s32 6, %v4206_v21  ;;  %v1845_v16 = vsub.s32 5, %v4206_v21 }
 0x198   :  { %v2695_v41 = vpack.c.bf16 %v1952_v40, %v1951_v50  ;;  %v1466_v25 = vadd.f32 %v1465_v36, %v4196_v42  ;;  %v2696_v18 = vpack.c.bf16 %v1954_v52, %v1953_v51  ;;  %v1579_v13 = vadd.f32 %v1578_v20, %v4197_v54  ;;  %v4208_v51 = vld [vmem:[#allocation17_spill] sm:$0xff] }
 0x199   :  { %v1467_v33 = vpop.f32.mrf.mxu0  ;;  %v1959_v34 = vadd.f32 %v3624_v14, %v1464_v19  ;;  %v1580_v22 = vpop.f32.mrf.mxu1  ;;  %v1961_v43 = vadd.f32 %v3631_v10, %v1577_v32  ;;  %v1853_v32 = vsub.s32 7, %v4206_v21 }
 0x19a   :  { %2419 = vst [vmem:[%s4103_s5 + $0x160] sm:$0xff] %v2695_v41  ;;  %v1960_v55 = vadd.f32 %v3627_v12, %v1466_v25  ;;  %v1468_v57 = vadd.f32 %v1467_v33, %v4198_v56  ;;  %2420 = vst [vmem:[%s4103_s5 + $0x168] sm:$0xff] %v2696_v18  ;;  %v1962_v26 = vadd.f32 %v3634_v23, %v1579_v13  ;;  %v4209_v41 = vld [vmem:[#allocation18_spill] sm:$0xff]  ;;  %v4210_v18 = vld [vmem:[#allocation19_spill] sm:$0xff] }
 0x19b   :  { %v1581_v27 = vadd.f32 %v1580_v22, %v4199_v9  ;;  %v1469_v44 = vpop.f32.mrf.mxu0  ;;  %v1582_v7 = vpop.f32.mrf.mxu1  ;;  %v4211_v33 = vld [vmem:[#allocation84_spill] sm:$0xff] }
 0x19c   :  { %v2699_v45 = vpack.c.bf16 %v1960_v55, %v1959_v34  ;;  %v1470_v46 = vadd.f32 %v1469_v44, %v4200_v59  ;;  %v2700_v15 = vpack.c.bf16 %v1962_v26, %v1961_v43  ;;  %v1583_v61 = vadd.f32 %v1582_v7, %v4201_v60  ;;  %v4212_v22 = vld [vmem:[#allocation20_spill] sm:$0xff]  ;;  %v4214_v7 = vld [vmem:[#allocation22_spill] sm:$0xff] }
 0x19d   :  { %v1473_v62 = vpop.f32.mrf.mxu0  ;;  %v1967_v28 = vadd.f32 %v3624_v14, %v1468_v57  ;;  %v1586_v29 = vpop.f32.mrf.mxu1  ;;  %v1969_v47 = vadd.f32 %v3631_v10, %v1581_v27  ;;  %v3847_v34 = vrot.slane %v4211_v33, %v1841_v17  ;;  %v3850_v55 = vrot.slane %v4211_v33, %v1849_v58  ;;  %v4220_v58 = vld [vmem:[#allocation28_spill] sm:$0xff] }
 0x19e   :  { %2423 = vst [vmem:[%s4103_s5 + $0x180] sm:$0xff] %v2699_v45  ;;  %v1968_v35 = vadd.f32 %v3627_v12, %v1470_v46  ;;  %v1474_v3 = vadd.f32 %v1473_v62, %v4202_v11  ;;  %2424 = vst [vmem:[%s4103_s5 + $0x188] sm:$0xff] %v2700_v15  ;;  %v1970_v8 = vadd.f32 %v3634_v23, %v1583_v61  ;;  %v4213_v45 = vld [vmem:[#allocation21_spill] sm:$0xff]  ;;  %v4215_v62 = vld [vmem:[#allocation23_spill] sm:$0xff] }
 0x19f   :  { %v1587_v37 = vadd.f32 %v1586_v29, %v4203_v63  ;;  %v1475_v39 = vpop.f32.mrf.mxu0  ;;  %v1588_v38 = vpop.f32.mrf.mxu1  ;;  %v3859_v9 = vrot.slane %v4211_v33, %v1845_v16  ;;  %v4216_v11 = vld [vmem:[#allocation24_spill] sm:$0xff]  ;;  %v4217_v63 = vld [vmem:[#allocation25_spill] sm:$0xff] }
 0x1a0   :  { %v2703_v48 = vpack.c.bf16 %v1968_v35, %v1967_v28  ;;  %v1476_v1 = vadd.f32 %v1475_v39, %v4204_v0  ;;  %v2704_v49 = vpack.c.bf16 %v1970_v8, %v1969_v47  ;;  %v1589_v30 = vadd.f32 %v1588_v38, %v4205_v24  ;;  %v4218_v0 = vld [vmem:[#allocation26_spill] sm:$0xff]  ;;  %v4219_v24 = vld [vmem:[#allocation27_spill] sm:$0xff] }
 0x1a1   :  { %v1477_v31 = vpop.f32.mrf.mxu0  ;;  %v1975_v5 = vadd.f32 %v3624_v14, %v1474_v3  ;;  %v1590_v40 = vpop.f32.mrf.mxu1  ;;  %v1977_v19 = vadd.f32 %v3631_v10, %v1587_v37 }
 0x1a2   :  { %2427 = vst [vmem:[%s4103_s5 + $0x1a0] sm:$0xff] %v2703_v48  ;;  %v1976_v6 = vadd.f32 %v3627_v12, %v1476_v1  ;;  %v1478_v50 = vadd.f32 %v1477_v31, %v4207_v2  ;;  %2428 = vst [vmem:[%s4103_s5 + $0x1a8] sm:$0xff] %v2704_v49  ;;  %v1978_v4 = vadd.f32 %v3634_v23, %v1589_v30 }
 0x1a3   :  { %v1591_v52 = vadd.f32 %v1590_v40, %v4208_v51  ;;  %v1479_v53 = vpop.f32.mrf.mxu0  ;;  %v1592_v25 = vpop.f32.mrf.mxu1  ;;  %v4221_v40 = vld [vmem:[#allocation29_spill] sm:$0xff]  ;;  %v4222_v51 = vld [vmem:[#allocation30_spill] sm:$0xff] }
 0x1a4   :  { %v2707_v36 = vpack.c.bf16 %v1976_v6, %v1975_v5  ;;  %v1480_v42 = vadd.f32 %v1479_v53, %v4209_v41  ;;  %v2708_v20 = vpack.c.bf16 %v1978_v4, %v1977_v19  ;;  %v1593_v54 = vadd.f32 %v1592_v25, %v4210_v18  ;;  %v4224_v18 = vld [vmem:[#allocation32_spill] sm:$0xff] }
 0x1a5   :  { %v1629_v13 = vpop.f32.mrf.mxu0  ;;  %v1983_v56 = vadd.f32 %v3624_v14, %v1478_v50  ;;  %v1742_v26 = vpop.f32.mrf.mxu1  ;;  %v1985_v27 = vadd.f32 %v3631_v10, %v1591_v52  ;;  %v3868_v14 = vrot.slane %v4211_v33, %v1853_v32 }
 0x1a6   :  { %2431 = vst [vmem:[%s4103_s5 + $0x1c0] sm:$0xff] %v2707_v36  ;;  %v1984_v57 = vadd.f32 %v3627_v12, %v1480_v42  ;;  %v1630_v43 = vadd.f32 %v1629_v13, %v4212_v22  ;;  %2432 = vst [vmem:[%s4103_s5 + $0x1c8] sm:$0xff] %v2708_v20  ;;  %v1986_v44 = vadd.f32 %v3634_v23, %v1593_v54  ;;  %v4223_v36 = vld [vmem:[#allocation31_spill] sm:$0xff] }
 0x1a7   :  { %v1743_v59 = vadd.f32 %v1742_v26, %v4213_v45  ;;  %v1631_v46 = vpop.f32.mrf.mxu0  ;;  %v1744_v60 = vpop.f32.mrf.mxu1 }
 0x1a8   :  { %v2711_v12 = vpack.c.bf16 %v1984_v57, %v1983_v56  ;;  %v1632_v15 = vadd.f32 %v1631_v46, %v4214_v7  ;;  %v2712_v61 = vpack.c.bf16 %v1986_v44, %v1985_v27  ;;  %v1745_v28 = vadd.f32 %v1744_v60, %v4215_v62  ;;  %v4225_v57 = vld [vmem:[#allocation33_spill] sm:$0xff]  ;;  %v4226_v27 = vld [vmem:[#allocation34_spill] sm:$0xff]  ;;  %v4227_v46 = vld [vmem:[#allocation35_spill] sm:$0xff] }
 0x1a9   :  { %v1633_v35 = vpop.f32.mrf.mxu0  ;;  %v1867_v10 = vadd.f32 %v3847_v34, %v1630_v43  ;;  %v1746_v29 = vpop.f32.mrf.mxu1  ;;  %v1869_v47 = vadd.f32 %v3850_v55, %v1743_v59 }
 0x1aa   :  { %2435 = vst [vmem:[%s4103_s5 + $0x1e0] sm:$0xff] %v2711_v12  ;;  %v1868_v23 = vadd.f32 %v3859_v9, %v1632_v15  ;;  %v1634_v3 = vadd.f32 %v1633_v35, %v4216_v11  ;;  %2436 = vst [vmem:[%s4103_s5 + $0x1e8] sm:$0xff] %v2712_v61  ;;  %v1870_v8 = vadd.f32 %v3868_v14, %v1745_v28  ;;  %v4228_v61 = vld [vmem:[#allocation36_spill] sm:$0xff] }
 0x1ab   :  { %v1747_v37 = vadd.f32 %v1746_v29, %v4217_v63  ;;  %v1635_v39 = vpop.f32.mrf.mxu0  ;;  %v1748_v38 = vpop.f32.mrf.mxu1 }
 0x1ac   :  { %v2653_v48 = vpack.c.bf16 %v1868_v23, %v1867_v10  ;;  %v1636_v1 = vadd.f32 %v1635_v39, %v4218_v0  ;;  %v2654_v49 = vpack.c.bf16 %v1870_v8, %v1869_v47  ;;  %v1749_v30 = vadd.f32 %v1748_v38, %v4219_v24  ;;  %v4229_v23 = vld [vmem:[#allocation37_spill] sm:$0xff]  ;;  %v4230_v47 = vld [vmem:[#allocation38_spill] sm:$0xff]  ;;  %v4231_v39 = vld [vmem:[#allocation39_spill] sm:$0xff] }
 0x1ad   :  { %v1639_v31 = vpop.f32.mrf.mxu0  ;;  %v1875_v21 = vadd.f32 %v3847_v34, %v1634_v3  ;;  %v1752_v6 = vpop.f32.mrf.mxu1  ;;  %v1877_v2 = vadd.f32 %v3850_v55, %v1747_v37 }
 0x1ae   :  { %2377 = vst [vmem:[%s4103_s5 + $0x10] sm:$0xff] %v2653_v48  ;;  %v1876_v17 = vadd.f32 %v3859_v9, %v1636_v1  ;;  %v1640_v5 = vadd.f32 %v1639_v31, %v4220_v58  ;;  %2378 = vst [vmem:[%s4103_s5 + $0x18] sm:$0xff] %v2654_v49  ;;  %v1878_v50 = vadd.f32 %v3868_v14, %v1749_v30  ;;  %v4232_v49 = vld [vmem:[#allocation40_spill] sm:$0xff] }
 0x1af   :  { %v1753_v16 = vadd.f32 %v1752_v6, %v4221_v40  ;;  %v1641_v19 = vpop.f32.mrf.mxu0  ;;  %v1754_v53 = vpop.f32.mrf.mxu1 }
 0x1b0   :  { %v2657_v4 = vpack.c.bf16 %v1876_v17, %v1875_v21  ;;  %v1642_v52 = vadd.f32 %v1641_v19, %v4222_v51  ;;  %v2658_v32 = vpack.c.bf16 %v1878_v50, %v1877_v2  ;;  %v1755_v41 = vadd.f32 %v1754_v53, %v4223_v36  ;;  %v4233_v17 = vld [vmem:[#allocation41_spill] sm:$0xff]  ;;  %v4234_v2 = vld [vmem:[#allocation42_spill] sm:$0xff]  ;;  %v4235_v19 = vld [vmem:[#allocation43_spill] sm:$0xff] }
 0x1b1   :  { %v1643_v42 = vpop.f32.mrf.mxu0  ;;  %v1883_v25 = vadd.f32 %v3847_v34, %v1640_v5  ;;  %v1756_v13 = vpop.f32.mrf.mxu1  ;;  %v1885_v33 = vadd.f32 %v3850_v55, %v1753_v16 }
 0x1b2   :  { %2381 = vst [vmem:[%s4103_s5 + $0x30] sm:$0xff] %v2657_v4  ;;  %v1884_v20 = vadd.f32 %v3859_v9, %v1642_v52  ;;  %v1644_v54 = vadd.f32 %v1643_v42, %v4224_v18  ;;  %2382 = vst [vmem:[%s4103_s5 + $0x38] sm:$0xff] %v2658_v32  ;;  %v1886_v56 = vadd.f32 %v3868_v14, %v1755_v41  ;;  %v4236_v32 = vld [vmem:[#allocation44_spill] sm:$0xff] }
 0x1b3   :  { %v1757_v22 = vadd.f32 %v1756_v13, %v4225_v57  ;;  %v1645_v43 = vpop.f32.mrf.mxu0  ;;  %v1758_v45 = vpop.f32.mrf.mxu1 }
 0x1b4   :  { %v2661_v26 = vpack.c.bf16 %v1884_v20, %v1883_v25  ;;  %v1646_v44 = vadd.f32 %v1645_v43, %v4226_v27  ;;  %v2662_v59 = vpack.c.bf16 %v1886_v56, %v1885_v33  ;;  %v1759_v12 = vadd.f32 %v1758_v45, %v4227_v46  ;;  %v4237_v20 = vld [vmem:[#allocation45_spill] sm:$0xff]  ;;  %v4238_v33 = vld [vmem:[#allocation46_spill] sm:$0xff]  ;;  %v4239_v43 = vld [vmem:[#allocation47_spill] sm:$0xff] }
 0x1b5   :  { %v1649_v7 = vpop.f32.mrf.mxu0  ;;  %v1891_v15 = vadd.f32 %v3847_v34, %v1644_v54  ;;  %v1762_v28 = vpop.f32.mrf.mxu1  ;;  %v1893_v35 = vadd.f32 %v3850_v55, %v1757_v22 }
 0x1b6   :  { %2385 = vst [vmem:[%s4103_s5 + $0x50] sm:$0xff] %v2661_v26  ;;  %v1892_v60 = vadd.f32 %v3859_v9, %v1646_v44  ;;  %v1650_v62 = vadd.f32 %v1649_v7, %v4228_v61  ;;  %2386 = vst [vmem:[%s4103_s5 + $0x58] sm:$0xff] %v2662_v59  ;;  %v1894_v10 = vadd.f32 %v3868_v14, %v1759_v12  ;;  %v4240_v59 = vld [vmem:[#allocation48_spill] sm:$0xff] }
 0x1b7   :  { %v1763_v11 = vadd.f32 %v1762_v28, %v4229_v23  ;;  %v1651_v3 = vpop.f32.mrf.mxu0  ;;  %v1764_v63 = vpop.f32.mrf.mxu1 }
 0x1b8   :  { %v2665_v29 = vpack.c.bf16 %v1892_v60, %v1891_v15  ;;  %v1652_v8 = vadd.f32 %v1651_v3, %v4230_v47  ;;  %v2666_v37 = vpack.c.bf16 %v1894_v10, %v1893_v35  ;;  %v1765_v48 = vadd.f32 %v1764_v63, %v4231_v39  ;;  %v4241_v60 = vld [vmem:[#allocation49_spill] sm:$0xff]  ;;  %v4242_v35 = vld [vmem:[#allocation50_spill] sm:$0xff]  ;;  %v4243_v3 = vld [vmem:[#allocation51_spill] sm:$0xff] }
 0x1b9   :  { %v1653_v0 = vpop.f32.mrf.mxu0  ;;  %v1899_v1 = vadd.f32 %v3847_v34, %v1650_v62  ;;  %v1766_v30 = vpop.f32.mrf.mxu1  ;;  %v1901_v31 = vadd.f32 %v3850_v55, %v1763_v11 }
 0x1ba   :  { %2389 = vst [vmem:[%s4103_s5 + $0x70] sm:$0xff] %v2665_v29  ;;  %v1900_v38 = vadd.f32 %v3859_v9, %v1652_v8  ;;  %v1654_v24 = vadd.f32 %v1653_v0, %v4232_v49  ;;  %2390 = vst [vmem:[%s4103_s5 + $0x78] sm:$0xff] %v2666_v37  ;;  %v1902_v21 = vadd.f32 %v3868_v14, %v1765_v48  ;;  %v4244_v37 = vld [vmem:[#allocation52_spill] sm:$0xff] }
 0x1bb   :  { %v1767_v58 = vadd.f32 %v1766_v30, %v4233_v17  ;;  %v1655_v5 = vpop.f32.mrf.mxu0  ;;  %v1768_v40 = vpop.f32.mrf.mxu1 }
 0x1bc   :  { %v2669_v6 = vpack.c.bf16 %v1900_v38, %v1899_v1  ;;  %v1656_v50 = vadd.f32 %v1655_v5, %v4234_v2  ;;  %v2670_v16 = vpack.c.bf16 %v1902_v21, %v1901_v31  ;;  %v1769_v4 = vadd.f32 %v1768_v40, %v4235_v19  ;;  %v4245_v38 = vld [vmem:[#allocation53_spill] sm:$0xff]  ;;  %v4246_v31 = vld [vmem:[#allocation54_spill] sm:$0xff]  ;;  %v4247_v5 = vld [vmem:[#allocation55_spill] sm:$0xff] }
 0x1bd   :  { %v1659_v51 = vpop.f32.mrf.mxu0  ;;  %v1907_v52 = vadd.f32 %v3847_v34, %v1654_v24  ;;  %v1772_v41 = vpop.f32.mrf.mxu1  ;;  %v1909_v42 = vadd.f32 %v3850_v55, %v1767_v58 }
 0x1be   :  { %2393 = vst [vmem:[%s4103_s5 + $0x90] sm:$0xff] %v2669_v6  ;;  %v1908_v53 = vadd.f32 %v3859_v9, %v1656_v50  ;;  %v1660_v36 = vadd.f32 %v1659_v51, %v4236_v32  ;;  %2394 = vst [vmem:[%s4103_s5 + $0x98] sm:$0xff] %v2670_v16  ;;  %v1910_v25 = vadd.f32 %v3868_v14, %v1769_v4  ;;  %v4248_v16 = vld [vmem:[#allocation56_spill] sm:$0xff] }
 0x1bf   :  { %v1773_v18 = vadd.f32 %v1772_v41, %v4237_v20  ;;  %v1661_v54 = vpop.f32.mrf.mxu0  ;;  %v1774_v57 = vpop.f32.mrf.mxu1 }
 0x1c0   :  { %v2673_v13 = vpack.c.bf16 %v1908_v53, %v1907_v52  ;;  %v1662_v56 = vadd.f32 %v1661_v54, %v4238_v33  ;;  %v2674_v22 = vpack.c.bf16 %v1910_v25, %v1909_v42  ;;  %v1775_v26 = vadd.f32 %v1774_v57, %v4239_v43  ;;  %v4249_v53 = vld [vmem:[#allocation57_spill] sm:$0xff]  ;;  %v4250_v42 = vld [vmem:[#allocation58_spill] sm:$0xff]  ;;  %v4251_v54 = vld [vmem:[#allocation59_spill] sm:$0xff] }
 0x1c1   :  { %v1663_v27 = vpop.f32.mrf.mxu0  ;;  %v1915_v44 = vadd.f32 %v3847_v34, %v1660_v36  ;;  %v1776_v12 = vpop.f32.mrf.mxu1  ;;  %v1917_v7 = vadd.f32 %v3850_v55, %v1773_v18 }
 0x1c2   :  { %2397 = vst [vmem:[%s4103_s5 + $0xb0] sm:$0xff] %v2673_v13  ;;  %v1916_v45 = vadd.f32 %v3859_v9, %v1662_v56  ;;  %v1664_v46 = vadd.f32 %v1663_v27, %v4240_v59  ;;  %2398 = vst [vmem:[%s4103_s5 + $0xb8] sm:$0xff] %v2674_v22  ;;  %v1918_v15 = vadd.f32 %v3868_v14, %v1775_v26  ;;  %v4252_v22 = vld [vmem:[#allocation60_spill] sm:$0xff] }
 0x1c3   :  { %v1777_v61 = vadd.f32 %v1776_v12, %v4241_v60  ;;  %v1665_v62 = vpop.f32.mrf.mxu0  ;;  %v1778_v23 = vpop.f32.mrf.mxu1 }
 0x1c4   :  { %v2677_v28 = vpack.c.bf16 %v1916_v45, %v1915_v44  ;;  %v1666_v10 = vadd.f32 %v1665_v62, %v4242_v35  ;;  %v2678_v11 = vpack.c.bf16 %v1918_v15, %v1917_v7  ;;  %v1779_v29 = vadd.f32 %v1778_v23, %v4243_v3  ;;  %v4253_v45 = vld [vmem:[#allocation61_spill] sm:$0xff]  ;;  %v4254_v7 = vld [vmem:[#allocation62_spill] sm:$0xff]  ;;  %v4255_v62 = vld [vmem:[#allocation63_spill] sm:$0xff] }
 0x1c5   :  { %v1669_v47 = vpop.f32.mrf.mxu0  ;;  %v1923_v8 = vadd.f32 %v3847_v34, %v1664_v46  ;;  %v1782_v48 = vpop.f32.mrf.mxu1  ;;  %v1925_v0 = vadd.f32 %v3850_v55, %v1777_v61 }
 0x1c6   :  { %2401 = vst [vmem:[%s4103_s5 + $0xd0] sm:$0xff] %v2677_v28  ;;  %v1924_v63 = vadd.f32 %v3859_v9, %v1666_v10  ;;  %v1670_v39 = vadd.f32 %v1669_v47, %v4244_v37  ;;  %2402 = vst [vmem:[%s4103_s5 + $0xd8] sm:$0xff] %v2678_v11  ;;  %v1926_v1 = vadd.f32 %v3868_v14, %v1779_v29  ;;  %v4256_v11 = vld [vmem:[#allocation64_spill] sm:$0xff] }
 0x1c7   :  { %v1783_v49 = vadd.f32 %v1782_v48, %v4245_v38  ;;  %v1671_v24 = vpop.f32.mrf.mxu0  ;;  %v1784_v17 = vpop.f32.mrf.mxu1 }
 0x1c8   :  { %v2681_v30 = vpack.c.bf16 %v1924_v63, %v1923_v8  ;;  %v1672_v21 = vadd.f32 %v1671_v24, %v4246_v31  ;;  %v2682_v58 = vpack.c.bf16 %v1926_v1, %v1925_v0  ;;  %v1785_v6 = vadd.f32 %v1784_v17, %v4247_v5  ;;  %v4257_v63 = vld [vmem:[#allocation65_spill] sm:$0xff]  ;;  %v4258_v0 = vld [vmem:[#allocation66_spill] sm:$0xff]  ;;  %v4259_v24 = vld [vmem:[#allocation67_spill] sm:$0xff] }
 0x1c9   :  { %v1673_v2 = vpop.f32.mrf.mxu0  ;;  %v1931_v50 = vadd.f32 %v3847_v34, %v1670_v39  ;;  %v1786_v4 = vpop.f32.mrf.mxu1  ;;  %v1933_v51 = vadd.f32 %v3850_v55, %v1783_v49 }
 0x1ca   :  { %2405 = vst [vmem:[%s4103_s5 + $0xf0] sm:$0xff] %v2681_v30  ;;  %v1932_v40 = vadd.f32 %v3859_v9, %v1672_v21  ;;  %v1674_v19 = vadd.f32 %v1673_v2, %v4248_v16  ;;  %2406 = vst [vmem:[%s4103_s5 + $0xf8] sm:$0xff] %v2682_v58  ;;  %v1934_v52 = vadd.f32 %v3868_v14, %v1785_v6  ;;  %v4260_v58 = vld [vmem:[#allocation68_spill] sm:$0xff] }
 0x1cb   :  { %v1787_v32 = vadd.f32 %v1786_v4, %v4249_v53  ;;  %v1675_v36 = vpop.f32.mrf.mxu0  ;;  %v1788_v20 = vpop.f32.mrf.mxu1 }
 0x1cc   :  { %v2685_v41 = vpack.c.bf16 %v1932_v40, %v1931_v50  ;;  %v1676_v25 = vadd.f32 %v1675_v36, %v4250_v42  ;;  %v2686_v18 = vpack.c.bf16 %v1934_v52, %v1933_v51  ;;  %v1789_v13 = vadd.f32 %v1788_v20, %v4251_v54  ;;  %v4261_v40 = vld [vmem:[#allocation69_spill] sm:$0xff]  ;;  %v4262_v51 = vld [vmem:[#allocation70_spill] sm:$0xff]  ;;  %v4263_v36 = vld [vmem:[#allocation71_spill] sm:$0xff] }
 0x1cd   :  { %v1679_v33 = vpop.f32.mrf.mxu0  ;;  %v1939_v56 = vadd.f32 %v3847_v34, %v1674_v19  ;;  %v1792_v26 = vpop.f32.mrf.mxu1  ;;  %v1941_v27 = vadd.f32 %v3850_v55, %v1787_v32 }
 0x1ce   :  { %2409 = vst [vmem:[%s4103_s5 + $0x110] sm:$0xff] %v2685_v41  ;;  %v1940_v57 = vadd.f32 %v3859_v9, %v1676_v25  ;;  %v1680_v43 = vadd.f32 %v1679_v33, %v4252_v22  ;;  %2410 = vst [vmem:[%s4103_s5 + $0x118] sm:$0xff] %v2686_v18  ;;  %v1942_v44 = vadd.f32 %v3868_v14, %v1789_v13  ;;  %v4264_v18 = vld [vmem:[#allocation72_spill] sm:$0xff] }
 0x1cf   :  { %v1793_v59 = vadd.f32 %v1792_v26, %v4253_v45  ;;  %v1681_v46 = vpop.f32.mrf.mxu0  ;;  %v1794_v60 = vpop.f32.mrf.mxu1 }
 0x1d0   :  { %v2689_v12 = vpack.c.bf16 %v1940_v57, %v1939_v56  ;;  %v1682_v15 = vadd.f32 %v1681_v46, %v4254_v7  ;;  %v2690_v61 = vpack.c.bf16 %v1942_v44, %v1941_v27  ;;  %v1795_v28 = vadd.f32 %v1794_v60, %v4255_v62  ;;  %v4265_v57 = vld [vmem:[#allocation73_spill] sm:$0xff]  ;;  %v4266_v27 = vld [vmem:[#allocation74_spill] sm:$0xff]  ;;  %v4267_v46 = vld [vmem:[#allocation75_spill] sm:$0xff] }
 0x1d1   :  { %v1683_v35 = vpop.f32.mrf.mxu0  ;;  %v1947_v10 = vadd.f32 %v3847_v34, %v1680_v43  ;;  %v1796_v29 = vpop.f32.mrf.mxu1  ;;  %v1949_v47 = vadd.f32 %v3850_v55, %v1793_v59 }
 0x1d2   :  { %2413 = vst [vmem:[%s4103_s5 + $0x130] sm:$0xff] %v2689_v12  ;;  %v1948_v23 = vadd.f32 %v3859_v9, %v1682_v15  ;;  %v1684_v3 = vadd.f32 %v1683_v35, %v4256_v11  ;;  %2414 = vst [vmem:[%s4103_s5 + $0x138] sm:$0xff] %v2690_v61  ;;  %v1950_v8 = vadd.f32 %v3868_v14, %v1795_v28  ;;  %v4268_v61 = vld [vmem:[#allocation76_spill] sm:$0xff] }
 0x1d3   :  { %v1797_v37 = vadd.f32 %v1796_v29, %v4257_v63  ;;  %v1685_v39 = vpop.f32.mrf.mxu0  ;;  %v1798_v38 = vpop.f32.mrf.mxu1 }
 0x1d4   :  { %v2693_v48 = vpack.c.bf16 %v1948_v23, %v1947_v10  ;;  %v1686_v1 = vadd.f32 %v1685_v39, %v4258_v0  ;;  %v2694_v49 = vpack.c.bf16 %v1950_v8, %v1949_v47  ;;  %v1799_v30 = vadd.f32 %v1798_v38, %v4259_v24  ;;  %v4269_v23 = vld [vmem:[#allocation77_spill] sm:$0xff]  ;;  %v4270_v47 = vld [vmem:[#allocation79_spill] sm:$0xff]  ;;  %v4271_v39 = vld [vmem:[#allocation80_spill] sm:$0xff] }
 0x1d5   :  { %v1689_v31 = vpop.f32.mrf.mxu0  ;;  %v1955_v21 = vadd.f32 %v3847_v34, %v1684_v3  ;;  %v1802_v6 = vpop.f32.mrf.mxu1  ;;  %v1957_v2 = vadd.f32 %v3850_v55, %v1797_v37 }
 0x1d6   :  { %2417 = vst [vmem:[%s4103_s5 + $0x150] sm:$0xff] %v2693_v48  ;;  %v1956_v17 = vadd.f32 %v3859_v9, %v1686_v1  ;;  %v1690_v5 = vadd.f32 %v1689_v31, %v4260_v58  ;;  %2418 = vst [vmem:[%s4103_s5 + $0x158] sm:$0xff] %v2694_v49  ;;  %v1958_v50 = vadd.f32 %v3868_v14, %v1799_v30  ;;  %v4272_v49 = vld [vmem:[#allocation81_spill] sm:$0xff] }
 0x1d7   :  { %v1803_v16 = vadd.f32 %v1802_v6, %v4261_v40  ;;  %v1691_v19 = vpop.f32.mrf.mxu0  ;;  %v1804_v53 = vpop.f32.mrf.mxu1 }
 0x1d8   :  { %v2697_v4 = vpack.c.bf16 %v1956_v17, %v1955_v21  ;;  %v1692_v52 = vadd.f32 %v1691_v19, %v4262_v51  ;;  %v2698_v32 = vpack.c.bf16 %v1958_v50, %v1957_v2  ;;  %v1805_v41 = vadd.f32 %v1804_v53, %v4263_v36  ;;  %v4273_v17 = vld [vmem:[#allocation82_spill] sm:$0xff]  ;;  %v4274_v2 = vld [vmem:[#allocation83_spill] sm:$0xff]  ;;  %v4275_v19 = vld [vmem:[#allocation85_spill] sm:$0xff] }
 0x1d9   :  { %v1693_v42 = vpop.f32.mrf.mxu0  ;;  %v1963_v25 = vadd.f32 %v3847_v34, %v1690_v5  ;;  %v1806_v13 = vpop.f32.mrf.mxu1  ;;  %v1965_v33 = vadd.f32 %v3850_v55, %v1803_v16 }
 0x1da   :  { %2421 = vst [vmem:[%s4103_s5 + $0x170] sm:$0xff] %v2697_v4  ;;  %v1964_v20 = vadd.f32 %v3859_v9, %v1692_v52  ;;  %v1694_v54 = vadd.f32 %v1693_v42, %v4264_v18  ;;  %2422 = vst [vmem:[%s4103_s5 + $0x178] sm:$0xff] %v2698_v32  ;;  %v1966_v56 = vadd.f32 %v3868_v14, %v1805_v41 }
 0x1db   :  { %v1807_v22 = vadd.f32 %v1806_v13, %v4265_v57  ;;  %v1695_v43 = vpop.f32.mrf.mxu0  ;;  %v1808_v45 = vpop.f32.mrf.mxu1 }
 0x1dc   :  { %v2701_v26 = vpack.c.bf16 %v1964_v20, %v1963_v25  ;;  %v1696_v44 = vadd.f32 %v1695_v43, %v4266_v27  ;;  %v2702_v59 = vpack.c.bf16 %v1966_v56, %v1965_v33  ;;  %v1809_v12 = vadd.f32 %v1808_v45, %v4267_v46 }
 0x1dd   :  { %v1699_v7 = vpop.f32.mrf.mxu0  ;;  %v1971_v15 = vadd.f32 %v3847_v34, %v1694_v54  ;;  %v1812_v28 = vpop.f32.mrf.mxu1  ;;  %v1973_v35 = vadd.f32 %v3850_v55, %v1807_v22 }
 0x1de   :  { %2425 = vst [vmem:[%s4103_s5 + $0x190] sm:$0xff] %v2701_v26  ;;  %v1972_v60 = vadd.f32 %v3859_v9, %v1696_v44  ;;  %v1700_v62 = vadd.f32 %v1699_v7, %v4268_v61  ;;  %2426 = vst [vmem:[%s4103_s5 + $0x198] sm:$0xff] %v2702_v59  ;;  %v1974_v10 = vadd.f32 %v3868_v14, %v1809_v12 }
 0x1df   :  { %v1813_v11 = vadd.f32 %v1812_v28, %v4269_v23  ;;  %v1701_v3 = vpop.f32.mrf.mxu0  ;;  %v1814_v63 = vpop.f32.mrf.mxu1 }
 0x1e0   :  { %v2705_v29 = vpack.c.bf16 %v1972_v60, %v1971_v15  ;;  %v1702_v8 = vadd.f32 %v1701_v3, %v4270_v47  ;;  %v2706_v37 = vpack.c.bf16 %v1974_v10, %v1973_v35  ;;  %v1815_v48 = vadd.f32 %v1814_v63, %v4271_v39 }
 0x1e1   :  { %v1703_v0 = vpop.f32.mrf.mxu0  ;;  %v1979_v1 = vadd.f32 %v3847_v34, %v1700_v62  ;;  %v1816_v30 = vpop.f32.mrf.mxu1  ;;  %v1981_v31 = vadd.f32 %v3850_v55, %v1813_v11 }
 0x1e2   :  { %2429 = vst [vmem:[%s4103_s5 + $0x1b0] sm:$0xff] %v2705_v29  ;;  %v1980_v38 = vadd.f32 %v3859_v9, %v1702_v8  ;;  %v1704_v24 = vadd.f32 %v1703_v0, %v4272_v49  ;;  %2430 = vst [vmem:[%s4103_s5 + $0x1b8] sm:$0xff] %v2706_v37  ;;  %v1982_v21 = vadd.f32 %v3868_v14, %v1815_v48 }
 0x1e3   :  { %v1817_v58 = vadd.f32 %v1816_v30, %v4273_v17  ;;  %v1705_v5 = vpop.f32.mrf.mxu0  ;;  %v1818_v40 = vpop.f32.mrf.mxu1 }
 0x1e4   :  { %v2709_v6 = vpack.c.bf16 %v1980_v38, %v1979_v1  ;;  %v1706_v50 = vadd.f32 %v1705_v5, %v4274_v2  ;;  %v2710_v16 = vpack.c.bf16 %v1982_v21, %v1981_v31  ;;  %v1819_v4 = vadd.f32 %v1818_v40, %v4275_v19 }
 0x1e5   :  { %v1987_v51 = vadd.f32 %v3847_v34, %v1704_v24  ;;  %v1989_v53 = vadd.f32 %v3850_v55, %v1817_v58 }
 0x1e6   :  { %2433 = vst [vmem:[%s4103_s5 + $0x1d0] sm:$0xff] %v2709_v6  ;;  %v1988_v52 = vadd.f32 %v3859_v9, %v1706_v50  ;;  %2434 = vst [vmem:[%s4103_s5 + $0x1d8] sm:$0xff] %v2710_v16  ;;  %v1990_v32 = vadd.f32 %v3868_v14, %v1819_v4 }
 0x1e8   :  { %v2713_v36 = vpack.c.bf16 %v1988_v52, %v1987_v51  ;;  %v2714_v41 = vpack.c.bf16 %v1990_v32, %v1989_v53 }
 0x1ea   :  { %2437 = vst [vmem:[%s4103_s5 + $0x1f0] sm:$0xff] %v2713_v36  ;;  %2438 = vst [vmem:[%s4103_s5 + $0x1f8] sm:$0xff] %v2714_v41 }

</bundles_post_ra>
